<compile_context>
chip_gen: v7x
topology: tpu7x:2x2x1
jax: 0.10.0
libtpu: 0.0.40
codegen_flags: <defaults>
</compile_context>

<pallas_src>
import numpy as np
import jax
import jax.numpy as jnp
from jax import lax
from jax.experimental import pallas as pl
from jax.experimental.pallas import tpu as pltpu

FOV = 7
LEAK = 0.01   # nn.LeakyReLU default negative_slope


# ----------------------------------------------------------------------------------
# Pallas kernel: per tile of NT patches, the whole per-patch network is 4 dense
# matmuls (196 -> 400 -> 144 -> 512 -> 12) over a lane-dense (F, NT) layout.
# ----------------------------------------------------------------------------------
def _kernel(x_ref, m_ref, d1_ref, b1_ref, d2_ref, b2_ref, d3_ref, b3_ref,
            d4_ref, b4_ref, out_ref):
    mean = m_ref[...]                            # (1, NT)  per-patch log mean
    s = jnp.exp(-mean)                           # (1, NT)
    em = jnp.exp(mean)                           # (1, NT)

    # normalized patch input: exp(log(x+1) - mean) - 1 == (x+1)*exp(-mean) - 1
    a0 = (x_ref[...] + 1.0) * s - 1.0            # (196, NT)

    def dense(w_ref, b_ref, a):
        return jnp.dot(w_ref[...], a, preferred_element_type=jnp.float32) + b_ref[...]

    def leaky(z):
        return jnp.where(z >= 0.0, z, LEAK * z)

    a1 = leaky(dense(d1_ref, b1_ref, a0))        # (400, NT)   conv1 (4->16, 7x7->5x5)
    a2 = leaky(dense(d2_ref, b2_ref, a1))        # (144, NT)   conv2 (16->16, 5x5->3x3)
    a3 = leaky(dense(d3_ref, b3_ref, a2))        # (512, NT)   Upsample+conv3 (16->32, ->4x4)
    z4 = dense(d4_ref, b4_ref, a3)               # (12,  NT)   conv4 (32->3, 4x4->2x2)

    # exp(log(clamp(z4,-0.5)+1) + mean) - 1 == (clamp(z4,-0.5)+1)*exp(mean) - 1
    out_ref[...] = (jnp.maximum(z4, -0.5) + 1.0) * em - 1.0


# ----------------------------------------------------------------------------------
# Glue helpers (plain JAX / numpy — layout only).
# ----------------------------------------------------------------------------------
def _space_to_depth(mosaic):
    # gray_mosaic.unfold(2,2,2).unfold(1,2,2).permute(0,3,4,1,2).view(bs,4,h,w)
    # => channel c = 2*wi + hi, cs[b,c,y,x] = gray[b, 2y+hi, 2x+wi]
    bs, _, H, W = mosaic.shape
    h, w = H // 2, W // 2
    gray = mosaic.sum(1)
    return (gray.reshape(bs, h, 2, w, 2)
                .transpose(0, 4, 2, 1, 3)
                .reshape(bs, 4, h, w))


def _extract_patches(cs, fov):
    # cs.unfold(3,fov,1).unfold(2,fov,1).permute(0,2,3,1,4,5):
    #   patch[b, y, x, c, a, d] = cs[b, c, y + d, x + a]   (a = x-offset, d = y-offset)
    # returned as (bs, 4, fov*fov, hp, wp) with flat patch index p = a*fov + d.
    bs, _, h, w = cs.shape
    hp, wp = h - fov + 1, w - fov + 1
    return jnp.stack([cs[:, :, d:d + hp, a:a + wp]
                      for a in range(fov) for d in range(fov)], axis=2)


def _conv_to_dense(w, b, in_hw, out_hw, up=1):
    """Fold a valid 3x3 conv (optionally preceded by nearest 2x upsample) into a dense
    matrix acting on per-patch flattened features k = c*in_hw^2 + a*in_hw + d."""
    o_c, i_c, kh, kw = w.shape
    sel = np.zeros((kh, kw, out_hw, out_hw, in_hw, in_hw), np.float32)
    for ky in range(kh):
        for kx in range(kw):
            for a in range(out_hw):
                for d in range(out_hw):
                    sel[ky, kx, a, d, (a + ky) // up, (d + kx) // up] = 1.0
    dmat = jnp.einsum('oikl,klabcd->oabicd', w, jnp.asarray(sel))
    dmat = dmat.reshape(o_c * out_hw * out_hw, i_c * in_hw * in_hw)
    bvec = jnp.repeat(b, out_hw * out_hw)[:, None]
    return dmat, bvec


# ----------------------------------------------------------------------------------
# Wrapper.
# ----------------------------------------------------------------------------------
def bayer_log_forward(mosaic, params, *, tile_n=256, fov=FOV):
    bs, _, H, W = mosaic.shape
    assert H % 2 == 0 and W % 2 == 0
    h, w = H // 2, W // 2
    hp, wp = h - fov + 1, w - fov + 1
    assert hp > 0 and wp > 0

    cs = _space_to_depth(mosaic)                                   # (bs, 4, h, w)

    # per-patch mean of log(x+1) over green channels {0,3}: 7x7 valid box filter.
    g = jnp.log1p(cs[:, 0]) + jnp.log1p(cs[:, 3])                  # (bs, h, w)
    box = lax.reduce_window(g, 0.0, lax.add, (1, fov, fov), (1, 1, 1), 'VALID')
    mean = box / float(2 * fov * fov)                              # (bs, hp, wp)

    # im2col of raw samples; feature k = c*49 + a*7 + d, patch n = b*hp*wp + y*wp + x.
    f_in = 4 * fov * fov
    patches = _extract_patches(cs, fov)                            # (bs, 4, 49, hp, wp)
    x_feat = (patches.reshape(bs, f_in, hp, wp)
                     .transpose(1, 0, 2, 3)
                     .reshape(f_in, bs * hp * wp))                 # (196, Ntot)
    m_feat = mean.reshape(1, bs * hp * wp)                         # (1, Ntot)

    n_tot = bs * hp * wp
    n_pad = ((n_tot + tile_n - 1) // tile_n) * tile_n
    x_feat = jnp.pad(x_feat, ((0, 0), (0, n_pad - n_tot)))
    m_feat = jnp.pad(m_feat, ((0, 0), (0, n_pad - n_tot)))

    # conv stack -> dense per-patch MLP (nearest Upsample folded into layer 3).
    d1, b1 = _conv_to_dense(params['w1'], params['b1'], in_hw=7, out_hw=5)
    d2, b2 = _conv_to_dense(params['w2'], params['b2'], in_hw=5, out_hw=3)
    d3, b3 = _conv_to_dense(params['w3'], params['b3'], in_hw=3, out_hw=4, up=2)
    d4, b4 = _conv_to_dense(params['w4'], params['b4'], in_hw=4, out_hw=2)
    f1, f2, f3, f4 = d1.shape[0], d2.shape[0], d3.shape[0], d4.shape[0]

    flops = 2 * n_pad * (f1 * f_in + f2 * f1 + f3 * f2 + f4 * f3)
    bytes_acc = 4 * (n_pad * (f_in + 1 + f4)
                     + f1 * f_in + f2 * f1 + f3 * f2 + f4 * f3
                     + f1 + f2 + f3 + f4)

    out_flat = pl.pallas_call(
        _kernel,
        out_shape=jax.ShapeDtypeStruct((f4, n_pad), jnp.float32),
        grid=(n_pad // tile_n,),
        in_specs=[
            pl.BlockSpec((f_in, tile_n), lambda n: (0, n)),
            pl.BlockSpec((1, tile_n), lambda n: (0, n)),
            pl.BlockSpec((f1, f_in), lambda n: (0, 0)),
            pl.BlockSpec((f1, 1), lambda n: (0, 0)),
            pl.BlockSpec((f2, f1), lambda n: (0, 0)),
            pl.BlockSpec((f2, 1), lambda n: (0, 0)),
            pl.BlockSpec((f3, f2), lambda n: (0, 0)),
            pl.BlockSpec((f3, 1), lambda n: (0, 0)),
            pl.BlockSpec((f4, f3), lambda n: (0, 0)),
            pl.BlockSpec((f4, 1), lambda n: (0, 0)),
        ],
        out_specs=pl.BlockSpec((f4, tile_n), lambda n: (0, n)),
        compiler_params=pltpu.CompilerParams(
            dimension_semantics=("parallel",),
            vmem_limit_bytes=32 * 1024 * 1024),
        cost_estimate=pl.CostEstimate(flops=flops, transcendentals=2 * n_pad,
                                      bytes_accessed=bytes_acc),
    )(x_feat, m_feat, d1, b1, d2, b2, d3, b3, d4, b4)

    # (12, Ntot) -> (bs, 3, 2*hp, 2*wp); flat feature r = o*4 + A*2 + D,
    # output pixel (b, o, 2y + A, 2x + D) as in the PyTorch permute/view.
    out = out_flat[:, :n_tot].reshape(3, 2, 2, bs, hp, wp)
    out = out.transpose(3, 0, 4, 1, 5, 2).reshape(bs, 3, 2 * hp, 2 * wp)
    return out


# ----------------------------------------------------------------------------------
# Pure-JAX reference mirroring the PyTorch forward (for verification).
# ----------------------------------------------------------------------------------
def reference_forward(mosaic, params, fov=FOV):
    bs, _, H, W = mosaic.shape
    h, w = H // 2, W // 2
    hp, wp = h - fov + 1, w - fov + 1
    cs = _space_to_depth(mosaic)

    patches = _extract_patches(cs, fov)                        # (bs, 4, 49, hp, wp)
    in_f = (patches.transpose(0, 3, 4, 1, 2)
                   .reshape(bs * hp * wp, 4, fov * fov))       # (N, 4, 49)
    in_f = jnp.log(in_f + 1.0)
    mean_f = in_f.mean(2, keepdims=True)                       # (N, 4, 1)
    mean = (mean_f[:, 0] + mean_f[:, 3]) * 0.5                 # (N, 1)
    in_f = in_f - mean[:, None, :]
    in_f = jnp.exp(in_f) - 1.0
    x = in_f.reshape(bs * hp * wp, 4, fov, fov)

    dn = ('NCHW', 'OIHW', 'NCHW')

    def conv(v, wgt, b):
        y = lax.conv_general_dilated(v, wgt, (1, 1), 'VALID', dimension_numbers=dn)
        return y + b[None, :, None, None]

    def leaky(v):
        return jnp.where(v >= 0.0, v, LEAK * v)

    x = leaky(conv(x, params['w1'], params['b1']))             # (N, 16, 5, 5)
    x = leaky(conv(x, params['w2'], params['b2']))             # (N, 16, 3, 3)
    x = jnp.repeat(jnp.repeat(x, 2, axis=2), 2, axis=3)        # nearest Upsample x2
    x = leaky(conv(x, params['w3'], params['b3']))             # (N, 32, 4, 4)
    x = conv(x, params['w4'], params['b4'])                    # (N, 3, 2, 2)

    out = jnp.log(jnp.maximum(x, -0.5) + 1.0)
    out = out.reshape(bs * hp * wp, 3, 4) + mean[:, None, :]
    out = jnp.exp(out) - 1.0
    out = out.reshape(bs, hp, wp, 3, 2, 2).transpose(0, 3, 1, 4, 2, 5)
    return out.reshape(bs, 3, 2 * hp, 2 * wp)


# ----------------------------------------------------------------------------------
# Deterministic parameter init (PyTorch Conv2d default: U(-1/sqrt(fan_in), 1/sqrt(fan_in))).
# ----------------------------------------------------------------------------------
def init_params(key):
    ks = jax.random.split(key, 8)

    def u(k, shape, fan_in):
        b = 1.0 / np.sqrt(fan_in)
        return jax.random.uniform(k, shape, jnp.float32, -b, b)

    return {
        'w1': u(ks[0], (16, 4, 3, 3), 4 * 9),   'b1': u(ks[1], (16,), 4 * 9),
        'w2': u(ks[2], (16, 16, 3, 3), 16 * 9), 'b2': u(ks[3], (16,), 16 * 9),
        'w3': u(ks[4], (32, 16, 3, 3), 16 * 9), 'b3': u(ks[5], (32,), 16 * 9),
        'w4': u(ks[6], (3, 32, 3, 3), 32 * 9),  'b4': u(ks[7], (3,), 32 * 9),
    }


if __name__ == "__main__":
    key = jax.random.PRNGKey(0)
    k_in, k_par = jax.random.split(key)
    # samples['mosaic'] in NCHW with 3 bayer channels; gray mosaic = channel sum.
    mosaic = jax.random.uniform(k_in, (2, 3, 32, 32), jnp.float32, 0.0, 1.0)
    params = init_params(k_par)

    out = bayer_log_forward(mosaic, params)
    out = jax.block_until_ready(out)
    assert out.shape == (2, 3, 20, 20), out.shape

    ref = jax.block_until_ready(reference_forward(mosaic, params))
    np.testing.assert_allclose(np.asarray(out), np.asarray(ref), rtol=2e-3, atol=2e-3)
    print("KERNEL_OK")
</pallas_src>

<mosaic_0001>
module attributes {stable_mosaic.version = 11 : i64} {
  func.func @_kernel(%arg0: i32, %arg1: memref<196x256xf32, #tpu.memory_space<vmem>>, %arg2: memref<1x256xf32, #tpu.memory_space<vmem>>, %arg3: memref<400x196xf32, #tpu.memory_space<vmem>>, %arg4: memref<400x1xf32, #tpu.memory_space<vmem>>, %arg5: memref<144x400xf32, #tpu.memory_space<vmem>>, %arg6: memref<144x1xf32, #tpu.memory_space<vmem>>, %arg7: memref<512x144xf32, #tpu.memory_space<vmem>>, %arg8: memref<512x1xf32, #tpu.memory_space<vmem>>, %arg9: memref<12x512xf32, #tpu.memory_space<vmem>>, %arg10: memref<12x1xf32, #tpu.memory_space<vmem>>, %arg11: memref<12x256xf32, #tpu.memory_space<vmem>>) attributes {dimension_semantics = [#tpu.dimension_semantics<parallel>], iteration_bounds = array<i64: 1>, scalar_prefetch = 0 : i64, scratch_operands = 0 : i64, tpu.core_type = #tpu.core_type<tc>, window_params = [{transform_indices = @transform_0, window_bounds = array<i64: 196, 256>}, {transform_indices = @transform_1, window_bounds = array<i64: 1, 256>}, {pipeline_mode = #tpu.pipeline_mode<synchronous>, transform_indices = @transform_2, window_bounds = array<i64: 400, 196>}, {pipeline_mode = #tpu.pipeline_mode<synchronous>, transform_indices = @transform_3, window_bounds = array<i64: 400, 1>}, {pipeline_mode = #tpu.pipeline_mode<synchronous>, transform_indices = @transform_4, window_bounds = array<i64: 144, 400>}, {pipeline_mode = #tpu.pipeline_mode<synchronous>, transform_indices = @transform_5, window_bounds = array<i64: 144, 1>}, {pipeline_mode = #tpu.pipeline_mode<synchronous>, transform_indices = @transform_6, window_bounds = array<i64: 512, 144>}, {pipeline_mode = #tpu.pipeline_mode<synchronous>, transform_indices = @transform_7, window_bounds = array<i64: 512, 1>}, {pipeline_mode = #tpu.pipeline_mode<synchronous>, transform_indices = @transform_8, window_bounds = array<i64: 12, 512>}, {pipeline_mode = #tpu.pipeline_mode<synchronous>, transform_indices = @transform_9, window_bounds = array<i64: 12, 1>}, {transform_indices = @transform_10, window_bounds = array<i64: 12, 256>}]} {
    %c0 = arith.constant 0 : index
    %c0_0 = arith.constant 0 : index
    %0 = vector.load %arg2[%c0, %c0_0] : memref<1x256xf32, #tpu.memory_space<vmem>>, vector<1x256xf32>
    %cst = arith.constant 0.000000e+00 : f32
    %1 = vector.broadcast %cst : f32 to vector<1x256xf32>
    %2 = arith.subf %1, %0 : vector<1x256xf32>
    %3 = math.exp %2 : vector<1x256xf32>
    %4 = math.exp %0 : vector<1x256xf32>
    %c0_1 = arith.constant 0 : index
    %c0_2 = arith.constant 0 : index
    %5 = vector.load %arg1[%c0_1, %c0_2] : memref<196x256xf32, #tpu.memory_space<vmem>>, vector<196x256xf32>
    %cst_3 = arith.constant 1.000000e+00 : f32
    %6 = vector.broadcast %cst_3 : f32 to vector<196x256xf32>
    %7 = arith.addf %5, %6 : vector<196x256xf32>
    %8 = vector.broadcast %3 : vector<1x256xf32> to vector<196x256xf32>
    %9 = arith.mulf %7, %8 : vector<196x256xf32>
    %cst_4 = arith.constant 1.000000e+00 : f32
    %10 = vector.broadcast %cst_4 : f32 to vector<196x256xf32>
    %11 = arith.subf %9, %10 : vector<196x256xf32>
    %c0_5 = arith.constant 0 : index
    %c0_6 = arith.constant 0 : index
    %12 = vector.load %arg3[%c0_5, %c0_6] : memref<400x196xf32, #tpu.memory_space<vmem>>, vector<400x196xf32>
    %cst_7 = arith.constant dense<0.000000e+00> : vector<400x256xf32>
    %13 = tpu.matmul %12, %11, %cst_7 {dimension_numbers = #tpu.dot_dimension_numbers<[1], [0], [0], [1], [0, 0, 1, 1], [], []>} : vector<400x196xf32>, vector<196x256xf32>, vector<400x256xf32> -> vector<400x256xf32>
    %c0_8 = arith.constant 0 : index
    %c0_9 = arith.constant 0 : index
    %14 = vector.load %arg4[%c0_8, %c0_9] : memref<400x1xf32, #tpu.memory_space<vmem>>, vector<400x1xf32>
    %15 = vector.broadcast %14 : vector<400x1xf32> to vector<400x256xf32>
    %16 = arith.addf %13, %15 : vector<400x256xf32>
    %cst_10 = arith.constant 0.000000e+00 : f32
    %17 = vector.broadcast %cst_10 : f32 to vector<400x256xf32>
    %18 = arith.cmpf oge, %16, %17 : vector<400x256xf32>
    %cst_11 = arith.constant 0.00999999977 : f32
    %19 = vector.broadcast %cst_11 : f32 to vector<400x256xf32>
    %20 = arith.mulf %19, %16 : vector<400x256xf32>
    %21 = arith.select %18, %16, %20 : vector<400x256xi1>, vector<400x256xf32>
    %c0_12 = arith.constant 0 : index
    %c0_13 = arith.constant 0 : index
    %22 = vector.load %arg5[%c0_12, %c0_13] : memref<144x400xf32, #tpu.memory_space<vmem>>, vector<144x400xf32>
    %cst_14 = arith.constant dense<0.000000e+00> : vector<144x256xf32>
    %23 = tpu.matmul %22, %21, %cst_14 {dimension_numbers = #tpu.dot_dimension_numbers<[1], [0], [0], [1], [0, 0, 1, 1], [], []>} : vector<144x400xf32>, vector<400x256xf32>, vector<144x256xf32> -> vector<144x256xf32>
    %c0_15 = arith.constant 0 : index
    %c0_16 = arith.constant 0 : index
    %24 = vector.load %arg6[%c0_15, %c0_16] : memref<144x1xf32, #tpu.memory_space<vmem>>, vector<144x1xf32>
    %25 = vector.broadcast %24 : vector<144x1xf32> to vector<144x256xf32>
    %26 = arith.addf %23, %25 : vector<144x256xf32>
    %cst_17 = arith.constant 0.000000e+00 : f32
    %27 = vector.broadcast %cst_17 : f32 to vector<144x256xf32>
    %28 = arith.cmpf oge, %26, %27 : vector<144x256xf32>
    %cst_18 = arith.constant 0.00999999977 : f32
    %29 = vector.broadcast %cst_18 : f32 to vector<144x256xf32>
    %30 = arith.mulf %29, %26 : vector<144x256xf32>
    %31 = arith.select %28, %26, %30 : vector<144x256xi1>, vector<144x256xf32>
    %c0_19 = arith.constant 0 : index
    %c0_20 = arith.constant 0 : index
    %32 = vector.load %arg7[%c0_19, %c0_20] : memref<512x144xf32, #tpu.memory_space<vmem>>, vector<512x144xf32>
    %cst_21 = arith.constant dense<0.000000e+00> : vector<512x256xf32>
    %33 = tpu.matmul %32, %31, %cst_21 {dimension_numbers = #tpu.dot_dimension_numbers<[1], [0], [0], [1], [0, 0, 1, 1], [], []>} : vector<512x144xf32>, vector<144x256xf32>, vector<512x256xf32> -> vector<512x256xf32>
    %c0_22 = arith.constant 0 : index
    %c0_23 = arith.constant 0 : index
    %34 = vector.load %arg8[%c0_22, %c0_23] : memref<512x1xf32, #tpu.memory_space<vmem>>, vector<512x1xf32>
    %35 = vector.broadcast %34 : vector<512x1xf32> to vector<512x256xf32>
    %36 = arith.addf %33, %35 : vector<512x256xf32>
    %cst_24 = arith.constant 0.000000e+00 : f32
    %37 = vector.broadcast %cst_24 : f32 to vector<512x256xf32>
    %38 = arith.cmpf oge, %36, %37 : vector<512x256xf32>
    %cst_25 = arith.constant 0.00999999977 : f32
    %39 = vector.broadcast %cst_25 : f32 to vector<512x256xf32>
    %40 = arith.mulf %39, %36 : vector<512x256xf32>
    %41 = arith.select %38, %36, %40 : vector<512x256xi1>, vector<512x256xf32>
    %c0_26 = arith.constant 0 : index
    %c0_27 = arith.constant 0 : index
    %42 = vector.load %arg9[%c0_26, %c0_27] : memref<12x512xf32, #tpu.memory_space<vmem>>, vector<12x512xf32>
    %cst_28 = arith.constant dense<0.000000e+00> : vector<12x256xf32>
    %43 = tpu.matmul %42, %41, %cst_28 {dimension_numbers = #tpu.dot_dimension_numbers<[1], [0], [0], [1], [0, 0, 1, 1], [], []>} : vector<12x512xf32>, vector<512x256xf32>, vector<12x256xf32> -> vector<12x256xf32>
    %c0_29 = arith.constant 0 : index
    %c0_30 = arith.constant 0 : index
    %44 = vector.load %arg10[%c0_29, %c0_30] : memref<12x1xf32, #tpu.memory_space<vmem>>, vector<12x1xf32>
    %45 = vector.broadcast %44 : vector<12x1xf32> to vector<12x256xf32>
    %46 = arith.addf %43, %45 : vector<12x256xf32>
    %cst_31 = arith.constant -5.000000e-01 : f32
    %47 = vector.broadcast %cst_31 : f32 to vector<12x256xf32>
    %48 = arith.maximumf %46, %47 : vector<12x256xf32>
    %cst_32 = arith.constant 1.000000e+00 : f32
    %49 = vector.broadcast %cst_32 : f32 to vector<12x256xf32>
    %50 = arith.addf %48, %49 : vector<12x256xf32>
    %51 = vector.broadcast %4 : vector<1x256xf32> to vector<12x256xf32>
    %52 = arith.mulf %50, %51 : vector<12x256xf32>
    %cst_33 = arith.constant 1.000000e+00 : f32
    %53 = vector.broadcast %cst_33 : f32 to vector<12x256xf32>
    %54 = arith.subf %52, %53 : vector<12x256xf32>
    %c0_34 = arith.constant 0 : index
    %c0_35 = arith.constant 0 : index
    %55 = vector.load %arg11[%c0_34, %c0_35] : memref<12x256xf32, #tpu.memory_space<vmem>>, vector<12x256xf32>
    tpu.vector_store %arg11[%c0_34, %c0_35], %54 {strides = array<i32>} : memref<12x256xf32, #tpu.memory_space<vmem>>, vector<12x256xf32>,
    return
  }
  func.func @transform_0(%arg0: i32) -> (i32, i32) {
    %c0_i32 = arith.constant 0 : i32
    %c0_i32_0 = arith.constant 0 : i32
    return %c0_i32, %arg0 : i32, i32
  }
  func.func @transform_1(%arg0: i32) -> (i32, i32) {
    %c0_i32 = arith.constant 0 : i32
    %c0_i32_0 = arith.constant 0 : i32
    return %c0_i32, %arg0 : i32, i32
  }
  func.func @transform_2(%arg0: i32) -> (i32, i32) {
    %c0_i32 = arith.constant 0 : i32
    %c0_i32_0 = arith.constant 0 : i32
    %c0_i32_1 = arith.constant 0 : i32
    return %c0_i32, %c0_i32_0 : i32, i32
  }
  func.func @transform_3(%arg0: i32) -> (i32, i32) {
    %c0_i32 = arith.constant 0 : i32
    %c0_i32_0 = arith.constant 0 : i32
    %c0_i32_1 = arith.constant 0 : i32
    return %c0_i32, %c0_i32_0 : i32, i32
  }
  func.func @transform_4(%arg0: i32) -> (i32, i32) {
    %c0_i32 = arith.constant 0 : i32
    %c0_i32_0 = arith.constant 0 : i32
    %c0_i32_1 = arith.constant 0 : i32
    return %c0_i32, %c0_i32_0 : i32, i32
  }
  func.func @transform_5(%arg0: i32) -> (i32, i32) {
    %c0_i32 = arith.constant 0 : i32
    %c0_i32_0 = arith.constant 0 : i32
    %c0_i32_1 = arith.constant 0 : i32
    return %c0_i32, %c0_i32_0 : i32, i32
  }
  func.func @transform_6(%arg0: i32) -> (i32, i32) {
    %c0_i32 = arith.constant 0 : i32
    %c0_i32_0 = arith.constant 0 : i32
    %c0_i32_1 = arith.constant 0 : i32
    return %c0_i32, %c0_i32_0 : i32, i32
  }
  func.func @transform_7(%arg0: i32) -> (i32, i32) {
    %c0_i32 = arith.constant 0 : i32
    %c0_i32_0 = arith.constant 0 : i32
    %c0_i32_1 = arith.constant 0 : i32
    return %c0_i32, %c0_i32_0 : i32, i32
  }
  func.func @transform_8(%arg0: i32) -> (i32, i32) {
    %c0_i32 = arith.constant 0 : i32
    %c0_i32_0 = arith.constant 0 : i32
    %c0_i32_1 = arith.constant 0 : i32
    return %c0_i32, %c0_i32_0 : i32, i32
  }
  func.func @transform_9(%arg0: i32) -> (i32, i32) {
    %c0_i32 = arith.constant 0 : i32
    %c0_i32_0 = arith.constant 0 : i32
    %c0_i32_1 = arith.constant 0 : i32
    return %c0_i32, %c0_i32_0 : i32, i32
  }
  func.func @transform_10(%arg0: i32) -> (i32, i32) {
    %c0_i32 = arith.constant 0 : i32
    %c0_i32_0 = arith.constant 0 : i32
    return %c0_i32, %arg0 : i32, i32
  }
}

</mosaic_0001>

<bundles_post_ra>
// kernel: tpu_custom_call.1
= control target key start
LH: loop header
LB: loop body
LE: loop exit
PB: predicated region body
PF: predicated region fallthrough
CT: control target
= control target key end

     0   :  { %v4538_v2 = vmov 0   ;;  %v143_v7 = vlaneseq  ;;  %vm653_vm0 = vcmask 556032   ;;  %vm804_vm1 = vcmask 1043456   ;;  %s6785_s0 = inlined_call_operand.vmem [shape: f32[196,256], index: 0, kind: input, shape index: {}]   ;;  %s6786_s1 = inlined_call_operand.vmem [shape: f32[1,256], index: 1, kind: input, shape index: {}]   ;;  %s6787_s2 = inlined_call_operand.vmem [shape: f32[400,196], index: 2, kind: input, shape index: {}]   ;;  %s6788_s3 = inlined_call_operand.vmem [shape: f32[400,1], index: 3, kind: input, shape index: {}]   ;;  %s6789_s4 = inlined_call_operand.vmem [shape: f32[144,400], index: 4, kind: input, shape index: {}]   ;;  %s6790_s5 = inlined_call_operand.vmem [shape: f32[144,1], index: 5, kind: input, shape index: {}]   ;;  %s6791_s6 = inlined_call_operand.vmem [shape: f32[512,144], index: 6, kind: input, shape index: {}]   ;;  %s6792_s7 = inlined_call_operand.vmem [shape: f32[512,1], index: 7, kind: input, shape index: {}]   ;;  %s6793_s8 = inlined_call_operand.vmem [shape: f32[12,512], index: 8, kind: input, shape index: {}]   ;;  %s6794_s9 = inlined_call_operand.vmem [shape: f32[12,1], index: 9, kind: input, shape index: {}]   ;;  %s6795_s10 = inlined_call_operand.hbm [shape: f32[12,256], index: 10, kind: output, shape index: {}]  }
   0x1   :  { %v355_v0 = vld [vmem:[%s6788_s3 + $0x10] sm:$0xff]  ;;  %v353_v1 = vld [vmem:[%s6788_s3] sm:$0xff]  ;;  %4508 = vset.pattern.permute.xlu1 %v4538_v2  ;;  %4507 = vset.pattern.permute.xlu0 %v4538_v2  ;;  %v356_v3 = vld [vmem:[%s6788_s3 + $0x18] sm:$0xff] }
   0x2   :  { %415 = vperm.xlu1 %4508, %v355_v0   ;;  %405 = vperm.xlu0 %4507, %v353_v1   ;;  %v354_v4 = vld [vmem:[%s6788_s3 + $0x8] sm:$0xff]  ;;  %v36_v5 = vld [vmem:[%s6786_s1] sm:$0x3]  ;;  %v4618_v11 = vshrl.u32 %v143_v7, 7  ;;  %v360_v12 = vld [vmem:[%s6788_s3 + $0x38] sm:$0xff] }
   0x3   :  { %v37_v6 = vsub.f32 0.0, %v36_v5  ;;  %v358_v8 = vld [vmem:[%s6788_s3 + $0x28] sm:$0xff]  ;;  %v357_v9 = vld [vmem:[%s6788_s3 + $0x20] sm:$0xff]  ;;  %v359_v13 = vld [vmem:[%s6788_s3 + $0x30] sm:$0xff] }
   0x4   :  { %v43_v14 = vld [vmem:[%s6785_s0 + $0x8] sm:$0xff]  ;;  %v45_v15 = vld [vmem:[%s6785_s0 + $0x18] sm:$0xff]  ;;  %v42_v16 = vld [vmem:[%s6785_s0] sm:$0xff]  ;;  %v149_v22 = vsub.s32 1, %v4618_v11  ;;  %v145_v28 = vsub.s32 0, %v4618_v11 }
   0x5   :  { %v38_v10 = vmul.f32 1.442695, %v37_v6  ;;  %v362_v17 = vld [vmem:[%s6788_s3 + $0x48] sm:$0xff]  ;;  %v361_v18 = vld [vmem:[%s6788_s3 + $0x40] sm:$0xff]  ;;  %v44_v19 = vld [vmem:[%s6785_s0 + $0x10] sm:$0xff]  ;;  %v93_v26 = vadd.f32 1.0, %v43_v14 }
   0x6   :  { %420 = vperm.xlu1 %4508, %v356_v3   ;;  %410 = vperm.xlu0 %4507, %v354_v4   ;;  %v47_v20 = vld [vmem:[%s6785_s0 + $0x28] sm:$0xff]  ;;  %v49_v21 = vld [vmem:[%s6785_s0 + $0x38] sm:$0xff]  ;;  %v46_v23 = vld [vmem:[%s6785_s0 + $0x20] sm:$0xff]  ;;  %v95_v27 = vadd.f32 1.0, %v45_v15  ;;  %v92_v32 = vadd.f32 1.0, %v42_v16  ;;  %v94_v33 = vadd.f32 1.0, %v44_v19 }
   0x7   :  { %4509 = vpow2.f32 %v38_v10  ;;  %v48_v24 = vld [vmem:[%s6785_s0 + $0x30] sm:$0xff]  ;;  %v51_v25 = vld [vmem:[%s6785_s0 + $0x48] sm:$0xff]  ;;  %v53_v29 = vld [vmem:[%s6785_s0 + $0x58] sm:$0xff]  ;;  %v97_v34 = vadd.f32 1.0, %v47_v20  ;;  %v99_v39 = vadd.f32 1.0, %v49_v21  ;;  %v96_v40 = vadd.f32 1.0, %v46_v23 }
   0x8   :  { %v50_v30 = vld [vmem:[%s6785_s0 + $0x40] sm:$0xff]  ;;  %v52_v31 = vld [vmem:[%s6785_s0 + $0x50] sm:$0xff]  ;;  %v55_v35 = vld [vmem:[%s6785_s0 + $0x68] sm:$0xff]  ;;  %v98_v41 = vadd.f32 1.0, %v48_v24  ;;  %v101_v45 = vadd.f32 1.0, %v51_v25  ;;  %v103_v46 = vadd.f32 1.0, %v53_v29 }
   0x9   :  { %v57_v36 = vld [vmem:[%s6785_s0 + $0x78] sm:$0xff]  ;;  %v54_v37 = vld [vmem:[%s6785_s0 + $0x60] sm:$0xff]  ;;  %v56_v42 = vld [vmem:[%s6785_s0 + $0x70] sm:$0xff]  ;;  %v100_v47 = vadd.f32 1.0, %v50_v30  ;;  %v102_v53 = vadd.f32 1.0, %v52_v31  ;;  %v105_v54 = vadd.f32 1.0, %v55_v35 }
   0xa   :  { %430 = vperm.xlu1 %4508, %v358_v8   ;;  %425 = vperm.xlu0 %4507, %v357_v9   ;;  %v364_v38 = vld [vmem:[%s6788_s3 + $0x58] sm:$0xff]  ;;  %v59_v43 = vld [vmem:[%s6785_s0 + $0x88] sm:$0xff]  ;;  %v58_v48 = vld [vmem:[%s6785_s0 + $0x80] sm:$0xff]  ;;  %v107_v55 = vadd.f32 1.0, %v57_v36  ;;  %v104_v56 = vadd.f32 1.0, %v54_v37  ;;  %v106_v60 = vadd.f32 1.0, %v56_v42 }
   0xb   :  { %v61_v44 = vld [vmem:[%s6785_s0 + $0x98] sm:$0xff]  ;;  %v60_v49 = vld [vmem:[%s6785_s0 + $0x90] sm:$0xff]  ;;  %v63_v50 = vld [vmem:[%s6785_s0 + $0xa8] sm:$0xff]  ;;  %v109_v61 = vadd.f32 1.0, %v59_v43  ;;  %v4714_v63 = vadd.f32 1.0, %v58_v48 }
   0xc   :  { %v363_v52 = vld [vmem:[%s6788_s3 + $0x50] sm:$0xff]  ;;  %v65_v57 = vld [vmem:[%s6785_s0 + $0xb8] sm:$0xff]  ;;  %v111_v62 = vadd.f32 1.0, %v61_v44  ;;  %v4716_v0 = vadd.f32 1.0, %v60_v49  ;;  %v4718_v1 = vadd.f32 1.0, %v63_v50  ;;  %v366_v7 = vld [vmem:[%s6788_s3 + $0x68] sm:$0xff] }
   0xd   :  { %v4723_v5 = vadd.f32 1.0, %v65_v57  ;;  %v365_v8 = vld [vmem:[%s6788_s3 + $0x60] sm:$0xff]  ;;  %v368_v29 = vld [vmem:[%s6788_s3 + $0x78] sm:$0xff]  ;;  %v67_v43 = vld [vmem:[%s6785_s0 + $0xc8] sm:$0xff] }
   0xe   :  { %440 = vperm.xlu1 %4508, %v360_v12   ;;  %435 = vperm.xlu0 %4507, %v359_v13   ;;  %v62_v37 = vld [vmem:[%s6785_s0 + $0xa0] sm:$0xff]  ;;  %v254_v48 = vld [vmem:[%s6787_s2 + $0x8] sm:$0xff] }
   0xf   :  { %v386_v49 = vld [vmem:[%s6788_s3 + $0x108] sm:$0xff]  ;;  %3975 = vmatprep.mubr.msk.f32.mxu0 %vm653_vm0, %v254_v48  ;;  %v81_v48 = vld [vmem:[%s6785_s0 + $0x138] sm:$0xff] }
  0x11   :  { %v4510_v51 = vpop.eup %4509 }
  0x12   :  { %450 = vperm.xlu1 %4508, %v362_v17   ;;  %445 = vperm.xlu0 %4507, %v361_v18   ;;  %v4708_v58 = vrot.slane %v4510_v51, %v149_v22  ;;  %v4712_v59 = vrot.slane %v4510_v51, %v145_v28 }
  0x14   :  { %v154_v2 = vmul.f32 %v4708_v58, %v93_v26  ;;  %v156_v3 = vmul.f32 %v4708_v58, %v95_v27  ;;  %v153_v4 = vmul.f32 %v4712_v59, %v92_v32  ;;  %v155_v6 = vmul.f32 %v4712_v59, %v94_v33  ;;  %v367_v33 = vld [vmem:[%s6788_s3 + $0x70] sm:$0xff] }
  0x15   :  { %v158_v9 = vmul.f32 %v4708_v58, %v97_v34  ;;  %v160_v10 = vmul.f32 %v4708_v58, %v99_v39  ;;  %v157_v12 = vmul.f32 %v4712_v59, %v96_v40  ;;  %v159_v16 = vmul.f32 %v4712_v59, %v98_v41 }
  0x16   :  { %460 = vperm.xlu1 %4508, %v364_v38   ;;  %455 = vperm.xlu0 %4507, %v363_v52   ;;  %v3924_v13 = vadd.f32 -1.0, %v154_v2  ;;  %v3926_v14 = vadd.f32 -1.0, %v156_v3  ;;  %v3923_v15 = vadd.f32 -1.0, %v153_v4  ;;  %v3925_v17 = vadd.f32 -1.0, %v155_v6  ;;  %v64_v38 = vld [vmem:[%s6785_s0 + $0xb0] sm:$0xff] }
  0x17   :  { %v3928_v18 = vadd.f32 -1.0, %v158_v9  ;;  %v3930_v19 = vadd.f32 -1.0, %v160_v10  ;;  %v3927_v20 = vadd.f32 -1.0, %v157_v12  ;;  %v3929_v23 = vadd.f32 -1.0, %v159_v16  ;;  %v68_v2 = vld [vmem:[%s6785_s0 + $0xd0] sm:$0xff] }
  0x18   :  { %v4111_v21 = vpack.c.bf16 %v3926_v14, %v3924_v13  ;;  %v162_v24 = vmul.f32 %v4708_v58, %v101_v45  ;;  %v164_v25 = vmul.f32 %v4708_v58, %v103_v46  ;;  %v4113_v26 = vpack.c.bf16 %v3925_v17, %v3923_v15  ;;  %v369_v15 = vld [vmem:[%s6788_s3 + $0x80] sm:$0xff] }
  0x19   :  { %v4115_v27 = vpack.c.bf16 %v3930_v19, %v3928_v18  ;;  %v161_v30 = vmul.f32 %v4712_v59, %v100_v47  ;;  %v163_v31 = vmul.f32 %v4712_v59, %v102_v53  ;;  %v4117_v32 = vpack.c.bf16 %v3929_v23, %v3927_v20 }
  0x1a   :  { %470 = vperm.xlu1 %4508, %v366_v7   ;;  %465 = vperm.xlu0 %4507, %v365_v8   ;;  %v3932_v34 = vadd.f32 -1.0, %v162_v24  ;;  %v3934_v35 = vadd.f32 -1.0, %v164_v25  ;;  %v166_v36 = vmul.f32 %v4708_v58, %v105_v54  ;;  %v168_v41 = vmul.f32 %v4708_v58, %v107_v55  ;;  %v69_v54 = vld [vmem:[%s6785_s0 + $0xd8] sm:$0xff]  ;;  %v71_v8 = vld [vmem:[%s6785_s0 + $0xe8] sm:$0xff]  ;;  %v70_v24 = vld [vmem:[%s6785_s0 + $0xe0] sm:$0xff] }
  0x1b   :  { %4112 = vmatprep.subr.bf16.mxu0 %v4111_v21  ;;  %v3931_v39 = vadd.f32 -1.0, %v161_v30  ;;  %v3933_v40 = vadd.f32 -1.0, %v163_v31  ;;  %v165_v42 = vmul.f32 %v4712_v59, %v104_v56  ;;  %v167_v46 = vmul.f32 %v4712_v59, %v106_v60  ;;  %v385_v56 = vld [vmem:[%s6788_s3 + $0x100] sm:$0xff]  ;;  %v72_v25 = vld [vmem:[%s6785_s0 + $0xf0] sm:$0xff]  ;;  %v75_v31 = vld [vmem:[%s6785_s0 + $0x108] sm:$0xff] }
  0x1c   :  { %4114 = vmatpush1.bf16.msra.mxu0 %v4113_v26  ;;  %v4119_v44 = vpack.c.bf16 %v3934_v35, %v3932_v34  ;;  %v3936_v45 = vadd.f32 -1.0, %v166_v36  ;;  %v170_v47 = vmul.f32 %v4708_v58, %v109_v61  ;;  %v3938_v50 = vadd.f32 -1.0, %v168_v41  ;;  %v387_v34 = vld [vmem:[%s6788_s3 + $0x110] sm:$0xff]  ;;  %v74_v41 = vld [vmem:[%s6785_s0 + $0x100] sm:$0xff] }
  0x1d   :  { %4116 = vmatprep.subr.bf16.mxu0 %v4115_v27  ;;  %v172_v51 = vmul.f32 %v4708_v58, %v111_v62  ;;  %v112_v52 = vadd.f32 1.0, %v62_v37  ;;  %v114_v53 = vadd.f32 1.0, %v64_v38  ;;  %v4121_v55 = vpack.c.bf16 %v3933_v40, %v3931_v39  ;;  %v66_v62 = vld [vmem:[%s6785_s0 + $0xc0] sm:$0xff] }
  0x1e   :  { %480 = vperm.xlu1 %4508, %v368_v29   ;;  %475 = vperm.xlu0 %4507, %v367_v33   ;;  %v3935_v57 = vadd.f32 -1.0, %v165_v42  ;;  %v3937_v60 = vadd.f32 -1.0, %v167_v46  ;;  %v117_v61 = vadd.f32 1.0, %v67_v43  ;;  %v169_v3 = vmul.f32 %v4712_v59, %v4714_v63  ;;  %v370_v63 = vld [vmem:[%s6788_s3 + $0x88] sm:$0xff]  ;;  %v388_v33 = vld [vmem:[%s6788_s3 + $0x118] sm:$0xff]  ;;  %v76_v42 = vld [vmem:[%s6785_s0 + $0x110] sm:$0xff] }
  0x1f   :  { %v171_v4 = vmul.f32 %v4712_v59, %v4716_v0  ;;  %v174_v6 = vmul.f32 %v4708_v58, %v4718_v1  ;;  %v176_v7 = vmul.f32 %v4708_v58, %v4723_v5  ;;  %v4123_v9 = vpack.c.bf16 %v3938_v50, %v3936_v45  ;;  %v73_v5 = vld [vmem:[%s6785_s0 + $0xf8] sm:$0xff] }
  0x20   :  { %4118 = vmatpush1.bf16.msra.mxu0 %v4117_v32  ;;  %v3940_v10 = vadd.f32 -1.0, %v170_v47  ;;  %v3942_v12 = vadd.f32 -1.0, %v172_v51  ;;  %v119_v13 = vadd.f32 1.0, %v69_v54  ;;  %v116_v0 = vadd.f32 1.0, %v66_v62  ;;  %v77_v32 = vld [vmem:[%s6785_s0 + $0x118] sm:$0xff]  ;;  %v79_v47 = vld [vmem:[%s6785_s0 + $0x128] sm:$0xff] }
  0x21   :  { %4120 = vmatprep.subr.bf16.mxu0 %v4119_v44  ;;  %v118_v1 = vadd.f32 1.0, %v68_v2  ;;  %v4125_v14 = vpack.c.bf16 %v3937_v60, %v3935_v57  ;;  %v173_v16 = vmul.f32 %v4712_v59, %v112_v52  ;;  %v175_v17 = vmul.f32 %v4712_v59, %v114_v53  ;;  %v372_v53 = vld [vmem:[%s6788_s3 + $0x98] sm:$0xff] }
  0x22   :  { %570 = vperm.xlu1 %4508, %v386_v49   ;;  %565 = vperm.xlu0 %4507, %v385_v56   ;;  %v121_v18 = vadd.f32 1.0, %v71_v8  ;;  %v3939_v19 = vadd.f32 -1.0, %v169_v3  ;;  %v3941_v20 = vadd.f32 -1.0, %v171_v4  ;;  %v3944_v21 = vadd.f32 -1.0, %v174_v6  ;;  %v78_v8 = vld [vmem:[%s6785_s0 + $0x120] sm:$0xff] }
  0x23   :  { %v3946_v23 = vadd.f32 -1.0, %v176_v7  ;;  %v4127_v26 = vpack.c.bf16 %v3942_v12, %v3940_v10  ;;  %v178_v27 = vmul.f32 %v4708_v58, %v117_v61  ;;  %v180_v29 = vmul.f32 %v4708_v58, %v119_v13  ;;  %v371_v61 = vld [vmem:[%s6788_s3 + $0x90] sm:$0xff] }
  0x24   :  { %4122 = vmatpush1.bf16.msra.mxu0 %v4121_v55  ;;  %v123_v30 = vadd.f32 1.0, %v73_v5  ;;  %v177_v35 = vmul.f32 %v4712_v59, %v116_v0  ;;  %v179_v36 = vmul.f32 %v4712_v59, %v118_v1  ;;  %v3943_v37 = vadd.f32 -1.0, %v173_v16  ;;  %v390_v0 = vld [vmem:[%s6788_s3 + $0x128] sm:$0xff]  ;;  %v389_v16 = vld [vmem:[%s6788_s3 + $0x120] sm:$0xff] }
  0x25   :  { %4124 = vmatprep.subr.bf16.mxu0 %v4123_v9  ;;  %v3945_v38 = vadd.f32 -1.0, %v175_v17  ;;  %v120_v39 = vadd.f32 1.0, %v70_v24  ;;  %v122_v40 = vadd.f32 1.0, %v72_v25  ;;  %v4129_v43 = vpack.c.bf16 %v3941_v20, %v3939_v19  ;;  %v80_v9 = vld [vmem:[%s6785_s0 + $0x130] sm:$0xff] }
  0x26   :  { %490 = vperm.xlu1 %4508, %v370_v63   ;;  %485 = vperm.xlu0 %4507, %v369_v15   ;;  %v4131_v44 = vpack.c.bf16 %v3946_v23, %v3944_v21  ;;  %v125_v45 = vadd.f32 1.0, %v75_v31  ;;  %v127_v46 = vadd.f32 1.0, %v77_v32  ;;  %v3948_v49 = vadd.f32 -1.0, %v178_v27  ;;  %v85_v15 = vld [vmem:[%s6785_s0 + $0x158] sm:$0xff]  ;;  %v84_v31 = vld [vmem:[%s6785_s0 + $0x150] sm:$0xff]  ;;  %v374_v32 = vld [vmem:[%s6788_s3 + $0xa8] sm:$0xff] }
  0x27   :  { %v3950_v50 = vadd.f32 -1.0, %v180_v29  ;;  %v182_v51 = vmul.f32 %v4708_v58, %v121_v18  ;;  %v184_v52 = vmul.f32 %v4708_v58, %v123_v30  ;;  %v3947_v54 = vadd.f32 -1.0, %v177_v35  ;;  %v82_v30 = vld [vmem:[%s6785_s0 + $0x140] sm:$0xff]  ;;  %v87_v35 = vld [vmem:[%s6785_s0 + $0x168] sm:$0xff] }
  0x28   :  { %4126 = vmatpush1.bf16.msra.mxu0 %v4125_v14  ;;  %v3949_v55 = vadd.f32 -1.0, %v179_v36  ;;  %v124_v56 = vadd.f32 1.0, %v74_v41  ;;  %v126_v57 = vadd.f32 1.0, %v76_v42  ;;  %v4133_v60 = vpack.c.bf16 %v3945_v38, %v3943_v37  ;;  %v83_v14 = vld [vmem:[%s6785_s0 + $0x148] sm:$0xff]  ;;  %v89_v36 = vld [vmem:[%s6785_s0 + $0x178] sm:$0xff]  ;;  %v373_v37 = vld [vmem:[%s6788_s3 + $0xa0] sm:$0xff] }
  0x29   :  { %4128 = vmatprep.subr.bf16.mxu0 %v4127_v26  ;;  %v129_v62 = vadd.f32 1.0, %v79_v47  ;;  %v131_v2 = vadd.f32 1.0, %v81_v48  ;;  %v181_v3 = vmul.f32 %v4712_v59, %v120_v39  ;;  %v183_v4 = vmul.f32 %v4712_v59, %v122_v40 }
  0x2a   :  { %580 = vperm.xlu1 %4508, %v388_v33   ;;  %575 = vperm.xlu0 %4507, %v387_v34   ;;  %v186_v6 = vmul.f32 %v4708_v58, %v125_v45  ;;  %v188_v7 = vmul.f32 %v4708_v58, %v127_v46  ;;  %v4135_v10 = vpack.c.bf16 %v3950_v50, %v3948_v49  ;;  %v3952_v12 = vadd.f32 -1.0, %v182_v51  ;;  %v86_v50 = vld [vmem:[%s6785_s0 + $0x160] sm:$0xff]  ;;  %v88_v51 = vld [vmem:[%s6785_s0 + $0x170] sm:$0xff] }
  0x2b   :  { %v3954_v13 = vadd.f32 -1.0, %v184_v52  ;;  %v4137_v63 = vpack.c.bf16 %v3949_v55, %v3947_v54  ;;  %v185_v1 = vmul.f32 %v4712_v59, %v124_v56  ;;  %v187_v5 = vmul.f32 %v4712_v59, %v126_v57  ;;  %v392_v52 = vld [vmem:[%s6788_s3 + $0x138] sm:$0xff]  ;;  %v391_v54 = vld [vmem:[%s6788_s3 + $0x130] sm:$0xff] }
  0x2c   :  { %4130 = vmatpush1.bf16.msra.mxu0 %v4129_v43  ;;  %v190_v17 = vmul.f32 %v4708_v58, %v129_v62  ;;  %v192_v18 = vmul.f32 %v4708_v58, %v131_v2  ;;  %v128_v19 = vadd.f32 1.0, %v78_v8  ;;  %v130_v20 = vadd.f32 1.0, %v80_v9  ;;  %v376_v8 = vld [vmem:[%s6788_s3 + $0xb8] sm:$0xff]  ;;  %v91_v9 = vld [vmem:[%s6785_s0 + $0x188] sm:$0xf] }
  0x2d   :  { %4132 = vmatprep.subr.bf16.mxu0 %v4131_v44  ;;  %v3951_v21 = vadd.f32 -1.0, %v181_v3  ;;  %v3953_v23 = vadd.f32 -1.0, %v183_v4  ;;  %v3956_v24 = vadd.f32 -1.0, %v186_v6  ;;  %v3958_v25 = vadd.f32 -1.0, %v188_v7 }
  0x2e   :  { %500 = vperm.xlu1 %4508, %v372_v53   ;;  %495 = vperm.xlu0 %4507, %v371_v61   ;;  %v4139_v26 = vpack.c.bf16 %v3954_v13, %v3952_v12  ;;  %v133_v27 = vadd.f32 1.0, %v83_v14  ;;  %v135_v29 = vadd.f32 1.0, %v85_v15  ;;  %v3955_v33 = vadd.f32 -1.0, %v185_v1  ;;  %v375_v12 = vld [vmem:[%s6788_s3 + $0xb0] sm:$0xff] }
  0x2f   :  { %v3957_v34 = vadd.f32 -1.0, %v187_v5  ;;  %v3960_v38 = vadd.f32 -1.0, %v190_v17  ;;  %v3962_v39 = vadd.f32 -1.0, %v192_v18  ;;  %v189_v40 = vmul.f32 %v4712_v59, %v128_v19  ;;  %v90_v17 = vld [vmem:[%s6785_s0 + $0x180] sm:$0xf]  ;;  %v394_v18 = vld [vmem:[%s6788_s3 + $0x148] sm:$0xff] }
  0x30   :  { %4134 = vmatpush1.bf16.msra.mxu0 %v4133_v60  ;;  %v191_v41 = vmul.f32 %v4712_v59, %v130_v20  ;;  %v4141_v42 = vpack.c.bf16 %v3953_v23, %v3951_v21  ;;  %v4143_v43 = vpack.c.bf16 %v3958_v25, %v3956_v24  ;;  %v132_v44 = vadd.f32 1.0, %v82_v30  ;;  %v393_v19 = vld [vmem:[%s6788_s3 + $0x140] sm:$0xff] }
  0x31   :  { %4136 = vmatprep.subr.bf16.mxu0 %v4135_v10  ;;  %v134_v45 = vadd.f32 1.0, %v84_v31  ;;  %v194_v46 = vmul.f32 %v4708_v58, %v133_v27  ;;  %v196_v47 = vmul.f32 %v4708_v58, %v135_v29  ;;  %v137_v48 = vadd.f32 1.0, %v87_v35  ;;  %v378_v27 = vld [vmem:[%s6788_s3 + $0xc8] sm:$0xff]  ;;  %v377_v29 = vld [vmem:[%s6788_s3 + $0xc0] sm:$0xff] }
  0x32   :  { %590 = vperm.xlu1 %4508, %v390_v0   ;;  %585 = vperm.xlu0 %4507, %v389_v16   ;;  %v139_v49 = vadd.f32 1.0, %v89_v36  ;;  %v4145_v53 = vpack.c.bf16 %v3957_v34, %v3955_v33  ;;  %v4147_v55 = vpack.c.bf16 %v3962_v39, %v3960_v38  ;;  %v3959_v56 = vadd.f32 -1.0, %v189_v40  ;;  %v395_v33 = vld [vmem:[%s6788_s3 + $0x150] sm:$0xff] }
  0x33   :  { %v3961_v57 = vadd.f32 -1.0, %v191_v41  ;;  %v193_v60 = vmul.f32 %v4712_v59, %v132_v44  ;;  %v195_v61 = vmul.f32 %v4712_v59, %v134_v45  ;;  %v136_v62 = vadd.f32 1.0, %v86_v50 }
  0x34   :  { %4138 = vmatpush1.bf16.msra.mxu0 %v4137_v63  ;;  %v138_v2 = vadd.f32 1.0, %v88_v51  ;;  %v3964_v3 = vadd.f32 -1.0, %v194_v46  ;;  %v3966_v4 = vadd.f32 -1.0, %v196_v47  ;;  %v198_v6 = vmul.f32 %v4708_v58, %v137_v48 }
  0x35   :  { %4140 = vmatprep.subr.bf16.mxu0 %v4139_v26  ;;  %v200_v7 = vmul.f32 %v4708_v58, %v139_v49  ;;  %v4149_v10 = vpack.c.bf16 %v3961_v57, %v3959_v56  ;;  %v3963_v13 = vadd.f32 -1.0, %v193_v60  ;;  %v3965_v63 = vadd.f32 -1.0, %v195_v61 }
  0x36   :  { %510 = vperm.xlu1 %4508, %v374_v32   ;;  %505 = vperm.xlu0 %4507, %v373_v37   ;;  %v197_v0 = vmul.f32 %v4712_v59, %v136_v62  ;;  %v199_v1 = vmul.f32 %v4712_v59, %v138_v2  ;;  %v4151_v5 = vpack.c.bf16 %v3966_v4, %v3964_v3  ;;  %v3968_v14 = vadd.f32 -1.0, %v198_v6 }
  0x37   :  { %v3970_v15 = vadd.f32 -1.0, %v200_v7  ;;  %v141_v16 = vadd.f32 1.0, %v91_v9  ;;  %v4153_v20 = vpack.c.bf16 %v3965_v63, %v3963_v13  ;;  %v140_v24 = vadd.f32 1.0, %v90_v17 }
  0x38   :  { %4142 = vmatpush1.bf16.msra.mxu0 %v4141_v42  ;;  %v3967_v21 = vadd.f32 -1.0, %v197_v0  ;;  %v3969_v23 = vadd.f32 -1.0, %v199_v1 }
  0x39   :  { %4144 = vmatprep.subr.bf16.mxu0 %v4143_v43  ;;  %v4155_v25 = vpack.c.bf16 %v3970_v15, %v3968_v14  ;;  %v202_v26 = vmul.f32 %v4708_v58, %v141_v16  ;;  %v201_v31 = vmul.f32 %v4712_v59, %v140_v24  ;;  %v396_v58 = vld [vmem:[%s6788_s3 + $0x158] sm:$0xff] }
  0x3a   :  { %600 = vperm.xlu1 %4508, %v392_v52   ;;  %595 = vperm.xlu0 %4507, %v391_v54   ;;  %v4157_v30 = vpack.c.bf16 %v3969_v23, %v3967_v21 }
  0x3b   :  { %v3972_v32 = vadd.f32 -1.0, %v202_v26  ;;  %v3971_v34 = vadd.f32 -1.0, %v201_v31 }
  0x3c   :  { %4146 = vmatpush1.bf16.msra.mxu0 %v4145_v53 }
  0x3d   :  { %4148 = vmatprep.subr.bf16.mxu0 %v4147_v55 }
  0x3e   :  { %520 = vperm.xlu1 %4508, %v376_v8   ;;  %515 = vperm.xlu0 %4507, %v375_v12  }
  0x40   :  { %4150 = vmatpush1.bf16.msra.mxu0 %v4149_v10 }
  0x41   :  { %4152 = vmatprep.subr.bf16.mxu0 %v4151_v5 }
  0x42   :  { %610 = vperm.xlu1 %4508, %v394_v18   ;;  %605 = vperm.xlu0 %4507, %v393_v19  }
  0x44   :  { %4154 = vmatpush1.bf16.msra.mxu0 %v4153_v20 }
  0x45   :  { %4156 = vmatprep.subr.bf16.mxu0 %v4155_v25 }
  0x46   :  { %530 = vperm.xlu1 %4508, %v378_v27   ;;  %525 = vperm.xlu0 %4507, %v377_v29  }
  0x48   :  { %4158 = vmatpush1.bf16.msra.mxu0 %v4157_v30 }
  0x49   :  { %15 = vsyncpa [#allocation3], 0  ;;  %3973 = vmatprep.subr.msk.mxu0 %vm804_vm1, %v3972_v32  ;;  %v253_v59 = vld [vmem:[%s6787_s2] sm:$0xff]  ;;  %v380_v35 = vld [vmem:[%s6788_s3 + $0xd8] sm:$0xff] }
  0x4a   :  { %620 = vperm.xlu1 %4508, %v396_v58   ;;  %615 = vperm.xlu0 %4507, %v395_v33   ;;  %v256_v36 = vld [vmem:[%s6787_s2 + $0x18] sm:$0xff]  ;;  %v379_v37 = vld [vmem:[%s6788_s3 + $0xd0] sm:$0xff]  ;;  %v398_v39 = vld [vmem:[%s6788_s3 + $0x168] sm:$0xff] }
  0x4b   :  { %v255_v38 = vld [vmem:[%s6787_s2 + $0x10] sm:$0xff]  ;;  %v258_v40 = vld [vmem:[%s6787_s2 + $0x28] sm:$0xff]  ;;  %v397_v41 = vld [vmem:[%s6788_s3 + $0x160] sm:$0xff] }
  0x4c   :  { %3974 = vmatpush1.msk.msra.mxu0 %vm804_vm1, %v3971_v34  ;;  %v257_v42 = vld [vmem:[%s6787_s2 + $0x20] sm:$0xff]  ;;  %v382_v43 = vld [vmem:[%s6788_s3 + $0xe8] sm:$0xff]  ;;  %v260_v44 = vld [vmem:[%s6787_s2 + $0x38] sm:$0xff] }
  0x4d   :  { %876 = vmatmul.mubr.f32.vlgmr.msra.gmra.mrb[0].mxu0 %v253_v59  ;;  %v381_v45 = vld [vmem:[%s6788_s3 + $0xe0] sm:$0xff]  ;;  %v259_v46 = vld [vmem:[%s6787_s2 + $0x30] sm:$0xff]  ;;  %v400_v47 = vld [vmem:[%s6788_s3 + $0x178] sm:$0xff] }
  0x4e   :  { %540 = vperm.xlu1 %4508, %v380_v35   ;;  %3976 = vmatprep.mubr.msk.f32.mxu0 %vm653_vm0, %v256_v36  ;;  %v262_v48 = vld [vmem:[%s6787_s2 + $0x48] sm:$0xff]  ;;  %v399_v49 = vld [vmem:[%s6788_s3 + $0x170] sm:$0xff]  ;;  %v261_v50 = vld [vmem:[%s6787_s2 + $0x40] sm:$0xff] }
  0x4f   :  { %535 = vperm.xlu0 %4507, %v379_v37   ;;  %v384_v51 = vld [vmem:[%s6788_s3 + $0xf8] sm:$0xff]  ;;  %v383_v53 = vld [vmem:[%s6788_s3 + $0xf0] sm:$0xff]  ;;  %v402_v55 = vld [vmem:[%s6788_s3 + $0x188] sm:$0xff] }
  0x50   :  { %v264_v52 = vld [vmem:[%s6787_s2 + $0x58] sm:$0xff]  ;;  %v263_v54 = vld [vmem:[%s6787_s2 + $0x50] sm:$0xff]  ;;  %v266_v56 = vld [vmem:[%s6787_s2 + $0x68] sm:$0xff] }
  0x51   :  { %882 = vmatmul.mubr.f32.gmra.mrb[2].mxu0 %v255_v38  ;;  %v401_v57 = vld [vmem:[%s6788_s3 + $0x180] sm:$0xff]  ;;  %v1549_v61 = vld [vmem:[%s6790_s5 + $0x8] sm:$0xff]  ;;  %v268_v62 = vld [vmem:[%s6787_s2 + $0x78] sm:$0xff] }
  0x52   :  { %630 = vperm.xlu1 %4508, %v398_v39   ;;  %3977 = vmatprep.mubr.msk.f32.mxu0 %vm653_vm0, %v258_v40  ;;  %v265_v60 = vld [vmem:[%s6787_s2 + $0x60] sm:$0xff]  ;;  %v267_v3 = vld [vmem:[%s6787_s2 + $0x70] sm:$0xff]  ;;  %v1551_v4 = vld [vmem:[%s6790_s5 + $0x18] sm:$0xff] }
  0x53   :  { %625 = vperm.xlu0 %4507, %v397_v41   ;;  %v1548_v2 = vld [vmem:[%s6790_s5] sm:$0xff]  ;;  %v270_v6 = vld [vmem:[%s6787_s2 + $0x88] sm:$0xff]  ;;  %v1550_v7 = vld [vmem:[%s6790_s5 + $0x10] sm:$0xff] }
  0x54   :  { %v269_v8 = vld [vmem:[%s6787_s2 + $0x80] sm:$0xff]  ;;  %v1553_v9 = vld [vmem:[%s6790_s5 + $0x28] sm:$0xff]  ;;  %v272_v10 = vld [vmem:[%s6787_s2 + $0x98] sm:$0xff] }
  0x55   :  { %888 = vmatmul.mubr.f32.gmra.mrb[4].mxu0 %v257_v42  ;;  %v1552_v12 = vld [vmem:[%s6790_s5 + $0x20] sm:$0xff]  ;;  %v271_v13 = vld [vmem:[%s6787_s2 + $0x90] sm:$0xff]  ;;  %v1555_v63 = vld [vmem:[%s6790_s5 + $0x38] sm:$0xff] }
  0x56   :  { %550 = vperm.xlu1 %4508, %v382_v43   ;;  %3978 = vmatprep.mubr.msk.f32.mxu0 %vm653_vm0, %v260_v44  ;;  %v274_v0 = vld [vmem:[%s6787_s2 + $0xa8] sm:$0xff]  ;;  %v1554_v1 = vld [vmem:[%s6790_s5 + $0x30] sm:$0xff]  ;;  %v273_v5 = vld [vmem:[%s6787_s2 + $0xa0] sm:$0xff] }
  0x57   :  { %545 = vperm.xlu0 %4507, %v381_v45   ;;  %v1557_v14 = vld [vmem:[%s6790_s5 + $0x48] sm:$0xff]  ;;  %v276_v15 = vld [vmem:[%s6787_s2 + $0xb8] sm:$0xff]  ;;  %v1556_v16 = vld [vmem:[%s6790_s5 + $0x40] sm:$0xff] }
  0x58   :  { %v275_v17 = vld [vmem:[%s6787_s2 + $0xb0] sm:$0xff]  ;;  %v1559_v18 = vld [vmem:[%s6790_s5 + $0x58] sm:$0xff]  ;;  %v278_v19 = vld [vmem:[%s6787_s2 + $0xc8] sm:$0xff] }
  0x59   :  { %894 = vmatmul.mubr.f32.gmra.mrb[6].mxu0 %v259_v46  ;;  %v1558_v20 = vld [vmem:[%s6790_s5 + $0x50] sm:$0xff]  ;;  %v277_v21 = vld [vmem:[%s6787_s2 + $0xc0] sm:$0xff]  ;;  %v1561_v23 = vld [vmem:[%s6790_s5 + $0x68] sm:$0xff] }
  0x5a   :  { %640 = vperm.xlu1 %4508, %v400_v47   ;;  %3979 = vmatprep.mubr.msk.f32.mxu0 %vm653_vm0, %v262_v48  ;;  %v280_v24 = vld [vmem:[%s6787_s2 + $0xd8] sm:$0xff]  ;;  %v1560_v25 = vld [vmem:[%s6790_s5 + $0x60] sm:$0xff]  ;;  %v279_v26 = vld [vmem:[%s6787_s2 + $0xd0] sm:$0xff] }
  0x5b   :  { %635 = vperm.xlu0 %4507, %v399_v49   ;;  %v1563_v27 = vld [vmem:[%s6790_s5 + $0x78] sm:$0xff]  ;;  %v282_v29 = vld [vmem:[%s6787_s2 + $0xe8] sm:$0xff]  ;;  %v1562_v30 = vld [vmem:[%s6790_s5 + $0x70] sm:$0xff] }
  0x5c   :  { %v281_v31 = vld [vmem:[%s6787_s2 + $0xe0] sm:$0xff]  ;;  %v1565_v32 = vld [vmem:[%s6790_s5 + $0x88] sm:$0xff]  ;;  %v284_v58 = vld [vmem:[%s6787_s2 + $0xf8] sm:$0xff] }
  0x5d   :  { %900 = vmatmul.mubr.f32.gmra.mrb[8].mxu0 %v261_v50  ;;  %v1564_v33 = vld [vmem:[%s6790_s5 + $0x80] sm:$0xff]  ;;  %v283_v34 = vld [vmem:[%s6787_s2 + $0xf0] sm:$0xff]  ;;  %v2294_v59 = vld [vmem:[%s6792_s7 + $0x8] sm:$0xff] }
  0x5e   :  { %560 = vperm.xlu1 %4508, %v384_v51   ;;  %3980 = vmatprep.mubr.msk.f32.mxu0 %vm653_vm0, %v264_v52  ;;  %v286_v35 = vld [vmem:[%s6787_s2 + $0x108] sm:$0xff]  ;;  %v2293_v36 = vld [vmem:[%s6792_s7] sm:$0xff]  ;;  %v288_v39 = vld [vmem:[%s6787_s2 + $0x118] sm:$0xff] }
  0x5f   :  { %555 = vperm.xlu0 %4507, %v383_v53   ;;  %v285_v37 = vld [vmem:[%s6787_s2 + $0x100] sm:$0xff]  ;;  %v2326_v38 = vld [vmem:[%s6792_s7 + $0x108] sm:$0xff]  ;;  %v287_v41 = vld [vmem:[%s6787_s2 + $0x110] sm:$0xff] }
  0x60   :  { %v2325_v40 = vld [vmem:[%s6792_s7 + $0x100] sm:$0xff]  ;;  %v2296_v42 = vld [vmem:[%s6792_s7 + $0x18] sm:$0xff]  ;;  %v290_v43 = vld [vmem:[%s6787_s2 + $0x128] sm:$0xff] }
  0x61   :  { %906 = vmatmul.mubr.f32.gmra.mrb[10].mxu0 %v263_v54  ;;  %v2295_v44 = vld [vmem:[%s6792_s7 + $0x10] sm:$0xff]  ;;  %v289_v45 = vld [vmem:[%s6787_s2 + $0x120] sm:$0xff]  ;;  %v2328_v46 = vld [vmem:[%s6792_s7 + $0x118] sm:$0xff] }
  0x62   :  { %650 = vperm.xlu1 %4508, %v402_v55   ;;  %3981 = vmatprep.mubr.msk.f32.mxu0 %vm653_vm0, %v266_v56  ;;  %v292_v47 = vld [vmem:[%s6787_s2 + $0x138] sm:$0xff]  ;;  %v2327_v48 = vld [vmem:[%s6792_s7 + $0x110] sm:$0xff]  ;;  %v2298_v50 = vld [vmem:[%s6792_s7 + $0x28] sm:$0xff] }
  0x63   :  { %645 = vperm.xlu0 %4507, %v401_v57   ;;  %v291_v49 = vld [vmem:[%s6787_s2 + $0x130] sm:$0xff]  ;;  %v294_v51 = vld [vmem:[%s6787_s2 + $0x148] sm:$0xff]  ;;  %v2297_v52 = vld [vmem:[%s6792_s7 + $0x20] sm:$0xff] }
  0x64   :  { %v293_v53 = vld [vmem:[%s6787_s2 + $0x140] sm:$0xff]  ;;  %v2330_v54 = vld [vmem:[%s6792_s7 + $0x128] sm:$0xff]  ;;  %v296_v55 = vld [vmem:[%s6787_s2 + $0x158] sm:$0xff] }
  0x65   :  { %912 = vmatmul.mubr.f32.gmra.mrb[12].mxu0 %v265_v60  ;;  %v2329_v56 = vld [vmem:[%s6792_s7 + $0x120] sm:$0xff]  ;;  %v295_v57 = vld [vmem:[%s6787_s2 + $0x150] sm:$0xff]  ;;  %v2300_v60 = vld [vmem:[%s6792_s7 + $0x38] sm:$0xff] }
  0x66   :  { %1573 = vperm.xlu1 %4508, %v1549_v61   ;;  %3982 = vmatprep.mubr.msk.f32.mxu0 %vm653_vm0, %v268_v62  ;;  %v298_v61 = vld [vmem:[%s6787_s2 + $0x168] sm:$0xff]  ;;  %v2299_v62 = vld [vmem:[%s6792_s7 + $0x30] sm:$0xff] }
  0x67   :  { %1568 = vperm.xlu0 %4507, %v1548_v2   ;;  %v297_v2 = vld [vmem:[%s6787_s2 + $0x160] sm:$0xff] }
  0x69   :  { %918 = vmatmul.mubr.f32.gmra.mrb[14].mxu0 %v267_v3  ;;  %v2332_v3 = vld [vmem:[%s6792_s7 + $0x138] sm:$0xff] }
  0x6a   :  { %1583 = vperm.xlu1 %4508, %v1551_v4   ;;  %3983 = vmatprep.mubr.msk.f32.mxu0 %vm653_vm0, %v270_v6  ;;  %v300_v6 = vld [vmem:[%s6787_s2 + $0x178] sm:$0xff] }
  0x6b   :  { %1578 = vperm.xlu0 %4507, %v1550_v7   ;;  %v2331_v7 = vld [vmem:[%s6792_s7 + $0x130] sm:$0xff] }
  0x6d   :  { %924 = vmatmul.mubr.f32.gmra.mrb[16].mxu0 %v269_v8 }
  0x6e   :  { %1593 = vperm.xlu1 %4508, %v1553_v9   ;;  %3984 = vmatprep.mubr.msk.f32.mxu0 %vm653_vm0, %v272_v10  ;;  %v299_v9 = vld [vmem:[%s6787_s2 + $0x170] sm:$0xff]  ;;  %v2302_v10 = vld [vmem:[%s6792_s7 + $0x48] sm:$0xff] }
  0x6f   :  { %1588 = vperm.xlu0 %4507, %v1552_v12   ;;  %v302_v12 = vld [vmem:[%s6787_s2 + $0x188] sm:$0xff] }
  0x71   :  { %930 = vmatmul.mubr.f32.gmra.mrb[18].mxu0 %v271_v13  ;;  %v2301_v13 = vld [vmem:[%s6792_s7 + $0x40] sm:$0xff] }
  0x72   :  { %1603 = vperm.xlu1 %4508, %v1555_v63   ;;  %3985 = vmatprep.mubr.msk.f32.mxu0 %vm653_vm0, %v274_v0 }
  0x73   :  { %1598 = vperm.xlu0 %4507, %v1554_v1   ;;  %v301_v1 = vld [vmem:[%s6787_s2 + $0x180] sm:$0xff] }
  0x75   :  { %936 = vmatmul.mubr.f32.gmra.mrb[20].mxu0 %v273_v5  ;;  %v2334_v5 = vld [vmem:[%s6792_s7 + $0x148] sm:$0xff] }
  0x76   :  { %1613 = vperm.xlu1 %4508, %v1557_v14   ;;  %3986 = vmatprep.mubr.msk.f32.mxu0 %vm653_vm0, %v276_v15  ;;  %v304_v14 = vld [vmem:[%s6787_s2 + $0x198] sm:$0xff]  ;;  %v2333_v15 = vld [vmem:[%s6792_s7 + $0x140] sm:$0xff] }
  0x77   :  { %1608 = vperm.xlu0 %4507, %v1556_v16   ;;  %v303_v16 = vld [vmem:[%s6787_s2 + $0x190] sm:$0xff] }
  0x79   :  { %942 = vmatmul.mubr.f32.gmra.mrb[22].mxu0 %v275_v17  ;;  %v2304_v17 = vld [vmem:[%s6792_s7 + $0x58] sm:$0xff] }
  0x7a   :  { %1623 = vperm.xlu1 %4508, %v1559_v18   ;;  %3987 = vmatprep.mubr.msk.f32.mxu0 %vm653_vm0, %v278_v19  ;;  %v306_v19 = vld [vmem:[%s6787_s2 + $0x1a8] sm:$0xff] }
  0x7b   :  { %1618 = vperm.xlu0 %4507, %v1558_v20   ;;  %v2303_v20 = vld [vmem:[%s6792_s7 + $0x50] sm:$0xff] }
  0x7d   :  { %948 = vmatmul.mubr.f32.gmra.mrb[24].mxu0 %v277_v21 }
  0x7e   :  { %1633 = vperm.xlu1 %4508, %v1561_v23   ;;  %3988 = vmatprep.mubr.msk.f32.mxu0 %vm653_vm0, %v280_v24  ;;  %v305_v23 = vld [vmem:[%s6787_s2 + $0x1a0] sm:$0xff]  ;;  %v2336_v24 = vld [vmem:[%s6792_s7 + $0x158] sm:$0xff] }
  0x7f   :  { %1628 = vperm.xlu0 %4507, %v1560_v25   ;;  %v308_v25 = vld [vmem:[%s6787_s2 + $0x1b8] sm:$0xff] }
  0x81   :  { %954 = vmatmul.mubr.f32.gmra.mrb[26].mxu0 %v279_v26  ;;  %v5234_v4 = vpop.permute.xlu1 %415  ;;  %v5242_v8 = vpop.permute.xlu0 %405  ;;  %v2335_v26 = vld [vmem:[%s6792_s7 + $0x150] sm:$0xff] }
  0x82   :  { %1643 = vperm.xlu1 %4508, %v1563_v27   ;;  %3989 = vmatprep.mubr.msk.f32.mxu0 %vm653_vm0, %v282_v29 }
  0x83   :  { %1638 = vperm.xlu0 %4507, %v1562_v30   ;;  %v307_v30 = vld [vmem:[%s6787_s2 + $0x1b0] sm:$0xff] }
  0x85   :  { %960 = vmatmul.mubr.f32.gmra.mrb[28].mxu0 %v281_v31  ;;  %v5257_v63 = vpop.permute.xlu1 %420  ;;  %v5259_v0 = vpop.permute.xlu0 %410  ;;  %v2306_v31 = vld [vmem:[%s6792_s7 + $0x68] sm:$0xff] }
  0x86   :  { %1653 = vperm.xlu1 %4508, %v1565_v32   ;;  %3990 = vmatprep.mubr.msk.f32.mxu0 %vm653_vm0, %v284_v58  ;;  %v310_v32 = vld [vmem:[%s6787_s2 + $0x1c8] sm:$0xff]  ;;  %v2305_v58 = vld [vmem:[%s6792_s7 + $0x60] sm:$0xff] }
  0x87   :  { %1648 = vperm.xlu0 %4507, %v1564_v33   ;;  %v309_v33 = vld [vmem:[%s6787_s2 + $0x1c0] sm:$0xff] }
  0x89   :  { %966 = vmatmul.mubr.f32.gmra.mrb[30].mxu0 %v283_v34  ;;  %v5281_v18 = vpop.permute.xlu1 %430  ;;  %v5289_v21 = vpop.permute.xlu0 %425  ;;  %v2338_v34 = vld [vmem:[%s6792_s7 + $0x168] sm:$0xff] }
  0x8a   :  { %2364 = vperm.xlu1 %4508, %v2294_v59   ;;  %3991 = vmatprep.mubr.msk.f32.mxu0 %vm653_vm0, %v286_v35  ;;  %v312_v35 = vld [vmem:[%s6787_s2 + $0x1d8] sm:$0xff] }
  0x8b   :  { %2359 = vperm.xlu0 %4507, %v2293_v36   ;;  %v2337_v36 = vld [vmem:[%s6792_s7 + $0x160] sm:$0xff] }
  0x8d   :  { %972 = vmatmul.mubr.f32.gmra.mrb[32].mxu0 %v285_v37  ;;  %v5304_v27 = vpop.permute.xlu1 %440  ;;  %v5306_v29 = vpop.permute.xlu0 %435 }
  0x8e   :  { %2524 = vperm.xlu1 %4508, %v2326_v38   ;;  %3992 = vmatprep.mubr.msk.f32.mxu0 %vm653_vm0, %v288_v39  ;;  %v311_v38 = vld [vmem:[%s6787_s2 + $0x1d0] sm:$0xff]  ;;  %v2308_v39 = vld [vmem:[%s6792_s7 + $0x78] sm:$0xff] }
  0x8f   :  { %2519 = vperm.xlu0 %4507, %v2325_v40   ;;  %v314_v40 = vld [vmem:[%s6787_s2 + $0x1e8] sm:$0xff] }
  0x91   :  { %978 = vmatmul.mubr.f32.gmra.mrb[34].mxu0 %v287_v41  ;;  %v5328_v59 = vpop.permute.xlu1 %450  ;;  %v5336_v37 = vpop.permute.xlu0 %445  ;;  %v2307_v41 = vld [vmem:[%s6792_s7 + $0x70] sm:$0xff] }
  0x92   :  { %2374 = vperm.xlu1 %4508, %v2296_v42   ;;  %3993 = vmatprep.mubr.msk.f32.mxu0 %vm653_vm0, %v290_v43 }
  0x93   :  { %2369 = vperm.xlu0 %4507, %v2295_v44   ;;  %v313_v44 = vld [vmem:[%s6787_s2 + $0x1e0] sm:$0xff] }
  0x95   :  { %984 = vmatmul.mubr.f32.gmra.mrb[36].mxu0 %v289_v45  ;;  %v5351_v42 = vpop.permute.xlu1 %460  ;;  %v5353_v43 = vpop.permute.xlu0 %455  ;;  %v2340_v45 = vld [vmem:[%s6792_s7 + $0x178] sm:$0xff] }
  0x96   :  { %2534 = vperm.xlu1 %4508, %v2328_v46   ;;  %3994 = vmatprep.mubr.msk.f32.mxu0 %vm653_vm0, %v292_v47  ;;  %v316_v46 = vld [vmem:[%s6787_s2 + $0x1f8] sm:$0xff]  ;;  %v2339_v47 = vld [vmem:[%s6792_s7 + $0x170] sm:$0xff] }
  0x97   :  { %2529 = vperm.xlu0 %4507, %v2327_v48   ;;  %v315_v48 = vld [vmem:[%s6787_s2 + $0x1f0] sm:$0xff] }
  0x99   :  { %990 = vmatmul.mubr.f32.gmra.mrb[38].mxu0 %v291_v49  ;;  %v2310_v49 = vld [vmem:[%s6792_s7 + $0x88] sm:$0xff] }
  0x9a   :  { %2384 = vperm.xlu1 %4508, %v2298_v50   ;;  %3995 = vmatprep.mubr.msk.f32.mxu0 %vm653_vm0, %v294_v51  ;;  %v5375_v50 = vpop.permute.xlu1 %470  ;;  %v318_v51 = vld [vmem:[%s6787_s2 + $0x208] sm:$0xff] }
  0x9b   :  { %2379 = vperm.xlu0 %4507, %v2297_v52   ;;  %v2309_v52 = vld [vmem:[%s6792_s7 + $0x80] sm:$0xff] }
  0x9d   :  { %996 = vmatmul.mubr.f32.gmra.mrb[40].mxu0 %v293_v53  ;;  %v5383_v53 = vpop.permute.xlu0 %465 }
  0x9e   :  { %2544 = vperm.xlu1 %4508, %v2330_v54   ;;  %3996 = vmatprep.mubr.msk.f32.mxu0 %vm653_vm0, %v296_v55  ;;  %v317_v54 = vld [vmem:[%s6787_s2 + $0x200] sm:$0xff]  ;;  %v2342_v55 = vld [vmem:[%s6792_s7 + $0x188] sm:$0xff] }
  0x9f   :  { %2539 = vperm.xlu0 %4507, %v2329_v56   ;;  %v320_v56 = vld [vmem:[%s6787_s2 + $0x218] sm:$0xff] }
  0xa1   :  { %1002 = vmatmul.mubr.f32.gmra.mrb[42].mxu0 %v295_v57  ;;  %v2341_v57 = vld [vmem:[%s6792_s7 + $0x180] sm:$0xff] }
  0xa2   :  { %2394 = vperm.xlu1 %4508, %v2300_v60   ;;  %3997 = vmatprep.mubr.msk.f32.mxu0 %vm653_vm0, %v298_v61  ;;  %v5398_v60 = vpop.permute.xlu1 %480  ;;  %v5400_v61 = vpop.permute.xlu0 %475 }
  0xa3   :  { %2389 = vperm.xlu0 %4507, %v2299_v62   ;;  %v319_v62 = vld [vmem:[%s6787_s2 + $0x210] sm:$0xff] }
  0xa5   :  { %1008 = vmatmul.mubr.f32.gmra.mrb[44].mxu0 %v297_v2  ;;  %v2312_v2 = vld [vmem:[%s6792_s7 + $0x98] sm:$0xff] }
  0xa6   :  { %2554 = vperm.xlu1 %4508, %v2332_v3   ;;  %3998 = vmatprep.mubr.msk.f32.mxu0 %vm653_vm0, %v300_v6  ;;  %v322_v3 = vld [vmem:[%s6787_s2 + $0x228] sm:$0xff]  ;;  %v2311_v6 = vld [vmem:[%s6792_s7 + $0x90] sm:$0xff] }
  0xa7   :  { %2549 = vperm.xlu0 %4507, %v2331_v7   ;;  %v321_v7 = vld [vmem:[%s6787_s2 + $0x220] sm:$0xff] }
  0xa9   :  { %1014 = vmatmul.mubr.f32.gmra.mrb[46].mxu0 %v299_v9  ;;  %v2344_v9 = vld [vmem:[%s6792_s7 + $0x198] sm:$0xff] }
  0xaa   :  { %2404 = vperm.xlu1 %4508, %v2302_v10   ;;  %3999 = vmatprep.mubr.msk.f32.mxu0 %vm653_vm0, %v302_v12  ;;  %v5422_v10 = vpop.permute.xlu1 %570  ;;  %v324_v12 = vld [vmem:[%s6787_s2 + $0x238] sm:$0xff] }
  0xab   :  { %2399 = vperm.xlu0 %4507, %v2301_v13   ;;  %v2343_v13 = vld [vmem:[%s6792_s7 + $0x190] sm:$0xff] }
  0xad   :  { %1020 = vmatmul.mubr.f32.gmra.mrb[48].mxu0 %v301_v1  ;;  %v5430_v1 = vpop.permute.xlu0 %565 }
  0xae   :  { %2564 = vperm.xlu1 %4508, %v2334_v5   ;;  %4000 = vmatprep.mubr.msk.f32.mxu0 %vm653_vm0, %v304_v14  ;;  %v323_v5 = vld [vmem:[%s6787_s2 + $0x230] sm:$0xff]  ;;  %v2314_v14 = vld [vmem:[%s6792_s7 + $0xa8] sm:$0xff] }
  0xaf   :  { %2559 = vperm.xlu0 %4507, %v2333_v15   ;;  %v326_v15 = vld [vmem:[%s6787_s2 + $0x248] sm:$0xff] }
  0xb1   :  { %1026 = vmatmul.mubr.f32.gmra.mrb[50].mxu0 %v303_v16  ;;  %v2313_v16 = vld [vmem:[%s6792_s7 + $0xa0] sm:$0xff] }
  0xb2   :  { %2414 = vperm.xlu1 %4508, %v2304_v17   ;;  %4001 = vmatprep.mubr.msk.f32.mxu0 %vm653_vm0, %v306_v19  ;;  %v5445_v17 = vpop.permute.xlu1 %490  ;;  %v5447_v19 = vpop.permute.xlu0 %485 }
  0xb3   :  { %2409 = vperm.xlu0 %4507, %v2303_v20   ;;  %v325_v20 = vld [vmem:[%s6787_s2 + $0x240] sm:$0xff] }
  0xb5   :  { %1032 = vmatmul.mubr.f32.gmra.mrb[52].mxu0 %v305_v23  ;;  %v2346_v23 = vld [vmem:[%s6792_s7 + $0x1a8] sm:$0xff] }
  0xb6   :  { %2574 = vperm.xlu1 %4508, %v2336_v24   ;;  %4002 = vmatprep.mubr.msk.f32.mxu0 %vm653_vm0, %v308_v25  ;;  %v328_v24 = vld [vmem:[%s6787_s2 + $0x258] sm:$0xff]  ;;  %v2345_v25 = vld [vmem:[%s6792_s7 + $0x1a0] sm:$0xff] }
  0xb7   :  { %2569 = vperm.xlu0 %4507, %v2335_v26   ;;  %v327_v26 = vld [vmem:[%s6787_s2 + $0x250] sm:$0xff] }
  0xb9   :  { %1038 = vmatmul.mubr.f32.gmra.mrb[54].mxu0 %v307_v30  ;;  %v2316_v30 = vld [vmem:[%s6792_s7 + $0xb8] sm:$0xff] }
  0xba   :  { %2424 = vperm.xlu1 %4508, %v2306_v31   ;;  %4003 = vmatprep.mubr.msk.f32.mxu0 %vm653_vm0, %v310_v32  ;;  %v5469_v31 = vpop.permute.xlu1 %580  ;;  %v330_v32 = vld [vmem:[%s6787_s2 + $0x268] sm:$0xff] }
  0xbb   :  { %2419 = vperm.xlu0 %4507, %v2305_v58   ;;  %v2315_v58 = vld [vmem:[%s6792_s7 + $0xb0] sm:$0xff] }
  0xbd   :  { %1044 = vmatmul.mubr.f32.gmra.mrb[56].mxu0 %v309_v33  ;;  %v5477_v33 = vpop.permute.xlu0 %575 }
  0xbe   :  { %2584 = vperm.xlu1 %4508, %v2338_v34   ;;  %4004 = vmatprep.mubr.msk.f32.mxu0 %vm653_vm0, %v312_v35  ;;  %v329_v34 = vld [vmem:[%s6787_s2 + $0x260] sm:$0xff]  ;;  %v2348_v35 = vld [vmem:[%s6792_s7 + $0x1b8] sm:$0xff] }
  0xbf   :  { %2579 = vperm.xlu0 %4507, %v2337_v36   ;;  %v332_v36 = vld [vmem:[%s6787_s2 + $0x278] sm:$0xff] }
  0xc1   :  { %1050 = vmatmul.mubr.f32.gmra.mrb[58].mxu0 %v311_v38  ;;  %v2347_v38 = vld [vmem:[%s6792_s7 + $0x1b0] sm:$0xff] }
  0xc2   :  { %2434 = vperm.xlu1 %4508, %v2308_v39   ;;  %4005 = vmatprep.mubr.msk.f32.mxu0 %vm653_vm0, %v314_v40  ;;  %v5492_v39 = vpop.permute.xlu1 %500  ;;  %v5494_v40 = vpop.permute.xlu0 %495 }
  0xc3   :  { %2429 = vperm.xlu0 %4507, %v2307_v41   ;;  %v331_v41 = vld [vmem:[%s6787_s2 + $0x270] sm:$0xff] }
  0xc5   :  { %1056 = vmatmul.mubr.f32.gmra.mrb[60].mxu0 %v313_v44  ;;  %v2318_v44 = vld [vmem:[%s6792_s7 + $0xc8] sm:$0xff] }
  0xc6   :  { %2594 = vperm.xlu1 %4508, %v2340_v45   ;;  %4006 = vmatprep.mubr.msk.f32.mxu0 %vm653_vm0, %v316_v46  ;;  %v334_v45 = vld [vmem:[%s6787_s2 + $0x288] sm:$0xff]  ;;  %v2317_v46 = vld [vmem:[%s6792_s7 + $0xc0] sm:$0xff] }
  0xc7   :  { %2589 = vperm.xlu0 %4507, %v2339_v47   ;;  %v333_v47 = vld [vmem:[%s6787_s2 + $0x280] sm:$0xff] }
  0xc9   :  { %1062 = vmatmul.mubr.f32.gmra.mrb[62].mxu0 %v315_v48  ;;  %v2350_v48 = vld [vmem:[%s6792_s7 + $0x1c8] sm:$0xff] }
  0xca   :  { %2444 = vperm.xlu1 %4508, %v2310_v49   ;;  %4007 = vmatprep.mubr.msk.f32.mxu0 %vm653_vm0, %v318_v51  ;;  %v5516_v49 = vpop.permute.xlu1 %590  ;;  %v336_v51 = vld [vmem:[%s6787_s2 + $0x298] sm:$0xff] }
  0xcb   :  { %2439 = vperm.xlu0 %4507, %v2309_v52   ;;  %v2349_v52 = vld [vmem:[%s6792_s7 + $0x1c0] sm:$0xff] }
  0xcd   :  { %1068 = vmatmul.mubr.f32.gmra.mrb[64].mxu0 %v317_v54  ;;  %v5524_v54 = vpop.permute.xlu0 %585 }
  0xce   :  { %2604 = vperm.xlu1 %4508, %v2342_v55   ;;  %4008 = vmatprep.mubr.msk.f32.mxu0 %vm653_vm0, %v320_v56  ;;  %v335_v55 = vld [vmem:[%s6787_s2 + $0x290] sm:$0xff]  ;;  %v2320_v56 = vld [vmem:[%s6792_s7 + $0xd8] sm:$0xff] }
  0xcf   :  { %2599 = vperm.xlu0 %4507, %v2341_v57   ;;  %v338_v57 = vld [vmem:[%s6787_s2 + $0x2a8] sm:$0xff] }
  0xd1   :  { %1074 = vmatmul.mubr.f32.gmra.mrb[66].mxu0 %v319_v62  ;;  %v2319_v62 = vld [vmem:[%s6792_s7 + $0xd0] sm:$0xff] }
  0xd2   :  { %2454 = vperm.xlu1 %4508, %v2312_v2   ;;  %4009 = vmatprep.mubr.msk.f32.mxu0 %vm653_vm0, %v322_v3  ;;  %v5539_v2 = vpop.permute.xlu1 %510  ;;  %v5541_v3 = vpop.permute.xlu0 %505 }
  0xd3   :  { %2449 = vperm.xlu0 %4507, %v2311_v6   ;;  %v337_v6 = vld [vmem:[%s6787_s2 + $0x2a0] sm:$0xff] }
  0xd5   :  { %1080 = vmatmul.mubr.f32.gmra.mrb[68].mxu0 %v321_v7  ;;  %v2352_v7 = vld [vmem:[%s6792_s7 + $0x1d8] sm:$0xff] }
  0xd6   :  { %2614 = vperm.xlu1 %4508, %v2344_v9   ;;  %4010 = vmatprep.mubr.msk.f32.mxu0 %vm653_vm0, %v324_v12  ;;  %v340_v9 = vld [vmem:[%s6787_s2 + $0x2b8] sm:$0xff]  ;;  %v2351_v12 = vld [vmem:[%s6792_s7 + $0x1d0] sm:$0xff] }
  0xd7   :  { %2609 = vperm.xlu0 %4507, %v2343_v13   ;;  %v339_v13 = vld [vmem:[%s6787_s2 + $0x2b0] sm:$0xff] }
  0xd9   :  { %1086 = vmatmul.mubr.f32.gmra.mrb[70].mxu0 %v323_v5  ;;  %v2322_v5 = vld [vmem:[%s6792_s7 + $0xe8] sm:$0xff] }
  0xda   :  { %2464 = vperm.xlu1 %4508, %v2314_v14   ;;  %4011 = vmatprep.mubr.msk.f32.mxu0 %vm653_vm0, %v326_v15  ;;  %v5563_v14 = vpop.permute.xlu1 %600  ;;  %v342_v15 = vld [vmem:[%s6787_s2 + $0x2c8] sm:$0xff] }
  0xdb   :  { %2459 = vperm.xlu0 %4507, %v2313_v16   ;;  %v2321_v16 = vld [vmem:[%s6792_s7 + $0xe0] sm:$0xff] }
  0xdd   :  { %1092 = vmatmul.mubr.f32.gmra.mrb[72].mxu0 %v325_v20  ;;  %v5571_v20 = vpop.permute.xlu0 %595 }
  0xde   :  { %2624 = vperm.xlu1 %4508, %v2346_v23   ;;  %4012 = vmatprep.mubr.msk.f32.mxu0 %vm653_vm0, %v328_v24  ;;  %v341_v23 = vld [vmem:[%s6787_s2 + $0x2c0] sm:$0xff]  ;;  %v2354_v24 = vld [vmem:[%s6792_s7 + $0x1e8] sm:$0xff] }
  0xdf   :  { %2619 = vperm.xlu0 %4507, %v2345_v25   ;;  %v344_v25 = vld [vmem:[%s6787_s2 + $0x2d8] sm:$0xff] }
  0xe1   :  { %1098 = vmatmul.mubr.f32.gmra.mrb[74].mxu0 %v327_v26  ;;  %v2353_v26 = vld [vmem:[%s6792_s7 + $0x1e0] sm:$0xff] }
  0xe2   :  { %2474 = vperm.xlu1 %4508, %v2316_v30   ;;  %4013 = vmatprep.mubr.msk.f32.mxu0 %vm653_vm0, %v330_v32  ;;  %v5586_v30 = vpop.permute.xlu1 %520  ;;  %v5588_v32 = vpop.permute.xlu0 %515 }
  0xe3   :  { %2469 = vperm.xlu0 %4507, %v2315_v58   ;;  %v343_v58 = vld [vmem:[%s6787_s2 + $0x2d0] sm:$0xff] }
  0xe5   :  { %1104 = vmatmul.mubr.f32.gmra.mrb[76].mxu0 %v329_v34  ;;  %v2324_v34 = vld [vmem:[%s6792_s7 + $0xf8] sm:$0xff] }
  0xe6   :  { %2634 = vperm.xlu1 %4508, %v2348_v35   ;;  %4014 = vmatprep.mubr.msk.f32.mxu0 %vm653_vm0, %v332_v36  ;;  %v346_v35 = vld [vmem:[%s6787_s2 + $0x2e8] sm:$0xff]  ;;  %v2323_v36 = vld [vmem:[%s6792_s7 + $0xf0] sm:$0xff] }
  0xe7   :  { %2629 = vperm.xlu0 %4507, %v2347_v38   ;;  %v345_v38 = vld [vmem:[%s6787_s2 + $0x2e0] sm:$0xff] }
  0xe9   :  { %1110 = vmatmul.mubr.f32.gmra.mrb[78].mxu0 %v331_v41  ;;  %v2356_v41 = vld [vmem:[%s6792_s7 + $0x1f8] sm:$0xff] }
  0xea   :  { %2484 = vperm.xlu1 %4508, %v2318_v44   ;;  %4015 = vmatprep.mubr.msk.f32.mxu0 %vm653_vm0, %v334_v45  ;;  %v5610_v44 = vpop.permute.xlu1 %610  ;;  %v348_v45 = vld [vmem:[%s6787_s2 + $0x2f8] sm:$0xff] }
  0xeb   :  { %2479 = vperm.xlu0 %4507, %v2317_v46   ;;  %v2355_v46 = vld [vmem:[%s6792_s7 + $0x1f0] sm:$0xff] }
  0xed   :  { %1116 = vmatmul.mubr.f32.gmra.mrb[80].mxu0 %v333_v47  ;;  %v5618_v47 = vpop.permute.xlu0 %605 }
  0xee   :  { %2644 = vperm.xlu1 %4508, %v2350_v48   ;;  %4016 = vmatprep.mubr.msk.f32.mxu0 %vm653_vm0, %v336_v51  ;;  %v347_v48 = vld [vmem:[%s6787_s2 + $0x2f0] sm:$0xff]  ;;  %v3711_v51 = vld [vmem:[%s6794_s9 + $0x8] sm:$0xf] }
  0xef   :  { %2639 = vperm.xlu0 %4507, %v2349_v52   ;;  %v350_v52 = vld [vmem:[%s6787_s2 + $0x308] sm:$0xff] }
  0xf1   :  { %1122 = vmatmul.mubr.f32.gmra.mrb[82].mxu0 %v335_v55  ;;  %v3710_v55 = vld [vmem:[%s6794_s9] sm:$0xff] }
  0xf2   :  { %2494 = vperm.xlu1 %4508, %v2320_v56   ;;  %4017 = vmatprep.mubr.msk.f32.mxu0 %vm653_vm0, %v338_v57  ;;  %v5633_v56 = vpop.permute.xlu1 %530  ;;  %v5635_v57 = vpop.permute.xlu0 %525 }
  0xf3   :  { %2489 = vperm.xlu0 %4507, %v2319_v62   ;;  %v349_v62 = vld [vmem:[%s6787_s2 + $0x300] sm:$0xff] }
  0xf5   :  { %1128 = vmatmul.mubr.f32.gmra.mrb[84].mxu0 %v337_v6  ;;  %v352_v6 = vld [vmem:[%s6787_s2 + $0x318] sm:$0xff] }
  0xf6   :  { %2654 = vperm.xlu1 %4508, %v2352_v7   ;;  %4018 = vmatprep.mubr.msk.f32.mxu0 %vm653_vm0, %v340_v9  ;;  %v351_v7 = vld [vmem:[%s6787_s2 + $0x310] sm:$0xff] }
  0xf7   :  { %2649 = vperm.xlu0 %4507, %v2351_v12  }
  0xf9   :  { %1134 = vmatmul.mubr.f32.gmra.mrb[86].mxu0 %v339_v13 }
  0xfa   :  { %2504 = vperm.xlu1 %4508, %v2322_v5   ;;  %4019 = vmatprep.mubr.msk.f32.mxu0 %vm653_vm0, %v342_v15 }
  0xfb   :  { %2499 = vperm.xlu0 %4507, %v2321_v16  }
  0xfd   :  { %1140 = vmatmul.mubr.f32.gmra.mrb[88].mxu0 %v341_v23 }
  0xfe   :  { %2664 = vperm.xlu1 %4508, %v2354_v24   ;;  %4020 = vmatprep.mubr.msk.f32.mxu0 %vm653_vm0, %v344_v25 }
  0xff   :  { %2659 = vperm.xlu0 %4507, %v2353_v26  }
 0x101   :  { %1146 = vmatmul.mubr.f32.gmra.mrb[90].mxu0 %v343_v58 }
 0x102   :  { %2514 = vperm.xlu1 %4508, %v2324_v34   ;;  %4021 = vmatprep.mubr.msk.f32.mxu0 %vm653_vm0, %v346_v35  ;;  %v1477_v34 = vld [vmem:[%s6789_s4 + $0x8] sm:$0xff] }
 0x103   :  { %2509 = vperm.xlu0 %4507, %v2323_v36  }
 0x105   :  { %1152 = vmatmul.mubr.f32.gmra.mrb[92].mxu0 %v345_v38 }
 0x106   :  { %2674 = vperm.xlu1 %4508, %v2356_v41   ;;  %4022 = vmatprep.mubr.msk.f32.mxu0 %vm653_vm0, %v348_v45 }
 0x107   :  { %2669 = vperm.xlu0 %4507, %v2355_v46  }
 0x109   :  { %1158 = vmatmul.mubr.f32.gmra.mrb[94].mxu0 %v347_v48 }
 0x10a   :  { %3719 = vperm.xlu1 %4508, %v3711_v51   ;;  %4023 = vmatprep.mubr.msk.f32.mxu0 %vm653_vm0, %v350_v52 }
 0x10b   :  { %3714 = vperm.xlu0 %4507, %v3710_v55  }
 0x10d   :  { %1164 = vmatmul.mubr.f32.gmra.mrb[96].mxu0 %v349_v62 }
 0x10e   :  { %4024 = vmatprep.mubr.msk.f32.mxu0 %vm653_vm0, %v352_v6 }
 0x111   :  { %1170 = vmatmul.mubr.f32.gmra.mrb[98].mxu0 %v351_v7 }
 0x112   :  { %1775 = vmatprep.mubr.f32.mxu0 %v1477_v34 }
 0x120   :  { %v877_v9 = vpop.f32.mrb[0].mxu0 }
 0x121   :  { %v878_v12 = vadd.f32 %v877_v9, %v5242_v8  ;;  %v879_v13 = vpop.f32.mrb[1].mxu0 }
 0x122   :  { %v880_v5 = vadd.f32 %v879_v13, %v5242_v8 }
 0x123   :  { %v1276_v16 = vmul.f32 0.01, %v878_v12  ;;  %vm1176_vm2 = vcmp.ge.f32.partialorder %v878_v12, 0.0 }
 0x124   :  { %v883_v15 = vpop.f32.mrb[2].mxu0  ;;  %v1277_v25 = vmul.f32 0.01, %v880_v5  ;;  %vm1177_vm3 = vcmp.ge.f32.partialorder %v880_v5, 0.0 }
 0x125   :  { %v884_v23 = vadd.f32 %v883_v15, %v5259_v0  ;;  %v885_v24 = vpop.f32.mrb[3].mxu0  ;;  %v1376_v8 = vsel %vm1176_vm2, %v878_v12, %v1276_v16 }
 0x126   :  { %v886_v26 = vadd.f32 %v885_v24, %v5259_v0  ;;  %v1377_v0 = vsel %vm1177_vm3, %v880_v5, %v1277_v25 }
 0x127   :  { %vm1178_vm4 = vcmp.ge.f32.partialorder %v884_v23, 0.0  ;;  %v1278_v58 = vmul.f32 0.01, %v884_v23 }
 0x128   :  { %vm1179_vm5 = vcmp.ge.f32.partialorder %v886_v26, 0.0  ;;  %v1279_v35 = vmul.f32 0.01, %v886_v26  ;;  %v889_v36 = vpop.f32.mrb[4].mxu0 }
 0x129   :  { %v1378_v38 = vsel %vm1178_vm4, %v884_v23, %v1278_v58  ;;  %v890_v41 = vadd.f32 %v889_v36, %v5234_v4  ;;  %v891_v45 = vpop.f32.mrb[5].mxu0 }
 0x12a   :  { %v4161_v46 = vpack.c.bf16 %v1378_v38, %v1376_v8  ;;  %v892_v48 = vadd.f32 %v891_v45, %v5234_v4  ;;  %v1379_v51 = vsel %vm1179_vm5, %v886_v26, %v1279_v35 }
 0x12b   :  { %v4159_v52 = vpack.c.bf16 %v1379_v51, %v1377_v0  ;;  %v1280_v62 = vmul.f32 0.01, %v890_v41  ;;  %vm1180_vm6 = vcmp.ge.f32.partialorder %v890_v41, 0.0 }
 0x12c   :  { %v895_v55 = vpop.f32.mrb[6].mxu0  ;;  %v1281_v9 = vmul.f32 0.01, %v892_v48  ;;  %vm1181_vm7 = vcmp.ge.f32.partialorder %v892_v48, 0.0 }
 0x12d   :  { %v896_v6 = vadd.f32 %v895_v55, %v5257_v63  ;;  %v897_v7 = vpop.f32.mrb[7].mxu0  ;;  %4160 = vmatprep.subr.bf16.mxu0 %v4159_v52  ;;  %v1380_v5 = vsel %vm1180_vm6, %v890_v41, %v1280_v62 }
 0x12e   :  { %v898_v12 = vadd.f32 %v897_v7, %v5257_v63  ;;  %4162 = vmatpush1.bf16.msra.mxu0 %v4161_v46  ;;  %v1381_v58 = vsel %vm1181_vm7, %v892_v48, %v1281_v9 }
 0x12f   :  { %vm1182_vm8 = vcmp.ge.f32.partialorder %v896_v6, 0.0  ;;  %v1282_v13 = vmul.f32 0.01, %v896_v6 }
 0x130   :  { %vm1183_vm9 = vcmp.ge.f32.partialorder %v898_v12, 0.0  ;;  %v1283_v15 = vmul.f32 0.01, %v898_v12  ;;  %v901_v4 = vpop.f32.mrb[8].mxu0 }
 0x131   :  { %v1382_v16 = vsel %vm1182_vm8, %v896_v6, %v1282_v13  ;;  %v902_v23 = vadd.f32 %v901_v4, %v5289_v21  ;;  %v903_v24 = vpop.f32.mrb[9].mxu0 }
 0x132   :  { %v4165_v25 = vpack.c.bf16 %v1382_v16, %v1380_v5  ;;  %v904_v26 = vadd.f32 %v903_v24, %v5289_v21  ;;  %v1383_v34 = vsel %vm1183_vm9, %v898_v12, %v1283_v15 }
 0x133   :  { %v4163_v35 = vpack.c.bf16 %v1383_v34, %v1381_v58  ;;  %v1284_v63 = vmul.f32 0.01, %v902_v23  ;;  %vm1184_vm10 = vcmp.ge.f32.partialorder %v902_v23, 0.0 }
 0x134   :  { %v907_v36 = vpop.f32.mrb[10].mxu0  ;;  %v1285_v45 = vmul.f32 0.01, %v904_v26  ;;  %vm1185_vm11 = vcmp.ge.f32.partialorder %v904_v26, 0.0 }
 0x135   :  { %v908_v8 = vadd.f32 %v907_v36, %v5281_v18  ;;  %v909_v38 = vpop.f32.mrb[11].mxu0  ;;  %4164 = vmatprep.subr.bf16.mxu0 %v4163_v35  ;;  %v1384_v48 = vsel %vm1184_vm10, %v902_v23, %v1284_v63 }
 0x136   :  { %v910_v41 = vadd.f32 %v909_v38, %v5281_v18  ;;  %4166 = vmatpush1.bf16.msra.mxu0 %v4165_v25  ;;  %v1385_v7 = vsel %vm1185_vm11, %v904_v26, %v1285_v45 }
 0x137   :  { %vm1186_vm12 = vcmp.ge.f32.partialorder %v908_v8, 0.0  ;;  %v1286_v46 = vmul.f32 0.01, %v908_v8 }
 0x138   :  { %vm1187_vm13 = vcmp.ge.f32.partialorder %v910_v41, 0.0  ;;  %v1287_v0 = vmul.f32 0.01, %v910_v41  ;;  %v913_v21 = vpop.f32.mrb[12].mxu0 }
 0x139   :  { %v1386_v51 = vsel %vm1186_vm12, %v908_v8, %v1286_v46  ;;  %v914_v52 = vadd.f32 %v913_v21, %v5306_v29  ;;  %v915_v55 = vpop.f32.mrb[13].mxu0 }
 0x13a   :  { %v4169_v62 = vpack.c.bf16 %v1386_v51, %v1384_v48  ;;  %v916_v6 = vadd.f32 %v915_v55, %v5306_v29  ;;  %v1387_v9 = vsel %vm1187_vm13, %v910_v41, %v1287_v0 }
 0x13b   :  { %v4167_v12 = vpack.c.bf16 %v1387_v9, %v1385_v7  ;;  %v1288_v18 = vmul.f32 0.01, %v914_v52  ;;  %vm1188_vm14 = vcmp.ge.f32.partialorder %v914_v52, 0.0 }
 0x13c   :  { %v919_v13 = vpop.f32.mrb[14].mxu0  ;;  %v1289_v5 = vmul.f32 0.01, %v916_v6  ;;  %vm1189_vm15 = vcmp.ge.f32.partialorder %v916_v6, 0.0 }
 0x13d   :  { %v920_v15 = vadd.f32 %v919_v13, %v5304_v27  ;;  %v921_v4 = vpop.f32.mrb[15].mxu0  ;;  %4168 = vmatprep.subr.bf16.mxu0 %v4167_v12  ;;  %v1388_v25 = vsel %vm1188_vm14, %v914_v52, %v1288_v18 }
 0x13e   :  { %v922_v16 = vadd.f32 %v921_v4, %v5304_v27  ;;  %4170 = vmatpush1.bf16.msra.mxu0 %v4169_v62  ;;  %v1389_v63 = vsel %vm1189_vm15, %v916_v6, %v1289_v5 }
 0x13f   :  { %vm1190_vm0 = vcmp.ge.f32.partialorder %v920_v15, 0.0  ;;  %v1290_v23 = vmul.f32 0.01, %v920_v15 }
 0x140   :  { %vm1191_vm1 = vcmp.ge.f32.partialorder %v922_v16, 0.0  ;;  %v1291_v24 = vmul.f32 0.01, %v922_v16  ;;  %v925_v29 = vpop.f32.mrb[16].mxu0 }
 0x141   :  { %v1390_v26 = vsel %vm1190_vm0, %v920_v15, %v1290_v23  ;;  %v926_v58 = vadd.f32 %v925_v29, %v5336_v37  ;;  %v927_v34 = vpop.f32.mrb[17].mxu0 }
 0x142   :  { %v4173_v35 = vpack.c.bf16 %v1390_v26, %v1388_v25  ;;  %v928_v36 = vadd.f32 %v927_v34, %v5336_v37  ;;  %v1391_v8 = vsel %vm1191_vm1, %v922_v16, %v1291_v24 }
 0x143   :  { %v4171_v38 = vpack.c.bf16 %v1391_v8, %v1389_v63  ;;  %v1292_v27 = vmul.f32 0.01, %v926_v58  ;;  %vm1192_vm2 = vcmp.ge.f32.partialorder %v926_v58, 0.0 }
 0x144   :  { %v931_v45 = vpop.f32.mrb[18].mxu0  ;;  %v1293_v0 = vmul.f32 0.01, %v928_v36  ;;  %vm1193_vm3 = vcmp.ge.f32.partialorder %v928_v36, 0.0 }
 0x145   :  { %v932_v41 = vadd.f32 %v931_v45, %v5328_v59  ;;  %v933_v46 = vpop.f32.mrb[19].mxu0  ;;  %4172 = vmatprep.subr.bf16.mxu0 %v4171_v38  ;;  %v1392_v52 = vsel %vm1192_vm2, %v926_v58, %v1292_v27 }
 0x146   :  { %v934_v21 = vadd.f32 %v933_v46, %v5328_v59  ;;  %4174 = vmatpush1.bf16.msra.mxu0 %v4173_v35  ;;  %v1393_v12 = vsel %vm1193_vm3, %v928_v36, %v1293_v0 }
 0x147   :  { %vm1194_vm4 = vcmp.ge.f32.partialorder %v932_v41, 0.0  ;;  %v1294_v48 = vmul.f32 0.01, %v932_v41 }
 0x148   :  { %vm1195_vm5 = vcmp.ge.f32.partialorder %v934_v21, 0.0  ;;  %v1295_v51 = vmul.f32 0.01, %v934_v21  ;;  %v937_v37 = vpop.f32.mrb[20].mxu0 }
 0x149   :  { %v1394_v55 = vsel %vm1194_vm4, %v932_v41, %v1294_v48  ;;  %v938_v62 = vadd.f32 %v937_v37, %v5353_v43  ;;  %v939_v6 = vpop.f32.mrb[21].mxu0 }
 0x14a   :  { %v4177_v7 = vpack.c.bf16 %v1394_v55, %v1392_v52  ;;  %v940_v9 = vadd.f32 %v939_v6, %v5353_v43  ;;  %v1395_v13 = vsel %vm1195_vm5, %v934_v21, %v1295_v51 }
 0x14b   :  { %v4175_v18 = vpack.c.bf16 %v1395_v13, %v1393_v12  ;;  %v1296_v59 = vmul.f32 0.01, %v938_v62  ;;  %vm1196_vm6 = vcmp.ge.f32.partialorder %v938_v62, 0.0 }
 0x14c   :  { %v943_v15 = vpop.f32.mrb[22].mxu0  ;;  %v1297_v16 = vmul.f32 0.01, %v940_v9  ;;  %vm1197_vm7 = vcmp.ge.f32.partialorder %v940_v9, 0.0 }
 0x14d   :  { %v944_v4 = vadd.f32 %v943_v15, %v5351_v42  ;;  %v945_v5 = vpop.f32.mrb[23].mxu0  ;;  %4176 = vmatprep.subr.bf16.mxu0 %v4175_v18  ;;  %v1396_v25 = vsel %vm1196_vm6, %v938_v62, %v1296_v59 }
 0x14e   :  { %v946_v23 = vadd.f32 %v945_v5, %v5351_v42  ;;  %4178 = vmatpush1.bf16.msra.mxu0 %v4177_v7  ;;  %v1397_v63 = vsel %vm1197_vm7, %v940_v9, %v1297_v16  ;;  %vm1656_vm7 = vcmask 130048  }
 0x14f   :  { %vm1198_vm8 = vcmp.ge.f32.partialorder %v944_v4, 0.0  ;;  %v1298_v24 = vmul.f32 0.01, %v944_v4 }
 0x150   :  { %vm1199_vm9 = vcmp.ge.f32.partialorder %v946_v23, 0.0  ;;  %v1299_v29 = vmul.f32 0.01, %v946_v23  ;;  %v949_v43 = vpop.f32.mrb[24].mxu0 }
 0x151   :  { %v1398_v26 = vsel %vm1198_vm8, %v944_v4, %v1298_v24  ;;  %v950_v58 = vadd.f32 %v949_v43, %v5383_v53  ;;  %v951_v34 = vpop.f32.mrb[25].mxu0 }
 0x152   :  { %v4181_v35 = vpack.c.bf16 %v1398_v26, %v1396_v25  ;;  %v952_v36 = vadd.f32 %v951_v34, %v5383_v53  ;;  %v1399_v8 = vsel %vm1199_vm9, %v946_v23, %v1299_v29 }
 0x153   :  { %v4179_v38 = vpack.c.bf16 %v1399_v8, %v1397_v63  ;;  %v1300_v42 = vmul.f32 0.01, %v950_v58  ;;  %vm1200_vm10 = vcmp.ge.f32.partialorder %v950_v58, 0.0 }
 0x154   :  { %v955_v45 = vpop.f32.mrb[26].mxu0  ;;  %v1301_v46 = vmul.f32 0.01, %v952_v36  ;;  %vm1201_vm11 = vcmp.ge.f32.partialorder %v952_v36, 0.0 }
 0x155   :  { %v956_v27 = vadd.f32 %v955_v45, %v5375_v50  ;;  %v957_v41 = vpop.f32.mrb[27].mxu0  ;;  %4180 = vmatprep.subr.bf16.mxu0 %v4179_v38  ;;  %v1400_v51 = vsel %vm1200_vm10, %v950_v58, %v1300_v42 }
 0x156   :  { %v958_v0 = vadd.f32 %v957_v41, %v5375_v50  ;;  %4182 = vmatpush1.bf16.msra.mxu0 %v4181_v35  ;;  %v1401_v7 = vsel %vm1201_vm11, %v952_v36, %v1301_v46 }
 0x157   :  { %vm1202_vm12 = vcmp.ge.f32.partialorder %v956_v27, 0.0  ;;  %v1302_v21 = vmul.f32 0.01, %v956_v27 }
 0x158   :  { %vm1203_vm13 = vcmp.ge.f32.partialorder %v958_v0, 0.0  ;;  %v1303_v48 = vmul.f32 0.01, %v958_v0  ;;  %v961_v53 = vpop.f32.mrb[28].mxu0 }
 0x159   :  { %v1402_v37 = vsel %vm1202_vm12, %v956_v27, %v1302_v21  ;;  %v962_v52 = vadd.f32 %v961_v53, %v5400_v61  ;;  %v963_v55 = vpop.f32.mrb[29].mxu0 }
 0x15a   :  { %v4185_v62 = vpack.c.bf16 %v1402_v37, %v1400_v51  ;;  %v964_v6 = vadd.f32 %v963_v55, %v5400_v61  ;;  %v1403_v9 = vsel %vm1203_vm13, %v958_v0, %v1303_v48 }
 0x15b   :  { %v4183_v12 = vpack.c.bf16 %v1403_v9, %v1401_v7  ;;  %v1304_v50 = vmul.f32 0.01, %v962_v52  ;;  %vm1204_vm14 = vcmp.ge.f32.partialorder %v962_v52, 0.0 }
 0x15c   :  { %v967_v13 = vpop.f32.mrb[30].mxu0  ;;  %v1305_v59 = vmul.f32 0.01, %v964_v6  ;;  %vm1205_vm15 = vcmp.ge.f32.partialorder %v964_v6, 0.0 }
 0x15d   :  { %v968_v18 = vadd.f32 %v967_v13, %v5398_v60  ;;  %v969_v15 = vpop.f32.mrb[31].mxu0  ;;  %4184 = vmatprep.subr.bf16.mxu0 %v4183_v12  ;;  %v1404_v23 = vsel %vm1204_vm14, %v962_v52, %v1304_v50  ;;  %v1479_v12 = vld [vmem:[%s6789_s4 + $0x18] sm:$0xff] }
 0x15e   :  { %v970_v4 = vadd.f32 %v969_v15, %v5398_v60  ;;  %4186 = vmatpush1.bf16.msra.mxu0 %v4185_v62  ;;  %v1405_v58 = vsel %vm1205_vm15, %v964_v6, %v1305_v59  ;;  %4025 = vmatprep.mubr.msk.f32.mxu1 %vm1656_vm7, %v1479_v12 }
 0x15f   :  { %vm1206_vm0 = vcmp.ge.f32.partialorder %v968_v18, 0.0  ;;  %v1306_v5 = vmul.f32 0.01, %v968_v18 }
 0x160   :  { %vm1207_vm1 = vcmp.ge.f32.partialorder %v970_v4, 0.0  ;;  %v1307_v16 = vmul.f32 0.01, %v970_v4  ;;  %v973_v61 = vpop.f32.mrb[32].mxu0 }
 0x161   :  { %v1406_v24 = vsel %vm1206_vm0, %v968_v18, %v1306_v5  ;;  %v974_v29 = vadd.f32 %v973_v61, %v5447_v19  ;;  %v975_v43 = vpop.f32.mrb[33].mxu0 }
 0x162   :  { %v4189_v25 = vpack.c.bf16 %v1406_v24, %v1404_v23  ;;  %v976_v26 = vadd.f32 %v975_v43, %v5447_v19  ;;  %v1407_v34 = vsel %vm1207_vm1, %v970_v4, %v1307_v16 }
 0x163   :  { %v4187_v35 = vpack.c.bf16 %v1407_v34, %v1405_v58  ;;  %v1308_v60 = vmul.f32 0.01, %v974_v29  ;;  %vm1208_vm2 = vcmp.ge.f32.partialorder %v974_v29, 0.0 }
 0x164   :  { %v979_v36 = vpop.f32.mrb[34].mxu0  ;;  %v1309_v38 = vmul.f32 0.01, %v976_v26  ;;  %vm1209_vm3 = vcmp.ge.f32.partialorder %v976_v26, 0.0 }
 0x165   :  { %v980_v63 = vadd.f32 %v979_v36, %v5445_v17  ;;  %v981_v8 = vpop.f32.mrb[35].mxu0  ;;  %4188 = vmatprep.subr.bf16.mxu0 %v4187_v35  ;;  %v1408_v41 = vsel %vm1208_vm2, %v974_v29, %v1308_v60 }
 0x166   :  { %v982_v45 = vadd.f32 %v981_v8, %v5445_v17  ;;  %4190 = vmatpush1.bf16.msra.mxu0 %v4189_v25  ;;  %v1409_v51 = vsel %vm1209_vm3, %v976_v26, %v1309_v38  ;;  %v5700_v38 = vpop.permute.xlu0 %615 }
 0x167   :  { %vm1210_vm4 = vcmp.ge.f32.partialorder %v980_v63, 0.0  ;;  %v1310_v42 = vmul.f32 0.01, %v980_v63 }
 0x168   :  { %vm1211_vm5 = vcmp.ge.f32.partialorder %v982_v45, 0.0  ;;  %v1311_v27 = vmul.f32 0.01, %v982_v45  ;;  %v985_v19 = vpop.f32.mrb[36].mxu0 }
 0x169   :  { %v1410_v46 = vsel %vm1210_vm4, %v980_v63, %v1310_v42  ;;  %v986_v0 = vadd.f32 %v985_v19, %v5494_v40  ;;  %v987_v21 = vpop.f32.mrb[37].mxu0 }
 0x16a   :  { %v4193_v48 = vpack.c.bf16 %v1410_v46, %v1408_v41  ;;  %v988_v53 = vadd.f32 %v987_v21, %v5494_v40  ;;  %v1411_v37 = vsel %vm1211_vm5, %v982_v45, %v1311_v27 }
 0x16b   :  { %v4191_v52 = vpack.c.bf16 %v1411_v37, %v1409_v51  ;;  %v1312_v17 = vmul.f32 0.01, %v986_v0  ;;  %vm1212_vm6 = vcmp.ge.f32.partialorder %v986_v0, 0.0 }
 0x16c   :  { %v991_v55 = vpop.f32.mrb[38].mxu0  ;;  %v1313_v7 = vmul.f32 0.01, %v988_v53  ;;  %vm1213_vm8 = vcmp.ge.f32.partialorder %v988_v53, 0.0 }
 0x16d   :  { %v992_v62 = vadd.f32 %v991_v55, %v5492_v39  ;;  %v993_v6 = vpop.f32.mrb[39].mxu0  ;;  %4192 = vmatprep.subr.bf16.mxu0 %v4191_v52  ;;  %v1412_v18 = vsel %vm1212_vm6, %v986_v0, %v1312_v17 }
 0x16e   :  { %v994_v9 = vadd.f32 %v993_v6, %v5492_v39  ;;  %4194 = vmatpush1.bf16.msra.mxu0 %v4193_v48  ;;  %v1413_v16 = vsel %vm1213_vm8, %v988_v53, %v1313_v7  ;;  %v5704_v48 = vpop.permute.xlu1 %620 }
 0x16f   :  { %vm1214_vm9 = vcmp.ge.f32.partialorder %v992_v62, 0.0  ;;  %v1314_v40 = vmul.f32 0.01, %v992_v62 }
 0x170   :  { %vm1215_vm10 = vcmp.ge.f32.partialorder %v994_v9, 0.0  ;;  %v1315_v13 = vmul.f32 0.01, %v994_v9  ;;  %v997_v50 = vpop.f32.mrb[40].mxu0 }
 0x171   :  { %v1414_v15 = vsel %vm1214_vm9, %v992_v62, %v1314_v40  ;;  %v998_v59 = vadd.f32 %v997_v50, %v5541_v3  ;;  %v999_v4 = vpop.f32.mrb[41].mxu0 }
 0x172   :  { %v4197_v39 = vpack.c.bf16 %v1414_v15, %v1412_v18  ;;  %v1000_v5 = vadd.f32 %v999_v4, %v5541_v3  ;;  %v1415_v61 = vsel %vm1215_vm10, %v994_v9, %v1315_v13 }
 0x173   :  { %v4195_v23 = vpack.c.bf16 %v1415_v61, %v1413_v16  ;;  %v1316_v29 = vmul.f32 0.01, %v998_v59  ;;  %vm1216_vm11 = vcmp.ge.f32.partialorder %v998_v59, 0.0 }
 0x174   :  { %v1003_v24 = vpop.f32.mrb[42].mxu0  ;;  %v1317_v26 = vmul.f32 0.01, %v1000_v5  ;;  %vm1217_vm12 = vcmp.ge.f32.partialorder %v1000_v5, 0.0 }
 0x175   :  { %v1004_v43 = vadd.f32 %v1003_v24, %v5539_v2  ;;  %v1005_v25 = vpop.f32.mrb[43].mxu0  ;;  %4196 = vmatprep.subr.bf16.mxu0 %v4195_v23  ;;  %v1416_v36 = vsel %vm1216_vm11, %v998_v59, %v1316_v29 }
 0x176   :  { %v1006_v58 = vadd.f32 %v1005_v25, %v5539_v2  ;;  %4198 = vmatpush1.bf16.msra.mxu0 %v4197_v39  ;;  %v1417_v27 = vsel %vm1217_vm12, %v1000_v5, %v1317_v26 }
 0x177   :  { %vm1218_vm13 = vcmp.ge.f32.partialorder %v1004_v43, 0.0  ;;  %v1318_v34 = vmul.f32 0.01, %v1004_v43 }
 0x178   :  { %vm1219_vm14 = vcmp.ge.f32.partialorder %v1006_v58, 0.0  ;;  %v1319_v35 = vmul.f32 0.01, %v1006_v58  ;;  %v1009_v3 = vpop.f32.mrb[44].mxu0 }
 0x179   :  { %v1418_v60 = vsel %vm1218_vm13, %v1004_v43, %v1318_v34  ;;  %v1010_v63 = vadd.f32 %v1009_v3, %v5588_v32  ;;  %v1011_v8 = vpop.f32.mrb[45].mxu0 }
 0x17a   :  { %v4201_v45 = vpack.c.bf16 %v1418_v60, %v1416_v36  ;;  %v1012_v42 = vadd.f32 %v1011_v8, %v5588_v32  ;;  %v1419_v19 = vsel %vm1219_vm14, %v1006_v58, %v1319_v35  ;;  %v536_v32 = vpop.permute.xlu0 %535 }
 0x17b   :  { %v4199_v2 = vpack.c.bf16 %v1419_v19, %v1417_v27  ;;  %v1320_v46 = vmul.f32 0.01, %v1010_v63  ;;  %vm1220_vm15 = vcmp.ge.f32.partialorder %v1010_v63, 0.0 }
 0x17c   :  { %v1015_v41 = vpop.f32.mrb[46].mxu0  ;;  %v1321_v53 = vmul.f32 0.01, %v1012_v42  ;;  %vm1221_vm0 = vcmp.ge.f32.partialorder %v1012_v42, 0.0 }
 0x17d   :  { %v1016_v0 = vadd.f32 %v1015_v41, %v5586_v30  ;;  %v1017_v21 = vpop.f32.mrb[47].mxu0  ;;  %4200 = vmatprep.subr.bf16.mxu0 %v4199_v2  ;;  %v1420_v17 = vsel %vm1220_vm15, %v1010_v63, %v1320_v46 }
 0x17e   :  { %v1018_v51 = vadd.f32 %v1017_v21, %v5586_v30  ;;  %4202 = vmatpush1.bf16.msra.mxu0 %v4201_v45  ;;  %v1421_v40 = vsel %vm1221_vm0, %v1012_v42, %v1321_v53  ;;  %v541_v30 = vpop.permute.xlu1 %540  ;;  %v5710_v39 = vpop.permute.xlu0 %625 }
 0x17f   :  { %vm1222_vm1 = vcmp.ge.f32.partialorder %v1016_v0, 0.0  ;;  %v1322_v37 = vmul.f32 0.01, %v1016_v0 }
 0x180   :  { %vm1223_vm2 = vcmp.ge.f32.partialorder %v1018_v51, 0.0  ;;  %v1323_v52 = vmul.f32 0.01, %v1018_v51  ;;  %v1021_v55 = vpop.f32.mrb[48].mxu0 }
 0x181   :  { %v1422_v62 = vsel %vm1222_vm1, %v1016_v0, %v1322_v37  ;;  %v1022_v6 = vadd.f32 %v1021_v55, %v5635_v57  ;;  %v1023_v7 = vpop.f32.mrb[49].mxu0 }
 0x182   :  { %v4205_v9 = vpack.c.bf16 %v1422_v62, %v1420_v17  ;;  %v1024_v12 = vadd.f32 %v1023_v7, %v5635_v57  ;;  %v1423_v13 = vsel %vm1223_vm2, %v1018_v51, %v1323_v52  ;;  %v5713_v26 = vpop.permute.xlu1 %630  ;;  %v546_v60 = vpop.permute.xlu0 %545 }
 0x183   :  { %v4203_v50 = vpack.c.bf16 %v1423_v13, %v1421_v40  ;;  %v1324_v15 = vmul.f32 0.01, %v1022_v6  ;;  %vm1224_vm3 = vcmp.ge.f32.partialorder %v1022_v6, 0.0 }
 0x184   :  { %v1027_v18 = vpop.f32.mrb[50].mxu0  ;;  %v1325_v5 = vmul.f32 0.01, %v1024_v12  ;;  %vm1225_vm4 = vcmp.ge.f32.partialorder %v1024_v12, 0.0 }
 0x185   :  { %v1028_v59 = vadd.f32 %v1027_v18, %v5633_v56  ;;  %v1029_v4 = vpop.f32.mrb[51].mxu0  ;;  %4204 = vmatprep.subr.bf16.mxu0 %v4203_v50  ;;  %v1424_v24 = vsel %vm1224_vm3, %v1022_v6, %v1324_v15 }
 0x186   :  { %v1030_v16 = vadd.f32 %v1029_v4, %v5633_v56  ;;  %4206 = vmatpush1.bf16.msra.mxu0 %v4205_v9  ;;  %v1425_v35 = vsel %vm1225_vm4, %v1024_v12, %v1325_v5  ;;  %v551_v2 = vpop.permute.xlu1 %550  ;;  %v5715_v37 = vpop.permute.xlu0 %635 }
 0x187   :  { %vm1226_vm5 = vcmp.ge.f32.partialorder %v1028_v59, 0.0  ;;  %v1326_v57 = vmul.f32 0.01, %v1028_v59 }
 0x188   :  { %vm1227_vm6 = vcmp.ge.f32.partialorder %v1030_v16, 0.0  ;;  %v1327_v61 = vmul.f32 0.01, %v1030_v16  ;;  %v1033_v23 = vpop.f32.mrb[52].mxu0 }
 0x189   :  { %v1426_v29 = vsel %vm1226_vm5, %v1028_v59, %v1326_v57  ;;  %v1034_v43 = vadd.f32 %v1033_v23, %v536_v32  ;;  %v1035_v25 = vpop.f32.mrb[53].mxu0 }
 0x18a   :  { %v4209_v58 = vpack.c.bf16 %v1426_v29, %v1424_v24  ;;  %v1036_v34 = vadd.f32 %v1035_v25, %v536_v32  ;;  %v1427_v3 = vsel %vm1227_vm6, %v1030_v16, %v1327_v61  ;;  %v5717_v40 = vpop.permute.xlu1 %640  ;;  %v556_v18 = vpop.permute.xlu0 %555 }
 0x18b   :  { %v4207_v36 = vpack.c.bf16 %v1427_v3, %v1425_v35  ;;  %v1328_v63 = vmul.f32 0.01, %v1034_v43  ;;  %vm1228_vm8 = vcmp.ge.f32.partialorder %v1034_v43, 0.0 }
 0x18c   :  { %v1039_v56 = vpop.f32.mrb[54].mxu0  ;;  %v1329_v42 = vmul.f32 0.01, %v1036_v34  ;;  %vm1229_vm9 = vcmp.ge.f32.partialorder %v1036_v34, 0.0 }
 0x18d   :  { %v1040_v8 = vadd.f32 %v1039_v56, %v541_v30  ;;  %v1041_v45 = vpop.f32.mrb[55].mxu0  ;;  %4208 = vmatprep.subr.bf16.mxu0 %v4207_v36  ;;  %v1428_v0 = vsel %vm1228_vm8, %v1034_v43, %v1328_v63 }
 0x18e   :  { %v1042_v27 = vadd.f32 %v1041_v45, %v541_v30  ;;  %4210 = vmatpush1.bf16.msra.mxu0 %v4209_v58  ;;  %v1429_v55 = vsel %vm1229_vm9, %v1036_v34, %v1329_v42  ;;  %v561_v25 = vpop.permute.xlu1 %560 }
 0x18f   :  { %vm1230_vm10 = vcmp.ge.f32.partialorder %v1040_v8, 0.0  ;;  %v1330_v19 = vmul.f32 0.01, %v1040_v8 }
 0x190   :  { %vm1231_vm11 = vcmp.ge.f32.partialorder %v1042_v27, 0.0  ;;  %v1331_v41 = vmul.f32 0.01, %v1042_v27  ;;  %v1045_v46 = vpop.f32.mrb[56].mxu0 }
 0x191   :  { %v1430_v21 = vsel %vm1230_vm10, %v1040_v8, %v1330_v19  ;;  %v1046_v53 = vadd.f32 %v1045_v46, %v546_v60  ;;  %v1047_v51 = vpop.f32.mrb[57].mxu0 }
 0x192   :  { %v4213_v32 = vpack.c.bf16 %v1430_v21, %v1428_v0  ;;  %v1048_v52 = vadd.f32 %v1047_v51, %v546_v60  ;;  %v1431_v17 = vsel %vm1231_vm11, %v1042_v27, %v1331_v41 }
 0x193   :  { %v4211_v62 = vpack.c.bf16 %v1431_v17, %v1429_v55  ;;  %v1332_v7 = vmul.f32 0.01, %v1046_v53  ;;  %vm1232_vm12 = vcmp.ge.f32.partialorder %v1046_v53, 0.0 }
 0x194   :  { %v1051_v6 = vpop.f32.mrb[58].mxu0  ;;  %v1333_v13 = vmul.f32 0.01, %v1048_v52  ;;  %vm1233_vm13 = vcmp.ge.f32.partialorder %v1048_v52, 0.0 }
 0x195   :  { %v1052_v9 = vadd.f32 %v1051_v6, %v551_v2  ;;  %v1053_v12 = vpop.f32.mrb[59].mxu0  ;;  %4212 = vmatprep.subr.bf16.mxu0 %v4211_v62  ;;  %v1432_v4 = vsel %vm1232_vm12, %v1046_v53, %v1332_v7  ;;  %v1476_v62 = vld [vmem:[%s6789_s4] sm:$0xff] }
 0x196   :  { %v1054_v50 = vadd.f32 %v1053_v12, %v551_v2  ;;  %4214 = vmatpush1.bf16.msra.mxu0 %v4213_v32  ;;  %v1433_v24 = vsel %vm1233_vm13, %v1048_v52, %v1333_v13 }
 0x197   :  { %vm1234_vm14 = vcmp.ge.f32.partialorder %v1052_v9, 0.0  ;;  %v1334_v30 = vmul.f32 0.01, %v1052_v9 }
 0x198   :  { %vm1235_vm15 = vcmp.ge.f32.partialorder %v1054_v50, 0.0  ;;  %v1335_v15 = vmul.f32 0.01, %v1054_v50  ;;  %v1057_v59 = vpop.f32.mrb[60].mxu0 }
 0x199   :  { %v1434_v5 = vsel %vm1234_vm14, %v1052_v9, %v1334_v30  ;;  %v1058_v16 = vadd.f32 %v1057_v59, %v556_v18  ;;  %v1059_v57 = vpop.f32.mrb[61].mxu0 }
 0x19a   :  { %v4217_v61 = vpack.c.bf16 %v1434_v5, %v1432_v4  ;;  %v1060_v23 = vadd.f32 %v1059_v57, %v556_v18  ;;  %v1435_v29 = vsel %vm1235_vm15, %v1054_v50, %v1335_v15  ;;  %v1480_v18 = vld [vmem:[%s6789_s4 + $0x20] sm:$0xff] }
 0x19b   :  { %v4215_v43 = vpack.c.bf16 %v1435_v29, %v1433_v24  ;;  %v1336_v34 = vmul.f32 0.01, %v1058_v16  ;;  %vm1236_vm0 = vcmp.ge.f32.partialorder %v1058_v16, 0.0 }
 0x19c   :  { %v1063_v58 = vpop.f32.mrb[62].mxu0  ;;  %v1337_v36 = vmul.f32 0.01, %v1060_v23  ;;  %vm1237_vm1 = vcmp.ge.f32.partialorder %v1060_v23, 0.0 }
 0x19d   :  { %v1064_v35 = vadd.f32 %v1063_v58, %v561_v25  ;;  %v1065_v3 = vpop.f32.mrb[63].mxu0  ;;  %4216 = vmatprep.subr.bf16.mxu0 %v4215_v43  ;;  %v1436_v45 = vsel %vm1236_vm0, %v1058_v16, %v1336_v34  ;;  %v1485_v16 = vld [vmem:[%s6789_s4 + $0x48] sm:$0xff]  ;;  %v1484_v43 = vld [vmem:[%s6789_s4 + $0x40] sm:$0xff] }
 0x19e   :  { %v1066_v60 = vadd.f32 %v1065_v3, %v561_v25  ;;  %4218 = vmatpush1.bf16.msra.mxu0 %v4217_v61  ;;  %v1437_v46 = vsel %vm1237_vm1, %v1060_v23, %v1337_v36  ;;  %v1489_v58 = vld [vmem:[%s6789_s4 + $0x68] sm:$0xff] }
 0x19f   :  { %vm1238_vm2 = vcmp.ge.f32.partialorder %v1064_v35, 0.0  ;;  %v1338_v56 = vmul.f32 0.01, %v1064_v35 }
 0x1a0   :  { %vm1239_vm3 = vcmp.ge.f32.partialorder %v1066_v60, 0.0  ;;  %v1339_v63 = vmul.f32 0.01, %v1066_v60  ;;  %v1069_v8 = vpop.f32.mrb[64].mxu0 }
 0x1a1   :  { %v1438_v42 = vsel %vm1238_vm2, %v1064_v35, %v1338_v56  ;;  %v1070_v27 = vadd.f32 %v1069_v8, %v5430_v1  ;;  %v1071_v19 = vpop.f32.mrb[65].mxu0 }
 0x1a2   :  { %v4221_v2 = vpack.c.bf16 %v1438_v42, %v1436_v45  ;;  %v1072_v41 = vadd.f32 %v1071_v19, %v5430_v1  ;;  %v1439_v0 = vsel %vm1239_vm3, %v1066_v60, %v1339_v63  ;;  %v1481_v1 = vld [vmem:[%s6789_s4 + $0x28] sm:$0xff]  ;;  %v1488_v63 = vld [vmem:[%s6789_s4 + $0x60] sm:$0xff] }
 0x1a3   :  { %v4219_v21 = vpack.c.bf16 %v1439_v0, %v1437_v46  ;;  %v1340_v51 = vmul.f32 0.01, %v1070_v27  ;;  %vm1240_vm4 = vcmp.ge.f32.partialorder %v1070_v27, 0.0  ;;  %v1493_v19 = vld [vmem:[%s6789_s4 + $0x88] sm:$0xff] }
 0x1a4   :  { %v1075_v53 = vpop.f32.mrb[66].mxu0  ;;  %v1341_v55 = vmul.f32 0.01, %v1072_v41  ;;  %vm1241_vm5 = vcmp.ge.f32.partialorder %v1072_v41, 0.0 }
 0x1a5   :  { %v1076_v32 = vadd.f32 %v1075_v53, %v5422_v10  ;;  %v1077_v52 = vpop.f32.mrb[67].mxu0  ;;  %4220 = vmatprep.subr.bf16.mxu0 %v4219_v21  ;;  %v1492_v53 = vld [vmem:[%s6789_s4 + $0x80] sm:$0xff] }
 0x1a6   :  { %v1078_v17 = vadd.f32 %v1077_v52, %v5422_v10  ;;  %4222 = vmatpush1.bf16.msra.mxu0 %v4221_v2  ;;  %v1440_v10 = vsel %vm1240_vm4, %v1070_v27, %v1340_v51  ;;  %v1441_v15 = vsel %vm1241_vm5, %v1072_v41, %v1341_v55 }
 0x1a7   :  { %v1342_v6 = vmul.f32 0.01, %v1076_v32  ;;  %vm1242_vm6 = vcmp.ge.f32.partialorder %v1076_v32, 0.0 }
 0x1a8   :  { %v1343_v7 = vmul.f32 0.01, %v1078_v17  ;;  %v1081_v9 = vpop.f32.mrb[68].mxu0  ;;  %vm1243_vm8 = vcmp.ge.f32.partialorder %v1078_v17, 0.0 }
 0x1a9   :  { %v1082_v12 = vadd.f32 %v1081_v9, %v5477_v33  ;;  %v1083_v13 = vpop.f32.mrb[69].mxu0  ;;  %1776 = vmatmul.mubr.f32.vlgmr.msra.gmra.mrb[100].mxu0 %v1476_v62  ;;  %v1442_v50 = vsel %vm1242_vm6, %v1076_v32, %v1342_v6  ;;  %v1497_v32 = vld [vmem:[%s6789_s4 + $0xa8] sm:$0xff] }
 0x1aa   :  { %v1084_v30 = vadd.f32 %v1083_v13, %v5477_v33  ;;  %1781 = vmatprep.mubr.f32.mxu0 %v1481_v1  ;;  %v1443_v59 = vsel %vm1243_vm8, %v1078_v17, %v1343_v7  ;;  %v4225_v4 = vpack.c.bf16 %v1442_v50, %v1440_v10  ;;  %v1496_v7 = vld [vmem:[%s6789_s4 + $0xa0] sm:$0xff]  ;;  %v1501_v50 = vld [vmem:[%s6789_s4 + $0xc8] sm:$0xff] }
 0x1ab   :  { %v4223_v5 = vpack.c.bf16 %v1443_v59, %v1441_v15  ;;  %v1344_v61 = vmul.f32 0.01, %v1082_v12  ;;  %vm1244_vm9 = vcmp.ge.f32.partialorder %v1082_v12, 0.0 }
 0x1ac   :  { %v1087_v57 = vpop.f32.mrb[70].mxu0  ;;  %v1345_v33 = vmul.f32 0.01, %v1084_v30  ;;  %vm1245_vm10 = vcmp.ge.f32.partialorder %v1084_v30, 0.0 }
 0x1ad   :  { %v1088_v23 = vadd.f32 %v1087_v57, %v5469_v31  ;;  %v1089_v24 = vpop.f32.mrb[71].mxu0  ;;  %1782 = vmatmul.mubr.f32.gmra.mrb[102].mxu0 %v1480_v18  ;;  %4224 = vmatprep.subr.bf16.mxu1 %v4223_v5  ;;  %v1500_v5 = vld [vmem:[%s6789_s4 + $0xc0] sm:$0xff]  ;;  %v1505_v57 = vld [vmem:[%s6789_s4 + $0xe8] sm:$0xff] }
 0x1ae   :  { %v1090_v29 = vadd.f32 %v1089_v24, %v5469_v31  ;;  %4226 = vmatpush1.bf16.msra.mxu1 %v4225_v4  ;;  %1787 = vmatprep.mubr.f32.mxu0 %v1485_v16  ;;  %v1444_v31 = vsel %vm1244_vm9, %v1082_v12, %v1344_v61  ;;  %v1445_v8 = vsel %vm1245_vm10, %v1084_v30, %v1345_v33 }
 0x1af   :  { %vm1246_vm11 = vcmp.ge.f32.partialorder %v1088_v23, 0.0  ;;  %v1346_v25 = vmul.f32 0.01, %v1088_v23 }
 0x1b0   :  { %vm1247_vm12 = vcmp.ge.f32.partialorder %v1090_v29, 0.0  ;;  %v1347_v34 = vmul.f32 0.01, %v1090_v29  ;;  %v1093_v35 = vpop.f32.mrb[72].mxu0 }
 0x1b1   :  { %v1094_v3 = vadd.f32 %v1093_v35, %v5524_v54  ;;  %v1095_v36 = vpop.f32.mrb[73].mxu0  ;;  %1788 = vmatmul.mubr.f32.gmra.mrb[104].mxu0 %v1484_v43  ;;  %v1446_v60 = vsel %vm1246_vm11, %v1088_v23, %v1346_v25  ;;  %v1504_v25 = vld [vmem:[%s6789_s4 + $0xe0] sm:$0xff] }
 0x1b2   :  { %v1096_v56 = vadd.f32 %v1095_v36, %v5524_v54  ;;  %1793 = vmatprep.mubr.f32.mxu0 %v1489_v58  ;;  %v1447_v45 = vsel %vm1247_vm12, %v1090_v29, %v1347_v34  ;;  %v4229_v42 = vpack.c.bf16 %v1446_v60, %v1444_v31  ;;  %v1509_v36 = vld [vmem:[%s6789_s4 + $0x108] sm:$0xff] }
 0x1b3   :  { %v4227_v27 = vpack.c.bf16 %v1447_v45, %v1445_v8  ;;  %v1348_v41 = vmul.f32 0.01, %v1094_v3  ;;  %vm1248_vm13 = vcmp.ge.f32.partialorder %v1094_v3, 0.0  ;;  %v1508_v45 = vld [vmem:[%s6789_s4 + $0x100] sm:$0xff] }
 0x1b4   :  { %v1099_v2 = vpop.f32.mrb[74].mxu0  ;;  %v1349_v54 = vmul.f32 0.01, %v1096_v56  ;;  %vm1249_vm14 = vcmp.ge.f32.partialorder %v1096_v56, 0.0 }
 0x1b5   :  { %v1100_v46 = vadd.f32 %v1099_v2, %v5516_v49  ;;  %v1101_v0 = vpop.f32.mrb[75].mxu0  ;;  %1794 = vmatmul.mubr.f32.gmra.mrb[106].mxu0 %v1488_v63  ;;  %4228 = vmatprep.subr.bf16.mxu1 %v4227_v27  ;;  %v1513_v27 = vld [vmem:[%s6789_s4 + $0x128] sm:$0xff] }
 0x1b6   :  { %v1102_v21 = vadd.f32 %v1101_v0, %v5516_v49  ;;  %4230 = vmatpush1.bf16.msra.mxu1 %v4229_v42  ;;  %1799 = vmatprep.mubr.f32.mxu0 %v1493_v19  ;;  %v1448_v49 = vsel %vm1248_vm13, %v1094_v3, %v1348_v41  ;;  %v1449_v9 = vsel %vm1249_vm14, %v1096_v56, %v1349_v54 }
 0x1b7   :  { %vm1250_vm15 = vcmp.ge.f32.partialorder %v1100_v46, 0.0  ;;  %v1350_v51 = vmul.f32 0.01, %v1100_v46 }
 0x1b8   :  { %vm1251_vm0 = vcmp.ge.f32.partialorder %v1102_v21, 0.0  ;;  %v1351_v52 = vmul.f32 0.01, %v1102_v21  ;;  %v1105_v55 = vpop.f32.mrb[76].mxu0 }
 0x1b9   :  { %v1106_v17 = vadd.f32 %v1105_v55, %v5571_v20  ;;  %v1107_v62 = vpop.f32.mrb[77].mxu0  ;;  %1800 = vmatmul.mubr.f32.gmra.mrb[108].mxu0 %v1492_v53  ;;  %v1450_v6 = vsel %vm1250_vm15, %v1100_v46, %v1350_v51  ;;  %v1517_v55 = vld [vmem:[%s6789_s4 + $0x148] sm:$0xff] }
 0x1ba   :  { %v1108_v1 = vadd.f32 %v1107_v62, %v5571_v20  ;;  %1805 = vmatprep.mubr.f32.mxu0 %v1497_v32  ;;  %v1451_v12 = vsel %vm1251_vm0, %v1102_v21, %v1351_v52  ;;  %v4233_v13 = vpack.c.bf16 %v1450_v6, %v1448_v49  ;;  %v1512_v21 = vld [vmem:[%s6789_s4 + $0x120] sm:$0xff] }
 0x1bb   :  { %v4231_v10 = vpack.c.bf16 %v1451_v12, %v1449_v9  ;;  %v1352_v18 = vmul.f32 0.01, %v1106_v17  ;;  %vm1252_vm1 = vcmp.ge.f32.partialorder %v1106_v17, 0.0  ;;  %v1521_v12 = vld [vmem:[%s6789_s4 + $0x168] sm:$0xff] }
 0x1bc   :  { %v1111_v30 = vpop.f32.mrb[78].mxu0  ;;  %v1353_v20 = vmul.f32 0.01, %v1108_v1  ;;  %vm1253_vm2 = vcmp.ge.f32.partialorder %v1108_v1, 0.0 }
 0x1bd   :  { %v1112_v15 = vadd.f32 %v1111_v30, %v5563_v14  ;;  %v1113_v59 = vpop.f32.mrb[79].mxu0  ;;  %1806 = vmatmul.mubr.f32.gmra.mrb[110].mxu0 %v1496_v7  ;;  %4232 = vmatprep.subr.bf16.mxu1 %v4231_v10  ;;  %v1516_v7 = vld [vmem:[%s6789_s4 + $0x140] sm:$0xff] }
 0x1be   :  { %v1114_v4 = vadd.f32 %v1113_v59, %v5563_v14  ;;  %4234 = vmatpush1.bf16.msra.mxu1 %v4233_v13  ;;  %1811 = vmatprep.mubr.f32.mxu0 %v1501_v50  ;;  %v1452_v14 = vsel %vm1252_vm1, %v1106_v17, %v1352_v18  ;;  %v1453_v58 = vsel %vm1253_vm2, %v1108_v1, %v1353_v20  ;;  %v1520_v59 = vld [vmem:[%s6789_s4 + $0x160] sm:$0xff] }
 0x1bf   :  { %vm1254_vm3 = vcmp.ge.f32.partialorder %v1112_v15, 0.0  ;;  %v1354_v16 = vmul.f32 0.01, %v1112_v15 }
 0x1c0   :  { %vm1255_vm4 = vcmp.ge.f32.partialorder %v1114_v4, 0.0  ;;  %v1355_v61 = vmul.f32 0.01, %v1114_v4  ;;  %v1117_v23 = vpop.f32.mrb[80].mxu0 }
 0x1c1   :  { %v1118_v24 = vadd.f32 %v1117_v23, %v5618_v47  ;;  %v1119_v33 = vpop.f32.mrb[81].mxu0  ;;  %1812 = vmatmul.mubr.f32.gmra.mrb[112].mxu0 %v1500_v5  ;;  %v1454_v29 = vsel %vm1254_vm3, %v1112_v15, %v1354_v16 }
 0x1c2   :  { %v1120_v43 = vadd.f32 %v1119_v33, %v5618_v47  ;;  %1817 = vmatprep.mubr.f32.mxu0 %v1505_v57  ;;  %v1455_v34 = vsel %vm1255_vm4, %v1114_v4, %v1355_v61  ;;  %v4237_v35 = vpack.c.bf16 %v1454_v29, %v1452_v14  ;;  %v1525_v57 = vld [vmem:[%s6789_s4 + $0x188] sm:$0xff]  ;;  %v1524_v29 = vld [vmem:[%s6789_s4 + $0x180] sm:$0xff] }
 0x1c3   :  { %v4235_v3 = vpack.c.bf16 %v1455_v34, %v1453_v58  ;;  %v1356_v60 = vmul.f32 0.01, %v1118_v24  ;;  %vm1256_vm5 = vcmp.ge.f32.partialorder %v1118_v24, 0.0 }
 0x1c4   :  { %v1123_v31 = vpop.f32.mrb[82].mxu0  ;;  %v1357_v47 = vmul.f32 0.01, %v1120_v43  ;;  %vm1257_vm6 = vcmp.ge.f32.partialorder %v1120_v43, 0.0 }
 0x1c5   :  { %v1124_v56 = vadd.f32 %v1123_v31, %v5610_v44  ;;  %v1125_v63 = vpop.f32.mrb[83].mxu0  ;;  %1818 = vmatmul.mubr.f32.gmra.mrb[114].mxu0 %v1504_v25  ;;  %4236 = vmatprep.subr.bf16.mxu1 %v4235_v3  ;;  %v1529_v25 = vld [vmem:[%s6789_s4 + $0x1a8] sm:$0xff] }
 0x1c6   :  { %v1126_v8 = vadd.f32 %v1125_v63, %v5610_v44  ;;  %4238 = vmatpush1.bf16.msra.mxu1 %v4237_v35  ;;  %1823 = vmatprep.mubr.f32.mxu0 %v1509_v36  ;;  %v1456_v44 = vsel %vm1256_vm5, %v1118_v24, %v1356_v60  ;;  %v1457_v53 = vsel %vm1257_vm6, %v1120_v43, %v1357_v47  ;;  %v1528_v60 = vld [vmem:[%s6789_s4 + $0x1a0] sm:$0xff] }
 0x1c7   :  { %vm1258_vm8 = vcmp.ge.f32.partialorder %v1124_v56, 0.0  ;;  %v1358_v42 = vmul.f32 0.01, %v1124_v56 }
 0x1c8   :  { %vm1259_vm9 = vcmp.ge.f32.partialorder %v1126_v8, 0.0  ;;  %v1359_v19 = vmul.f32 0.01, %v1126_v8  ;;  %v1129_v2 = vpop.f32.mrb[84].mxu0 }
 0x1c9   :  { %v1130_v41 = vadd.f32 %v1129_v2, %v5700_v38  ;;  %v1131_v46 = vpop.f32.mrb[85].mxu0  ;;  %1824 = vmatmul.mubr.f32.gmra.mrb[116].mxu0 %v1508_v45  ;;  %v1458_v0 = vsel %vm1258_vm8, %v1124_v56, %v1358_v42  ;;  %v1533_v45 = vld [vmem:[%s6789_s4 + $0x1c8] sm:$0xff] }
 0x1ca   :  { %v1132_v54 = vadd.f32 %v1131_v46, %v5700_v38  ;;  %1829 = vmatprep.mubr.f32.mxu0 %v1513_v27  ;;  %v1459_v51 = vsel %vm1259_vm9, %v1126_v8, %v1359_v19  ;;  %v4241_v32 = vpack.c.bf16 %v1458_v0, %v1456_v44  ;;  %v1532_v46 = vld [vmem:[%s6789_s4 + $0x1c0] sm:$0xff]  ;;  %v1537_v0 = vld [vmem:[%s6789_s4 + $0x1e8] sm:$0xff] }
 0x1cb   :  { %v4239_v52 = vpack.c.bf16 %v1459_v51, %v1457_v53  ;;  %v1360_v62 = vmul.f32 0.01, %v1130_v41  ;;  %vm1260_vm10 = vcmp.ge.f32.partialorder %v1130_v41, 0.0 }
 0x1cc   :  { %v1135_v17 = vpop.f32.mrb[86].mxu0  ;;  %v1361_v38 = vmul.f32 0.01, %v1132_v54  ;;  %vm1261_vm11 = vcmp.ge.f32.partialorder %v1132_v54, 0.0 }
 0x1cd   :  { %v1136_v49 = vadd.f32 %v1135_v17, %v5704_v48  ;;  %v1137_v6 = vpop.f32.mrb[87].mxu0  ;;  %1830 = vmatmul.mubr.f32.gmra.mrb[118].mxu0 %v1512_v21  ;;  %4240 = vmatprep.subr.bf16.mxu1 %v4239_v52  ;;  %v1536_v17 = vld [vmem:[%s6789_s4 + $0x1e0] sm:$0xff] }
 0x1ce   :  { %v1138_v1 = vadd.f32 %v1137_v6, %v5704_v48  ;;  %4242 = vmatpush1.bf16.msra.mxu1 %v4241_v32  ;;  %1835 = vmatprep.mubr.f32.mxu0 %v1517_v55  ;;  %v1460_v48 = vsel %vm1260_vm10, %v1130_v41, %v1360_v62  ;;  %v1461_v20 = vsel %vm1261_vm11, %v1132_v54, %v1361_v38  ;;  %v646_v54 = vpop.permute.xlu0 %645 }
 0x1cf   :  { %vm1262_vm12 = vcmp.ge.f32.partialorder %v1136_v49, 0.0  ;;  %v1362_v9 = vmul.f32 0.01, %v1136_v49 }
 0x1d0   :  { %vm1263_vm13 = vcmp.ge.f32.partialorder %v1138_v1, 0.0  ;;  %v1363_v13 = vmul.f32 0.01, %v1138_v1  ;;  %v1141_v10 = vpop.f32.mrb[88].mxu0 }
 0x1d1   :  { %v1142_v50 = vadd.f32 %v1141_v10, %v5710_v39  ;;  %v1143_v30 = vpop.f32.mrb[89].mxu0  ;;  %1836 = vmatmul.mubr.f32.gmra.mrb[120].mxu0 %v1516_v7  ;;  %v1462_v18 = vsel %vm1262_vm12, %v1136_v49, %v1362_v9  ;;  %v651_v7 = vpop.permute.xlu1 %650 }
 0x1d2   :  { %v1144_v15 = vadd.f32 %v1143_v30, %v5710_v39  ;;  %1841 = vmatprep.mubr.f32.mxu0 %v1521_v12  ;;  %v1463_v4 = vsel %vm1263_vm13, %v1138_v1, %v1363_v13  ;;  %v4245_v5 = vpack.c.bf16 %v1462_v18, %v1460_v48  ;;  %v1541_v1 = vld [vmem:[%s6789_s4 + $0x208] sm:$0xff]  ;;  %v1540_v48 = vld [vmem:[%s6789_s4 + $0x200] sm:$0xff] }
 0x1d3   :  { %v4243_v16 = vpack.c.bf16 %v1463_v4, %v1461_v20  ;;  %v1364_v23 = vmul.f32 0.01, %v1142_v50  ;;  %vm1264_vm14 = vcmp.ge.f32.partialorder %v1142_v50, 0.0 }
 0x1d4   :  { %v1147_v61 = vpop.f32.mrb[90].mxu0  ;;  %v1365_v39 = vmul.f32 0.01, %v1144_v15  ;;  %vm1265_vm15 = vcmp.ge.f32.partialorder %v1144_v15, 0.0 }
 0x1d5   :  { %v1148_v24 = vadd.f32 %v1147_v61, %v5713_v26  ;;  %v1149_v33 = vpop.f32.mrb[91].mxu0  ;;  %1842 = vmatmul.mubr.f32.gmra.mrb[122].mxu0 %v1520_v59  ;;  %4244 = vmatprep.subr.bf16.mxu1 %v4243_v16 }
 0x1d6   :  { %v1150_v14 = vadd.f32 %v1149_v33, %v5713_v26  ;;  %4246 = vmatpush1.bf16.msra.mxu1 %v4245_v5  ;;  %1847 = vmatprep.mubr.f32.mxu0 %v1525_v57  ;;  %v1464_v26 = vsel %vm1264_vm14, %v1142_v50, %v1364_v23  ;;  %v1465_v56 = vsel %vm1265_vm15, %v1144_v15, %v1365_v39  ;;  %v1545_v15 = vld [vmem:[%s6789_s4 + $0x228] sm:$0xff]  ;;  %v1544_v5 = vld [vmem:[%s6789_s4 + $0x220] sm:$0xff]  ;;  %v1483_v33 = vld [vmem:[%s6789_s4 + $0x38] sm:$0xff] }
 0x1d7   :  { %vm1266_vm0 = vcmp.ge.f32.partialorder %v1148_v24, 0.0  ;;  %v1366_v43 = vmul.f32 0.01, %v1148_v24  ;;  %v1482_v39 = vld [vmem:[%s6789_s4 + $0x30] sm:$0xff] }
 0x1d8   :  { %vm1267_vm1 = vcmp.ge.f32.partialorder %v1150_v14, 0.0  ;;  %v1367_v58 = vmul.f32 0.01, %v1150_v14  ;;  %v1153_v34 = vpop.f32.mrb[92].mxu0 }
 0x1d9   :  { %v1154_v35 = vadd.f32 %v1153_v34, %v5715_v37  ;;  %v1155_v3 = vpop.f32.mrb[93].mxu0  ;;  %1848 = vmatmul.mubr.f32.gmra.mrb[124].mxu0 %v1524_v29  ;;  %v1466_v36 = vsel %vm1266_vm0, %v1148_v24, %v1366_v43  ;;  %v1478_v24 = vld [vmem:[%s6789_s4 + $0x10] sm:$0xff]  ;;  %v1491_v43 = vld [vmem:[%s6789_s4 + $0x78] sm:$0xff] }
 0x1da   :  { %v1156_v31 = vadd.f32 %v1155_v3, %v5715_v37  ;;  %1853 = vmatprep.mubr.f32.mxu0 %v1529_v25  ;;  %v1467_v63 = vsel %vm1267_vm1, %v1150_v14, %v1367_v58  ;;  %v4249_v47 = vpack.c.bf16 %v1466_v36, %v1464_v26  ;;  %v1487_v14 = vld [vmem:[%s6789_s4 + $0x58] sm:$0xff]  ;;  %v1486_v29 = vld [vmem:[%s6789_s4 + $0x50] sm:$0xff] }
 0x1db   :  { %v4247_v8 = vpack.c.bf16 %v1467_v63, %v1465_v56  ;;  %v1368_v27 = vmul.f32 0.01, %v1154_v35  ;;  %vm1268_vm2 = vcmp.ge.f32.partialorder %v1154_v35, 0.0  ;;  %v1490_v25 = vld [vmem:[%s6789_s4 + $0x70] sm:$0xff]  ;;  %v1495_v58 = vld [vmem:[%s6789_s4 + $0x98] sm:$0xff] }
 0x1dc   :  { %v1159_v42 = vpop.f32.mrb[94].mxu0  ;;  %v1369_v37 = vmul.f32 0.01, %v1156_v31  ;;  %vm1269_vm3 = vcmp.ge.f32.partialorder %v1156_v31, 0.0  ;;  %v1494_v34 = vld [vmem:[%s6789_s4 + $0x90] sm:$0xff]  ;;  %v1503_v26 = vld [vmem:[%s6789_s4 + $0xd8] sm:$0xff] }
 0x1dd   :  { %v1160_v19 = vadd.f32 %v1159_v42, %v5717_v40  ;;  %v1161_v2 = vpop.f32.mrb[95].mxu0  ;;  %1854 = vmatmul.mubr.f32.gmra.mrb[126].mxu0 %v1528_v60  ;;  %4248 = vmatprep.subr.bf16.mxu1 %v4247_v8  ;;  %v1498_v3 = vld [vmem:[%s6789_s4 + $0xb0] sm:$0xff]  ;;  %v1511_v56 = vld [vmem:[%s6789_s4 + $0x118] sm:$0xff] }
 0x1de   :  { %v1162_v41 = vadd.f32 %v1161_v2, %v5717_v40  ;;  %4250 = vmatpush1.bf16.msra.mxu1 %v4249_v47  ;;  %1859 = vmatprep.mubr.f32.mxu0 %v1533_v45  ;;  %v1468_v40 = vsel %vm1268_vm2, %v1154_v35, %v1368_v27  ;;  %v1469_v62 = vsel %vm1269_vm3, %v1156_v31, %v1369_v37  ;;  %v1499_v35 = vld [vmem:[%s6789_s4 + $0xb8] sm:$0xff]  ;;  %v1502_v36 = vld [vmem:[%s6789_s4 + $0xd0] sm:$0xff] }
 0x1df   :  { %vm1270_vm4 = vcmp.ge.f32.partialorder %v1160_v19, 0.0  ;;  %v1370_v44 = vmul.f32 0.01, %v1160_v19  ;;  %v1507_v31 = vld [vmem:[%s6789_s4 + $0xf8] sm:$0xff]  ;;  %v1506_v60 = vld [vmem:[%s6789_s4 + $0xf0] sm:$0xff] }
 0x1e0   :  { %vm1271_vm5 = vcmp.ge.f32.partialorder %v1162_v41, 0.0  ;;  %v1371_v21 = vmul.f32 0.01, %v1162_v41  ;;  %v1165_v53 = vpop.f32.mrb[96].mxu0  ;;  %v1510_v63 = vld [vmem:[%s6789_s4 + $0x110] sm:$0xff]  ;;  %v1515_v47 = vld [vmem:[%s6789_s4 + $0x138] sm:$0xff] }
 0x1e1   :  { %v1166_v51 = vadd.f32 %v1165_v53, %v646_v54  ;;  %v1167_v32 = vpop.f32.mrb[97].mxu0  ;;  %1860 = vmatmul.mubr.f32.gmra.mrb[128].mxu0 %v1532_v46  ;;  %v1470_v52 = vsel %vm1270_vm4, %v1160_v19, %v1370_v44  ;;  %v1514_v8 = vld [vmem:[%s6789_s4 + $0x130] sm:$0xff]  ;;  %v1519_v45 = vld [vmem:[%s6789_s4 + $0x158] sm:$0xff] }
 0x1e2   :  { %v1168_v55 = vadd.f32 %v1167_v32, %v646_v54  ;;  %1865 = vmatprep.mubr.f32.mxu0 %v1537_v0  ;;  %v1471_v49 = vsel %vm1271_vm5, %v1162_v41, %v1371_v21  ;;  %v4253_v6 = vpack.c.bf16 %v1470_v52, %v1468_v40  ;;  %v1518_v42 = vld [vmem:[%s6789_s4 + $0x150] sm:$0xff]  ;;  %v1523_v27 = vld [vmem:[%s6789_s4 + $0x178] sm:$0xff] }
 0x1e3   :  { %v4251_v38 = vpack.c.bf16 %v1471_v49, %v1469_v62  ;;  %v1372_v12 = vmul.f32 0.01, %v1166_v51  ;;  %vm1272_vm6 = vcmp.ge.f32.partialorder %v1166_v51, 0.0  ;;  %v1522_v19 = vld [vmem:[%s6789_s4 + $0x170] sm:$0xff]  ;;  %v1527_v2 = vld [vmem:[%s6789_s4 + $0x198] sm:$0xff] }
 0x1e4   :  { %v1171_v9 = vpop.f32.mrb[98].mxu0  ;;  %v1373_v50 = vmul.f32 0.01, %v1168_v55  ;;  %vm1273_vm8 = vcmp.ge.f32.partialorder %v1168_v55, 0.0  ;;  %v1526_v37 = vld [vmem:[%s6789_s4 + $0x190] sm:$0xff]  ;;  %v1531_v41 = vld [vmem:[%s6789_s4 + $0x1b8] sm:$0xff] }
 0x1e5   :  { %v1172_v13 = vadd.f32 %v1171_v9, %v651_v7  ;;  %v1173_v10 = vpop.f32.mrb[99].mxu0  ;;  %1866 = vmatmul.mubr.f32.gmra.mrb[130].mxu0 %v1536_v17  ;;  %4252 = vmatprep.subr.bf16.mxu1 %v4251_v38  ;;  %v1472_v20 = vsel %vm1272_vm6, %v1166_v51, %v1372_v12  ;;  %v1530_v46 = vld [vmem:[%s6789_s4 + $0x1b0] sm:$0xff]  ;;  %v1535_v44 = vld [vmem:[%s6789_s4 + $0x1d8] sm:$0xff] }
 0x1e6   :  { %v1174_v30 = vadd.f32 %v1173_v10, %v651_v7  ;;  %4254 = vmatpush1.bf16.msra.mxu1 %v4253_v6  ;;  %1871 = vmatprep.mubr.f32.mxu0 %v1541_v1  ;;  %v1473_v16 = vsel %vm1273_vm8, %v1168_v55, %v1373_v50  ;;  %v1534_v0 = vld [vmem:[%s6789_s4 + $0x1d0] sm:$0xff]  ;;  %v1539_v54 = vld [vmem:[%s6789_s4 + $0x1f8] sm:$0xff]  ;;  %v2166_v10 = vld [vmem:[%s6791_s6 + $0x8] sm:$0xff] }
 0x1e7   :  { %vm1274_vm9 = vcmp.ge.f32.partialorder %v1172_v13, 0.0  ;;  %v1374_v18 = vmul.f32 0.01, %v1172_v13  ;;  %v1538_v21 = vld [vmem:[%s6789_s4 + $0x1f0] sm:$0xff]  ;;  %v1543_v53 = vld [vmem:[%s6789_s4 + $0x218] sm:$0xff] }
 0x1e8   :  { %vm1275_vm10 = vcmp.ge.f32.partialorder %v1174_v30, 0.0  ;;  %v1375_v59 = vmul.f32 0.01, %v1174_v30  ;;  %v1542_v51 = vld [vmem:[%s6789_s4 + $0x210] sm:$0xff]  ;;  %v1547_v32 = vld [vmem:[%s6789_s4 + $0x238] sm:$0xff] }
 0x1e9   :  { %1872 = vmatmul.mubr.f32.gmra.mrb[132].mxu0 %v1540_v48  ;;  %v1474_v4 = vsel %vm1274_vm9, %v1172_v13, %v1374_v18  ;;  %v1546_v40 = vld [vmem:[%s6789_s4 + $0x230] sm:$0xff] }
 0x1ea   :  { %1877 = vmatprep.mubr.f32.mxu0 %v1545_v15  ;;  %v1475_v57 = vsel %vm1275_vm10, %v1174_v30, %v1375_v59  ;;  %v4257_v61 = vpack.c.bf16 %v1474_v4, %v1472_v20 }
 0x1eb   :  { %v4255_v23 = vpack.c.bf16 %v1475_v57, %v1473_v16 }
 0x1ed   :  { %1878 = vmatmul.mubr.f32.gmra.mrb[134].mxu0 %v1544_v5  ;;  %4256 = vmatprep.subr.bf16.mxu1 %v4255_v23 }
 0x1ee   :  { %4258 = vmatpush1.bf16.msra.mxu1 %v4257_v61 }
 0x1f1   :  { %1949 = vmatmul.mubr.f32.vlgmr.msra.gmra.mrb[0].mxu1 %v1478_v24 }
 0x1f2   :  { %4026 = vmatprep.mubr.msk.f32.mxu1 %vm1656_vm7, %v1483_v33 }
 0x1f5   :  { %1955 = vmatmul.mubr.f32.gmra.mrb[2].mxu1 %v1482_v39 }
 0x1f6   :  { %4027 = vmatprep.mubr.msk.f32.mxu1 %vm1656_vm7, %v1487_v14 }
 0x1f9   :  { %1961 = vmatmul.mubr.f32.gmra.mrb[4].mxu1 %v1486_v29 }
 0x1fa   :  { %4028 = vmatprep.mubr.msk.f32.mxu1 %vm1656_vm7, %v1491_v43 }
 0x1fd   :  { %1967 = vmatmul.mubr.f32.gmra.mrb[6].mxu1 %v1490_v25 }
 0x1fe   :  { %4029 = vmatprep.mubr.msk.f32.mxu1 %vm1656_vm7, %v1495_v58 }
 0x201   :  { %1973 = vmatmul.mubr.f32.gmra.mrb[8].mxu1 %v1494_v34 }
 0x202   :  { %4030 = vmatprep.mubr.msk.f32.mxu1 %vm1656_vm7, %v1499_v35 }
 0x205   :  { %1979 = vmatmul.mubr.f32.gmra.mrb[10].mxu1 %v1498_v3 }
 0x206   :  { %4031 = vmatprep.mubr.msk.f32.mxu1 %vm1656_vm7, %v1503_v26  ;;  %v1569_v26 = vpop.permute.xlu0 %1568 }
 0x209   :  { %1985 = vmatmul.mubr.f32.gmra.mrb[12].mxu1 %v1502_v36 }
 0x20a   :  { %4032 = vmatprep.mubr.msk.f32.mxu1 %vm1656_vm7, %v1507_v31 }
 0x20d   :  { %1991 = vmatmul.mubr.f32.gmra.mrb[14].mxu1 %v1506_v60 }
 0x20e   :  { %4033 = vmatprep.mubr.msk.f32.mxu1 %vm1656_vm7, %v1511_v56 }
 0x211   :  { %1997 = vmatmul.mubr.f32.gmra.mrb[16].mxu1 %v1510_v63 }
 0x212   :  { %4034 = vmatprep.mubr.msk.f32.mxu1 %vm1656_vm7, %v1515_v47  ;;  %v1574_v47 = vpop.permute.xlu1 %1573 }
 0x215   :  { %2003 = vmatmul.mubr.f32.gmra.mrb[18].mxu1 %v1514_v8 }
 0x216   :  { %4035 = vmatprep.mubr.msk.f32.mxu1 %vm1656_vm7, %v1519_v45 }
 0x219   :  { %2009 = vmatmul.mubr.f32.gmra.mrb[20].mxu1 %v1518_v42 }
 0x21a   :  { %4036 = vmatprep.mubr.msk.f32.mxu1 %vm1656_vm7, %v1523_v27 }
 0x21d   :  { %2015 = vmatmul.mubr.f32.gmra.mrb[22].mxu1 %v1522_v19 }
 0x21e   :  { %4037 = vmatprep.mubr.msk.f32.mxu1 %vm1656_vm7, %v1527_v2 }
 0x221   :  { %2021 = vmatmul.mubr.f32.gmra.mrb[24].mxu1 %v1526_v37 }
 0x222   :  { %4038 = vmatprep.mubr.msk.f32.mxu1 %vm1656_vm7, %v1531_v41  ;;  %v1579_v41 = vpop.permute.xlu0 %1578 }
 0x225   :  { %2027 = vmatmul.mubr.f32.gmra.mrb[26].mxu1 %v1530_v46 }
 0x226   :  { %4039 = vmatprep.mubr.msk.f32.mxu1 %vm1656_vm7, %v1535_v44 }
 0x229   :  { %2033 = vmatmul.mubr.f32.gmra.mrb[28].mxu1 %v1534_v0 }
 0x22a   :  { %4040 = vmatprep.mubr.msk.f32.mxu1 %vm1656_vm7, %v1539_v54 }
 0x22d   :  { %2039 = vmatmul.mubr.f32.gmra.mrb[30].mxu1 %v1538_v21 }
 0x22e   :  { %4041 = vmatprep.mubr.msk.f32.mxu1 %vm1656_vm7, %v1543_v53 }
 0x231   :  { %2045 = vmatmul.mubr.f32.gmra.mrb[32].mxu1 %v1542_v51 }
 0x232   :  { %4042 = vmatprep.mubr.msk.f32.mxu1 %vm1656_vm7, %v1547_v32 }
 0x235   :  { %2051 = vmatmul.mubr.f32.gmra.mrb[34].mxu1 %v1546_v40 }
 0x236   :  { %4043 = vmatprep.mubr.msk.f32.mxu1 %vm1656_vm7, %v2166_v10 }
 0x27c   :  { %v1777_v52 = vpop.f32.mrb[100].mxu0 }
 0x27d   :  { %v1779_v55 = vpop.f32.mrb[101].mxu0  ;;  %v1778_v36 = vadd.f32 %v1777_v52, %v1569_v26 }
 0x27e   :  { %v1780_v31 = vadd.f32 %v1779_v55, %v1569_v26 }
 0x280   :  { %v1783_v17 = vpop.f32.mrb[102].mxu0 }
 0x281   :  { %v1785_v62 = vpop.f32.mrb[103].mxu0  ;;  %v1784_v45 = vadd.f32 %v1783_v17, %v1574_v47  ;;  %v1584_v17 = vpop.permute.xlu1 %1583 }
 0x282   :  { %v1786_v42 = vadd.f32 %v1785_v62, %v1574_v47 }
 0x284   :  { %v1789_v49 = vpop.f32.mrb[104].mxu0 }
 0x285   :  { %v1791_v6 = vpop.f32.mrb[105].mxu0  ;;  %v1790_v0 = vadd.f32 %v1789_v49, %v1579_v41 }
 0x286   :  { %v1792_v21 = vadd.f32 %v1791_v6, %v1579_v41 }
 0x288   :  { %v5986_v38 = vpop.f32.mrb[106].mxu0 }
 0x289   :  { %v5988_v1 = vpop.f32.mrb[107].mxu0 }
 0x28a   :  { %v1798_v49 = vadd.f32 %v5988_v1, %v1584_v17 }
 0x28c   :  { %v5990_v7 = vpop.f32.mrb[108].mxu0 }
 0x28d   :  { %v5992_v9 = vpop.f32.mrb[109].mxu0 }
 0x290   :  { %v5994_v12 = vpop.f32.mrb[110].mxu0 }
 0x291   :  { %v5996_v13 = vpop.f32.mrb[111].mxu0 }
 0x294   :  { %v6002_v50 = vpop.f32.mrb[112].mxu0 }
 0x295   :  { %v6004_v30 = vpop.f32.mrb[113].mxu0 }
 0x298   :  { %v6006_v48 = vpop.f32.mrb[114].mxu0 }
 0x299   :  { %v6008_v18 = vpop.f32.mrb[115].mxu0 }
 0x29c   :  { %v6010_v15 = vpop.f32.mrb[116].mxu0 }
 0x29d   :  { %v6012_v59 = vpop.f32.mrb[117].mxu0 }
 0x2a0   :  { %v6014_v20 = vpop.f32.mrb[118].mxu0 }
 0x2a1   :  { %v6016_v4 = vpop.f32.mrb[119].mxu0 }
 0x2a4   :  { %v6018_v5 = vpop.f32.mrb[120].mxu0 }
 0x2a5   :  { %v6020_v16 = vpop.f32.mrb[121].mxu0 }
 0x2a8   :  { %v6022_v57 = vpop.f32.mrb[122].mxu0 }
 0x2a9   :  { %v6024_v61 = vpop.f32.mrb[123].mxu0 }
 0x2ac   :  { %v6026_v23 = vpop.f32.mrb[124].mxu0 }
 0x2ad   :  { %v6028_v24 = vpop.f32.mrb[125].mxu0 }
 0x2b0   :  { %v6030_v33 = vpop.f32.mrb[126].mxu0 }
 0x2b1   :  { %v6032_v39 = vpop.f32.mrb[127].mxu0 }
 0x2b4   :  { %v6034_v14 = vpop.f32.mrb[128].mxu0 }
 0x2b5   :  { %v6036_v29 = vpop.f32.mrb[129].mxu0 }
 0x2b8   :  { %v6038_v43 = vpop.f32.mrb[130].mxu0 }
 0x2b9   :  { %v6040_v25 = vpop.f32.mrb[131].mxu0 }
 0x2bc   :  { %v6042_v58 = vpop.f32.mrb[132].mxu0 }
 0x2bd   :  { %v6044_v34 = vpop.f32.mrb[133].mxu0 }
 0x2c0   :  { %v6046_v35 = vpop.f32.mrb[134].mxu0 }
 0x2c1   :  { %v6048_v3 = vpop.f32.mrb[135].mxu0 }
 0x2c4   :  { %v1950_v60 = vpop.f32.mrb[0].mxu1 }
 0x2c5   :  { %v1951_v56 = vadd.f32 %v1950_v60, %v1778_v36  ;;  %v1952_v63 = vpop.f32.mrb[1].mxu1 }
 0x2c6   :  { %v1953_v8 = vadd.f32 %v1952_v63, %v1780_v31  ;;  %v1796_v31 = vadd.f32 %v5986_v38, %v1584_v17 }
 0x2c7   :  { %v2093_v19 = vmul.f32 0.01, %v1951_v56  ;;  %vm2057_vm11 = vcmp.ge.f32.partialorder %v1951_v56, 0.0 }
 0x2c8   :  { %v1956_v27 = vpop.f32.mrb[2].mxu1  ;;  %v2094_v46 = vmul.f32 0.01, %v1953_v8  ;;  %vm2058_vm12 = vcmp.ge.f32.partialorder %v1953_v8, 0.0 }
 0x2c9   :  { %v1957_v2 = vadd.f32 %v1956_v27, %v1784_v45  ;;  %v1958_v37 = vpop.f32.mrb[3].mxu1  ;;  %v2129_v32 = vsel %vm2057_vm11, %v1951_v56, %v2093_v19 }
 0x2ca   :  { %v1959_v44 = vadd.f32 %v1958_v37, %v1786_v42  ;;  %v2130_v26 = vsel %vm2058_vm12, %v1953_v8, %v2094_v46  ;;  %v1589_v42 = vpop.permute.xlu0 %1588 }
 0x2cb   :  { %vm2059_vm13 = vcmp.ge.f32.partialorder %v1957_v2, 0.0  ;;  %v2095_v54 = vmul.f32 0.01, %v1957_v2  ;;  %v1802_v19 = vadd.f32 %v5990_v7, %v1589_v42  ;;  %v1804_v38 = vadd.f32 %v5992_v9, %v1589_v42 }
 0x2cc   :  { %vm2060_vm14 = vcmp.ge.f32.partialorder %v1959_v44, 0.0  ;;  %v2096_v53 = vmul.f32 0.01, %v1959_v44  ;;  %v1962_v51 = vpop.f32.mrb[4].mxu1 }
 0x2cd   :  { %v2131_v40 = vsel %vm2059_vm13, %v1957_v2, %v2095_v54  ;;  %v1963_v52 = vadd.f32 %v1962_v51, %v1790_v0  ;;  %v1964_v55 = vpop.f32.mrb[5].mxu1  ;;  %v1594_v0 = vpop.permute.xlu1 %1593 }
 0x2ce   :  { %v4261_v62 = vpack.c.bf16 %v2131_v40, %v2129_v32  ;;  %v1965_v10 = vadd.f32 %v1964_v55, %v1792_v21  ;;  %v2132_v36 = vsel %vm2060_vm14, %v1959_v44, %v2096_v53  ;;  %v1808_v32 = vadd.f32 %v5994_v12, %v1594_v0 }
 0x2cf   :  { %v4259_v60 = vpack.c.bf16 %v2132_v36, %v2130_v26  ;;  %v2097_v47 = vmul.f32 0.01, %v1963_v52  ;;  %vm2061_vm15 = vcmp.ge.f32.partialorder %v1963_v52, 0.0  ;;  %v1810_v40 = vadd.f32 %v5996_v13, %v1594_v0  ;;  %v1599_v26 = vpop.permute.xlu0 %1598 }
 0x2d0   :  { %v1968_v63 = vpop.f32.mrb[6].mxu1  ;;  %v2098_v56 = vmul.f32 0.01, %v1965_v10  ;;  %vm2062_vm0 = vcmp.ge.f32.partialorder %v1965_v10, 0.0  ;;  %v1816_v12 = vadd.f32 %v6004_v30, %v1599_v26 }
 0x2d1   :  { %v1969_v6 = vadd.f32 %v1968_v63, %v1796_v31  ;;  %v1970_v45 = vpop.f32.mrb[7].mxu1  ;;  %4260 = vmatprep.subr.bf16.mxu1 %v4259_v60  ;;  %v2133_v37 = vsel %vm2061_vm15, %v1963_v52, %v2097_v47  ;;  %v1814_v31 = vadd.f32 %v6002_v50, %v1599_v26 }
 0x2d2   :  { %v1971_v27 = vadd.f32 %v1970_v45, %v1798_v49  ;;  %4262 = vmatpush1.bf16.msra.mxu1 %v4261_v62  ;;  %v2134_v53 = vsel %vm2062_vm0, %v1965_v10, %v2098_v56  ;;  %v1604_v45 = vpop.permute.xlu1 %1603 }
 0x2d3   :  { %vm2063_vm1 = vcmp.ge.f32.partialorder %v1969_v6, 0.0  ;;  %v2099_v8 = vmul.f32 0.01, %v1969_v6 }
 0x2d4   :  { %vm2064_vm2 = vcmp.ge.f32.partialorder %v1971_v27, 0.0  ;;  %v2100_v2 = vmul.f32 0.01, %v1971_v27  ;;  %v1974_v1 = vpop.f32.mrb[8].mxu1 }
 0x2d5   :  { %v2135_v41 = vsel %vm2063_vm1, %v1969_v6, %v2099_v8  ;;  %v1975_v46 = vadd.f32 %v1974_v1, %v1802_v19  ;;  %v1976_v44 = vpop.f32.mrb[9].mxu1  ;;  %v1820_v8 = vadd.f32 %v6006_v48, %v1604_v45 }
 0x2d6   :  { %v4265_v54 = vpack.c.bf16 %v2135_v41, %v2133_v37  ;;  %v1977_v21 = vadd.f32 %v1976_v44, %v1804_v38  ;;  %v2136_v51 = vsel %vm2064_vm2, %v1971_v27, %v2100_v2  ;;  %v1822_v38 = vadd.f32 %v6008_v18, %v1604_v45  ;;  %v1609_v41 = vpop.permute.xlu0 %1608 }
 0x2d7   :  { %v4263_v7 = vpack.c.bf16 %v2136_v51, %v2134_v53  ;;  %v2101_v17 = vmul.f32 0.01, %v1975_v46  ;;  %vm2065_vm3 = vcmp.ge.f32.partialorder %v1975_v46, 0.0  ;;  %v1826_v0 = vadd.f32 %v6010_v15, %v1609_v41 }
 0x2d8   :  { %v1980_v55 = vpop.f32.mrb[10].mxu1  ;;  %v2102_v52 = vmul.f32 0.01, %v1977_v21  ;;  %vm2066_vm4 = vcmp.ge.f32.partialorder %v1977_v21, 0.0  ;;  %v1828_v48 = vadd.f32 %v6012_v59, %v1609_v41 }
 0x2d9   :  { %v1981_v9 = vadd.f32 %v1980_v55, %v1808_v32  ;;  %v1982_v62 = vpop.f32.mrb[11].mxu1  ;;  %4264 = vmatprep.subr.bf16.mxu1 %v4263_v7  ;;  %v2137_v49 = vsel %vm2065_vm3, %v1975_v46, %v2101_v17 }
 0x2da   :  { %v1983_v36 = vadd.f32 %v1982_v62, %v1810_v40  ;;  %4266 = vmatpush1.bf16.msra.mxu1 %v4265_v54  ;;  %v2138_v27 = vsel %vm2066_vm4, %v1977_v21, %v2102_v52  ;;  %v1614_v40 = vpop.permute.xlu1 %1613 }
 0x2db   :  { %vm2067_vm5 = vcmp.ge.f32.partialorder %v1981_v9, 0.0  ;;  %v2103_v10 = vmul.f32 0.01, %v1981_v9  ;;  %v1832_v26 = vadd.f32 %v6014_v20, %v1614_v40  ;;  %v1834_v52 = vadd.f32 %v6016_v4, %v1614_v40 }
 0x2dc   :  { %vm2068_vm6 = vcmp.ge.f32.partialorder %v1983_v36, 0.0  ;;  %v2104_v60 = vmul.f32 0.01, %v1983_v36  ;;  %v1986_v13 = vpop.f32.mrb[12].mxu1 }
 0x2dd   :  { %v2139_v63 = vsel %vm2067_vm5, %v1981_v9, %v2103_v10  ;;  %v1987_v47 = vadd.f32 %v1986_v13, %v1814_v31  ;;  %v1988_v6 = vpop.f32.mrb[13].mxu1 }
 0x2de   :  { %v4269_v42 = vpack.c.bf16 %v2139_v63, %v2137_v49  ;;  %v1989_v56 = vadd.f32 %v1988_v6, %v1816_v12  ;;  %v2140_v19 = vsel %vm2068_vm6, %v1983_v36, %v2104_v60  ;;  %v1619_v12 = vpop.permute.xlu0 %1618 }
 0x2df   :  { %v4267_v50 = vpack.c.bf16 %v2140_v19, %v2138_v27  ;;  %v2105_v1 = vmul.f32 0.01, %v1987_v47  ;;  %vm2069_vm8 = vcmp.ge.f32.partialorder %v1987_v47, 0.0  ;;  %v1838_v49 = vadd.f32 %v6018_v5, %v1619_v12  ;;  %v1624_v27 = vpop.permute.xlu1 %1623 }
 0x2e0   :  { %v1992_v2 = vpop.f32.mrb[14].mxu1  ;;  %v2106_v46 = vmul.f32 0.01, %v1989_v56  ;;  %vm2070_vm9 = vcmp.ge.f32.partialorder %v1989_v56, 0.0  ;;  %v1840_v20 = vadd.f32 %v6020_v16, %v1619_v12 }
 0x2e1   :  { %v1993_v30 = vadd.f32 %v1992_v2, %v1820_v8  ;;  %v1994_v37 = vpop.f32.mrb[15].mxu1  ;;  %4268 = vmatprep.subr.bf16.mxu1 %v4267_v50  ;;  %v2141_v53 = vsel %vm2069_vm8, %v1987_v47, %v2105_v1  ;;  %v1844_v2 = vadd.f32 %v6022_v57, %v1624_v27  ;;  %v1846_v1 = vadd.f32 %v6024_v61, %v1624_v27 }
 0x2e2   :  { %v1995_v44 = vadd.f32 %v1994_v37, %v1822_v38  ;;  %4270 = vmatpush1.bf16.msra.mxu1 %v4269_v42  ;;  %v2142_v9 = vsel %vm2070_vm9, %v1989_v56, %v2106_v46  ;;  %v1629_v46 = vpop.permute.xlu0 %1628 }
 0x2e3   :  { %vm2071_vm10 = vcmp.ge.f32.partialorder %v1993_v30, 0.0  ;;  %v2107_v54 = vmul.f32 0.01, %v1993_v30  ;;  %v1852_v57 = vadd.f32 %v6028_v24, %v1629_v46 }
 0x2e4   :  { %vm2072_vm11 = vcmp.ge.f32.partialorder %v1995_v44, 0.0  ;;  %v2108_v21 = vmul.f32 0.01, %v1995_v44  ;;  %v1998_v18 = vpop.f32.mrb[16].mxu1 }
 0x2e5   :  { %v2143_v51 = vsel %vm2071_vm10, %v1993_v30, %v2107_v54  ;;  %v1999_v32 = vadd.f32 %v1998_v18, %v1826_v0  ;;  %v2000_v7 = vpop.f32.mrb[17].mxu1  ;;  %v1850_v54 = vadd.f32 %v6026_v23, %v1629_v46 }
 0x2e6   :  { %v4273_v55 = vpack.c.bf16 %v2143_v51, %v2141_v53  ;;  %v2001_v17 = vadd.f32 %v2000_v7, %v1828_v48  ;;  %v2144_v62 = vsel %vm2072_vm11, %v1995_v44, %v2108_v21  ;;  %v1634_v7 = vpop.permute.xlu1 %1633 }
 0x2e7   :  { %v4271_v15 = vpack.c.bf16 %v2144_v62, %v2142_v9  ;;  %v2109_v31 = vmul.f32 0.01, %v1999_v32  ;;  %vm2073_vm12 = vcmp.ge.f32.partialorder %v1999_v32, 0.0  ;;  %v1856_v62 = vadd.f32 %v6030_v33, %v1634_v7 }
 0x2e8   :  { %v2004_v36 = vpop.f32.mrb[18].mxu1  ;;  %v2110_v60 = vmul.f32 0.01, %v2001_v17  ;;  %vm2074_vm13 = vcmp.ge.f32.partialorder %v2001_v17, 0.0 }
 0x2e9   :  { %v2005_v59 = vadd.f32 %v2004_v36, %v1832_v26  ;;  %v2006_v10 = vpop.f32.mrb[19].mxu1  ;;  %4272 = vmatprep.subr.bf16.mxu1 %v4271_v15  ;;  %v2145_v6 = vsel %vm2073_vm12, %v1999_v32, %v2109_v31  ;;  %v1858_v26 = vadd.f32 %v6032_v39, %v1634_v7  ;;  %v1639_v31 = vpop.permute.xlu0 %1638 }
 0x2ea   :  { %v2007_v13 = vadd.f32 %v2006_v10, %v1834_v52  ;;  %4274 = vmatpush1.bf16.msra.mxu1 %v4273_v55  ;;  %v2146_v50 = vsel %vm2074_vm13, %v2001_v17, %v2110_v60  ;;  %v1862_v12 = vadd.f32 %v6034_v14, %v1639_v31  ;;  %v1864_v33 = vadd.f32 %v6036_v29, %v1639_v31  ;;  %v2170_v31 = vld [vmem:[%s6791_s6 + $0x28] sm:$0xff] }
 0x2eb   :  { %vm2075_vm14 = vcmp.ge.f32.partialorder %v2005_v59, 0.0  ;;  %v2111_v63 = vmul.f32 0.01, %v2005_v59 }
 0x2ec   :  { %vm2076_vm15 = vcmp.ge.f32.partialorder %v2007_v13, 0.0  ;;  %v2112_v47 = vmul.f32 0.01, %v2007_v13  ;;  %v2010_v4 = vpop.f32.mrb[20].mxu1 }
 0x2ed   :  { %v2147_v45 = vsel %vm2075_vm14, %v2005_v59, %v2111_v63  ;;  %v2011_v42 = vadd.f32 %v2010_v4, %v1838_v49  ;;  %v2012_v56 = vpop.f32.mrb[21].mxu1  ;;  %v1644_v4 = vpop.permute.xlu1 %1643 }
 0x2ee   :  { %v4277_v19 = vpack.c.bf16 %v2147_v45, %v2145_v6  ;;  %v2013_v8 = vadd.f32 %v2012_v56, %v1840_v20  ;;  %v2148_v38 = vsel %vm2076_vm15, %v2007_v13, %v2112_v47  ;;  %v1868_v27 = vadd.f32 %v6038_v43, %v1644_v4 }
 0x2ef   :  { %v4275_v5 = vpack.c.bf16 %v2148_v38, %v2146_v50  ;;  %v2113_v37 = vmul.f32 0.01, %v2011_v42  ;;  %vm2077_vm0 = vcmp.ge.f32.partialorder %v2011_v42, 0.0 }
 0x2f0   :  { %v2016_v30 = vpop.f32.mrb[22].mxu1  ;;  %v2114_v44 = vmul.f32 0.01, %v2013_v8  ;;  %vm2078_vm1 = vcmp.ge.f32.partialorder %v2013_v8, 0.0 }
 0x2f1   :  { %v2017_v16 = vadd.f32 %v2016_v30, %v1844_v2  ;;  %v2018_v41 = vpop.f32.mrb[23].mxu1  ;;  %4276 = vmatprep.subr.bf16.mxu1 %v4275_v5  ;;  %v2149_v18 = vsel %vm2077_vm0, %v2011_v42, %v2113_v37  ;;  %v1649_v2 = vpop.permute.xlu0 %1648 }
 0x2f2   :  { %v2019_v0 = vadd.f32 %v2018_v41, %v1846_v1  ;;  %4278 = vmatpush1.bf16.msra.mxu1 %v4277_v19  ;;  %v2150_v17 = vsel %vm2078_vm1, %v2013_v8, %v2114_v44  ;;  %v1870_v19 = vadd.f32 %v6040_v25, %v1644_v4  ;;  %v1874_v30 = vadd.f32 %v6042_v58, %v1649_v2  ;;  %v2182_v4 = vld [vmem:[%s6791_s6 + $0x88] sm:$0xff] }
 0x2f3   :  { %vm2079_vm2 = vcmp.ge.f32.partialorder %v2017_v16, 0.0  ;;  %v2115_v48 = vmul.f32 0.01, %v2017_v16  ;;  %v1876_v43 = vadd.f32 %v6044_v34, %v1649_v2  ;;  %v2194_v2 = vld [vmem:[%s6791_s6 + $0xe8] sm:$0xff] }
 0x2f4   :  { %vm2080_vm3 = vcmp.ge.f32.partialorder %v2019_v0, 0.0  ;;  %v2116_v21 = vmul.f32 0.01, %v2019_v0  ;;  %v2022_v61 = vpop.f32.mrb[24].mxu1 }
 0x2f5   :  { %v2151_v53 = vsel %vm2079_vm2, %v2017_v16, %v2115_v48  ;;  %v2023_v51 = vadd.f32 %v2022_v61, %v1850_v54  ;;  %v2024_v32 = vpop.f32.mrb[25].mxu1  ;;  %v1654_v54 = vpop.permute.xlu1 %1653 }
 0x2f6   :  { %v4281_v40 = vpack.c.bf16 %v2151_v53, %v2149_v18  ;;  %v2025_v55 = vadd.f32 %v2024_v32, %v1852_v57  ;;  %v2152_v9 = vsel %vm2080_vm3, %v2019_v0, %v2116_v21  ;;  %v1880_v18 = vadd.f32 %v6046_v35, %v1654_v54 }
 0x2f7   :  { %v4279_v23 = vpack.c.bf16 %v2152_v9, %v2150_v17  ;;  %v2117_v52 = vmul.f32 0.01, %v2023_v51  ;;  %vm2081_vm4 = vcmp.ge.f32.partialorder %v2023_v51, 0.0  ;;  %v1882_v53 = vadd.f32 %v6048_v3, %v1654_v54  ;;  %v2206_v54 = vld [vmem:[%s6791_s6 + $0x148] sm:$0xff] }
 0x2f8   :  { %v2028_v15 = vpop.f32.mrb[26].mxu1  ;;  %v2118_v59 = vmul.f32 0.01, %v2025_v55  ;;  %vm2082_vm5 = vcmp.ge.f32.partialorder %v2025_v55, 0.0 }
 0x2f9   :  { %v2029_v24 = vadd.f32 %v2028_v15, %v1856_v62  ;;  %v2030_v36 = vpop.f32.mrb[27].mxu1  ;;  %4280 = vmatprep.subr.bf16.mxu1 %v4279_v23  ;;  %v2153_v49 = vsel %vm2081_vm4, %v2023_v51, %v2117_v52  ;;  %v2165_v52 = vld [vmem:[%s6791_s6] sm:$0xff] }
 0x2fa   :  { %v2031_v10 = vadd.f32 %v2030_v36, %v1858_v26  ;;  %4282 = vmatpush1.bf16.msra.mxu1 %v4281_v40  ;;  %v2154_v42 = vsel %vm2082_vm5, %v2025_v55, %v2118_v59  ;;  %v2167_v36 = vld [vmem:[%s6791_s6 + $0x10] sm:$0xff]  ;;  %v2169_v59 = vld [vmem:[%s6791_s6 + $0x20] sm:$0xff] }
 0x2fb   :  { %vm2083_vm6 = vcmp.ge.f32.partialorder %v2029_v24, 0.0  ;;  %v2119_v60 = vmul.f32 0.01, %v2029_v24 }
 0x2fc   :  { %vm2084_vm8 = vcmp.ge.f32.partialorder %v2031_v10, 0.0  ;;  %v2120_v13 = vmul.f32 0.01, %v2031_v10  ;;  %v2034_v39 = vpop.f32.mrb[28].mxu1 }
 0x2fd   :  { %v2155_v63 = vsel %vm2083_vm6, %v2029_v24, %v2119_v60  ;;  %v2035_v20 = vadd.f32 %v2034_v39, %v1862_v12  ;;  %v2036_v47 = vpop.f32.mrb[29].mxu1  ;;  %v2168_v24 = vld [vmem:[%s6791_s6 + $0x18] sm:$0xff]  ;;  %v2171_v12 = vld [vmem:[%s6791_s6 + $0x30] sm:$0xff]  ;;  %v2174_v60 = vld [vmem:[%s6791_s6 + $0x48] sm:$0xff] }
 0x2fe   :  { %v4285_v6 = vpack.c.bf16 %v2155_v63, %v2153_v49  ;;  %v2037_v45 = vadd.f32 %v2036_v47, %v1864_v33  ;;  %v2156_v56 = vsel %vm2084_vm8, %v2031_v10, %v2120_v13  ;;  %v2172_v10 = vld [vmem:[%s6791_s6 + $0x38] sm:$0xff]  ;;  %v2173_v33 = vld [vmem:[%s6791_s6 + $0x40] sm:$0xff]  ;;  %v2175_v39 = vld [vmem:[%s6791_s6 + $0x50] sm:$0xff] }
 0x2ff   :  { %v4283_v14 = vpack.c.bf16 %v2156_v56, %v2154_v42  ;;  %v2121_v50 = vmul.f32 0.01, %v2035_v20  ;;  %vm2085_vm9 = vcmp.ge.f32.partialorder %v2035_v20, 0.0  ;;  %v2176_v13 = vld [vmem:[%s6791_s6 + $0x58] sm:$0xff]  ;;  %v2178_v49 = vld [vmem:[%s6791_s6 + $0x68] sm:$0xff]  ;;  %v2177_v63 = vld [vmem:[%s6791_s6 + $0x60] sm:$0xff] }
 0x300   :  { %v2040_v8 = vpop.f32.mrb[30].mxu1  ;;  %v2122_v5 = vmul.f32 0.01, %v2037_v45  ;;  %vm2086_vm10 = vcmp.ge.f32.partialorder %v2037_v45, 0.0  ;;  %v2179_v47 = vld [vmem:[%s6791_s6 + $0x70] sm:$0xff]  ;;  %v2186_v56 = vld [vmem:[%s6791_s6 + $0xa8] sm:$0xff] }
 0x301   :  { %v2041_v29 = vadd.f32 %v2040_v8, %v1868_v27  ;;  %v2042_v38 = vpop.f32.mrb[31].mxu1  ;;  %4284 = vmatprep.subr.bf16.mxu1 %v4283_v14  ;;  %v2157_v41 = vsel %vm2085_vm9, %v2035_v20, %v2121_v50  ;;  %v2180_v20 = vld [vmem:[%s6791_s6 + $0x78] sm:$0xff]  ;;  %v2183_v42 = vld [vmem:[%s6791_s6 + $0x90] sm:$0xff]  ;;  %v2185_v27 = vld [vmem:[%s6791_s6 + $0xa0] sm:$0xff] }
 0x302   :  { %v2043_v1 = vadd.f32 %v2042_v38, %v1870_v19  ;;  %4286 = vmatpush1.bf16.msra.mxu1 %v4285_v6  ;;  %v2158_v21 = vsel %vm2086_vm10, %v2037_v45, %v2122_v5  ;;  %v2181_v6 = vld [vmem:[%s6791_s6 + $0x80] sm:$0xff]  ;;  %v2184_v45 = vld [vmem:[%s6791_s6 + $0x98] sm:$0xff]  ;;  %v2187_v19 = vld [vmem:[%s6791_s6 + $0xb0] sm:$0xff] }
 0x303   :  { %vm2087_vm11 = vcmp.ge.f32.partialorder %v2041_v29, 0.0  ;;  %v2123_v37 = vmul.f32 0.01, %v2041_v29  ;;  %v2188_v14 = vld [vmem:[%s6791_s6 + $0xb8] sm:$0xff]  ;;  %v2190_v8 = vld [vmem:[%s6791_s6 + $0xc8] sm:$0xff]  ;;  %v2189_v50 = vld [vmem:[%s6791_s6 + $0xc0] sm:$0xff] }
 0x304   :  { %vm2088_vm12 = vcmp.ge.f32.partialorder %v2043_v1, 0.0  ;;  %v2124_v16 = vmul.f32 0.01, %v2043_v1  ;;  %v2046_v25 = vpop.f32.mrb[32].mxu1  ;;  %v2191_v38 = vld [vmem:[%s6791_s6 + $0xd0] sm:$0xff]  ;;  %v2193_v5 = vld [vmem:[%s6791_s6 + $0xe0] sm:$0xff] }
 0x305   :  { %v2159_v46 = vsel %vm2087_vm11, %v2041_v29, %v2123_v37  ;;  %v2047_v44 = vadd.f32 %v2046_v25, %v1874_v30  ;;  %v2048_v0 = vpop.f32.mrb[33].mxu1  ;;  %v2192_v29 = vld [vmem:[%s6791_s6 + $0xd8] sm:$0xff]  ;;  %v2195_v30 = vld [vmem:[%s6791_s6 + $0xf0] sm:$0xff]  ;;  %v2198_v37 = vld [vmem:[%s6791_s6 + $0x108] sm:$0xff] }
 0x306   :  { %v4289_v48 = vpack.c.bf16 %v2159_v46, %v2157_v41  ;;  %v2049_v57 = vadd.f32 %v2048_v0, %v1876_v43  ;;  %v2160_v61 = vsel %vm2088_vm12, %v2043_v1, %v2124_v16  ;;  %v2196_v1 = vld [vmem:[%s6791_s6 + $0xf8] sm:$0xff]  ;;  %v2197_v43 = vld [vmem:[%s6791_s6 + $0x100] sm:$0xff]  ;;  %v2199_v25 = vld [vmem:[%s6791_s6 + $0x110] sm:$0xff] }
 0x307   :  { %v4287_v58 = vpack.c.bf16 %v2160_v61, %v2158_v21  ;;  %v2125_v32 = vmul.f32 0.01, %v2047_v44  ;;  %vm2089_vm13 = vcmp.ge.f32.partialorder %v2047_v44, 0.0  ;;  %v2200_v16 = vld [vmem:[%s6791_s6 + $0x118] sm:$0xff]  ;;  %v2202_v41 = vld [vmem:[%s6791_s6 + $0x128] sm:$0xff]  ;;  %v2201_v46 = vld [vmem:[%s6791_s6 + $0x120] sm:$0xff] }
 0x308   :  { %v2052_v51 = vpop.f32.mrb[34].mxu1  ;;  %v2126_v40 = vmul.f32 0.01, %v2049_v57  ;;  %vm2090_vm14 = vcmp.ge.f32.partialorder %v2049_v57, 0.0  ;;  %v2203_v0 = vld [vmem:[%s6791_s6 + $0x130] sm:$0xff]  ;;  %v2210_v61 = vld [vmem:[%s6791_s6 + $0x168] sm:$0xff] }
 0x309   :  { %v2053_v34 = vadd.f32 %v2052_v51, %v1880_v18  ;;  %v2054_v7 = vpop.f32.mrb[35].mxu1  ;;  %4288 = vmatprep.subr.bf16.mxu1 %v4287_v58  ;;  %v2161_v62 = vsel %vm2089_vm13, %v2047_v44, %v2125_v32  ;;  %v2204_v44 = vld [vmem:[%s6791_s6 + $0x138] sm:$0xff]  ;;  %v2207_v21 = vld [vmem:[%s6791_s6 + $0x150] sm:$0xff]  ;;  %v2209_v18 = vld [vmem:[%s6791_s6 + $0x160] sm:$0xff] }
 0x30a   :  { %v2055_v55 = vadd.f32 %v2054_v7, %v1882_v53  ;;  %4290 = vmatpush1.bf16.msra.mxu1 %v4289_v48  ;;  %v2162_v26 = vsel %vm2090_vm14, %v2049_v57, %v2126_v40  ;;  %v2205_v48 = vld [vmem:[%s6791_s6 + $0x140] sm:$0xff]  ;;  %v2208_v57 = vld [vmem:[%s6791_s6 + $0x158] sm:$0xff]  ;;  %v2211_v53 = vld [vmem:[%s6791_s6 + $0x170] sm:$0xff] }
 0x30b   :  { %vm2091_vm15 = vcmp.ge.f32.partialorder %v2053_v34, 0.0  ;;  %v2127_v17 = vmul.f32 0.01, %v2053_v34  ;;  %v2212_v58 = vld [vmem:[%s6791_s6 + $0x178] sm:$0xff]  ;;  %v2214_v51 = vld [vmem:[%s6791_s6 + $0x188] sm:$0xff]  ;;  %v2213_v32 = vld [vmem:[%s6791_s6 + $0x180] sm:$0xff] }
 0x30c   :  { %vm2092_vm0 = vcmp.ge.f32.partialorder %v2055_v55, 0.0  ;;  %v2128_v9 = vmul.f32 0.01, %v2055_v55  ;;  %v2215_v7 = vld [vmem:[%s6791_s6 + $0x190] sm:$0xff]  ;;  %v2218_v40 = vld [vmem:[%s6791_s6 + $0x1a8] sm:$0xff] }
 0x30d   :  { %v2163_v23 = vsel %vm2091_vm15, %v2053_v34, %v2127_v17  ;;  %v2216_v34 = vld [vmem:[%s6791_s6 + $0x198] sm:$0xff] }
 0x30e   :  { %v4293_v35 = vpack.c.bf16 %v2163_v23, %v2161_v62  ;;  %v2164_v15 = vsel %vm2092_vm0, %v2055_v55, %v2128_v9  ;;  %v2217_v55 = vld [vmem:[%s6791_s6 + $0x1a0] sm:$0xff]  ;;  %v2220_v17 = vld [vmem:[%s6791_s6 + $0x1b8] sm:$0xff]  ;;  %v2219_v9 = vld [vmem:[%s6791_s6 + $0x1b0] sm:$0xff] }
 0x30f   :  { %v4291_v3 = vpack.c.bf16 %v2164_v15, %v2162_v26  ;;  %v2222_v62 = vld [vmem:[%s6791_s6 + $0x1c8] sm:$0xff]  ;;  %v2221_v23 = vld [vmem:[%s6791_s6 + $0x1c0] sm:$0xff]  ;;  %v2223_v26 = vld [vmem:[%s6791_s6 + $0x1d0] sm:$0xff] }
 0x310   :  { %v2226_v15 = vld [vmem:[%s6791_s6 + $0x1e8] sm:$0xff] }
 0x311   :  { %4292 = vmatprep.subr.bf16.mxu1 %v4291_v3  ;;  %v2225_v3 = vld [vmem:[%s6791_s6 + $0x1e0] sm:$0xff] }
 0x312   :  { %4294 = vmatpush1.bf16.msra.mxu1 %v4293_v35  ;;  %v2224_v35 = vld [vmem:[%s6791_s6 + $0x1d8] sm:$0xff] }
 0x315   :  { %2934 = vmatmul.mubr.f32.vlgmr.msra.gmra.mrb[36].mxu1 %v2165_v52  ;;  %v2228_v52 = vld [vmem:[%s6791_s6 + $0x1f8] sm:$0xff] }
 0x316   :  { %4044 = vmatprep.mubr.msk.f32.mxu1 %vm1656_vm7, %v2168_v24  ;;  %v2227_v24 = vld [vmem:[%s6791_s6 + $0x1f0] sm:$0xff] }
 0x319   :  { %2940 = vmatmul.mubr.f32.gmra.mrb[38].mxu1 %v2167_v36  ;;  %v2230_v36 = vld [vmem:[%s6791_s6 + $0x208] sm:$0xff] }
 0x31a   :  { %4045 = vmatprep.mubr.msk.f32.mxu1 %vm1656_vm7, %v2170_v31  ;;  %v2229_v31 = vld [vmem:[%s6791_s6 + $0x200] sm:$0xff] }
 0x31d   :  { %2946 = vmatmul.mubr.f32.gmra.mrb[40].mxu1 %v2169_v59  ;;  %v2232_v59 = vld [vmem:[%s6791_s6 + $0x218] sm:$0xff] }
 0x31e   :  { %4046 = vmatprep.mubr.msk.f32.mxu1 %vm1656_vm7, %v2172_v10  ;;  %v2231_v10 = vld [vmem:[%s6791_s6 + $0x210] sm:$0xff] }
 0x321   :  { %2952 = vmatmul.mubr.f32.gmra.mrb[42].mxu1 %v2171_v12  ;;  %v2234_v12 = vld [vmem:[%s6791_s6 + $0x228] sm:$0xff] }
 0x322   :  { %4047 = vmatprep.mubr.msk.f32.mxu1 %vm1656_vm7, %v2174_v60  ;;  %v2233_v60 = vld [vmem:[%s6791_s6 + $0x220] sm:$0xff] }
 0x325   :  { %2958 = vmatmul.mubr.f32.gmra.mrb[44].mxu1 %v2173_v33  ;;  %v2236_v33 = vld [vmem:[%s6791_s6 + $0x238] sm:$0xff] }
 0x326   :  { %4048 = vmatprep.mubr.msk.f32.mxu1 %vm1656_vm7, %v2176_v13  ;;  %v2235_v13 = vld [vmem:[%s6791_s6 + $0x230] sm:$0xff] }
 0x329   :  { %2964 = vmatmul.mubr.f32.gmra.mrb[46].mxu1 %v2175_v39  ;;  %v2238_v39 = vld [vmem:[%s6791_s6 + $0x248] sm:$0xff] }
 0x32a   :  { %4049 = vmatprep.mubr.msk.f32.mxu1 %vm1656_vm7, %v2178_v49  ;;  %v2237_v49 = vld [vmem:[%s6791_s6 + $0x240] sm:$0xff] }
 0x32d   :  { %2970 = vmatmul.mubr.f32.gmra.mrb[48].mxu1 %v2177_v63  ;;  %v2240_v63 = vld [vmem:[%s6791_s6 + $0x258] sm:$0xff] }
 0x32e   :  { %4050 = vmatprep.mubr.msk.f32.mxu1 %vm1656_vm7, %v2180_v20  ;;  %v2239_v20 = vld [vmem:[%s6791_s6 + $0x250] sm:$0xff] }
 0x331   :  { %2976 = vmatmul.mubr.f32.gmra.mrb[50].mxu1 %v2179_v47  ;;  %v2242_v47 = vld [vmem:[%s6791_s6 + $0x268] sm:$0xff] }
 0x332   :  { %4051 = vmatprep.mubr.msk.f32.mxu1 %vm1656_vm7, %v2182_v4  ;;  %v2241_v4 = vld [vmem:[%s6791_s6 + $0x260] sm:$0xff] }
 0x335   :  { %2982 = vmatmul.mubr.f32.gmra.mrb[52].mxu1 %v2181_v6  ;;  %v2244_v6 = vld [vmem:[%s6791_s6 + $0x278] sm:$0xff] }
 0x336   :  { %4052 = vmatprep.mubr.msk.f32.mxu1 %vm1656_vm7, %v2184_v45  ;;  %v6352_v45 = vpop.permute.xlu0 %2359 }
 0x339   :  { %2988 = vmatmul.mubr.f32.gmra.mrb[54].mxu1 %v2183_v42  ;;  %v2243_v42 = vld [vmem:[%s6791_s6 + $0x270] sm:$0xff] }
 0x33a   :  { %4053 = vmatprep.mubr.msk.f32.mxu1 %vm1656_vm7, %v2186_v56  ;;  %v2246_v56 = vld [vmem:[%s6791_s6 + $0x288] sm:$0xff] }
 0x33d   :  { %2994 = vmatmul.mubr.f32.gmra.mrb[56].mxu1 %v2185_v27  ;;  %v6361_v27 = vpop.permute.xlu1 %2364 }
 0x33e   :  { %4054 = vmatprep.mubr.msk.f32.mxu1 %vm1656_vm7, %v2188_v14  ;;  %v6363_v14 = vpop.permute.xlu0 %2519 }
 0x341   :  { %3000 = vmatmul.mubr.f32.gmra.mrb[58].mxu1 %v2187_v19  ;;  %v2245_v19 = vld [vmem:[%s6791_s6 + $0x280] sm:$0xff] }
 0x342   :  { %4055 = vmatprep.mubr.msk.f32.mxu1 %vm1656_vm7, %v2190_v8  ;;  %v2248_v8 = vld [vmem:[%s6791_s6 + $0x298] sm:$0xff] }
 0x345   :  { %3006 = vmatmul.mubr.f32.gmra.mrb[60].mxu1 %v2189_v50  ;;  %v6372_v50 = vpop.permute.xlu1 %2524 }
 0x346   :  { %4056 = vmatprep.mubr.msk.f32.mxu1 %vm1656_vm7, %v2192_v29  ;;  %v2247_v29 = vld [vmem:[%s6791_s6 + $0x290] sm:$0xff] }
 0x349   :  { %3012 = vmatmul.mubr.f32.gmra.mrb[62].mxu1 %v2191_v38  ;;  %v2250_v38 = vld [vmem:[%s6791_s6 + $0x2a8] sm:$0xff] }
 0x34a   :  { %4057 = vmatprep.mubr.msk.f32.mxu1 %vm1656_vm7, %v2194_v2  ;;  %v6381_v2 = vpop.permute.xlu0 %2369 }
 0x34d   :  { %3018 = vmatmul.mubr.f32.gmra.mrb[64].mxu1 %v2193_v5  ;;  %v2249_v5 = vld [vmem:[%s6791_s6 + $0x2a0] sm:$0xff] }
 0x34e   :  { %4058 = vmatprep.mubr.msk.f32.mxu1 %vm1656_vm7, %v2196_v1  ;;  %v2252_v1 = vld [vmem:[%s6791_s6 + $0x2b8] sm:$0xff] }
 0x351   :  { %3024 = vmatmul.mubr.f32.gmra.mrb[66].mxu1 %v2195_v30  ;;  %v6390_v30 = vpop.permute.xlu1 %2374 }
 0x352   :  { %4059 = vmatprep.mubr.msk.f32.mxu1 %vm1656_vm7, %v2198_v37  ;;  %v6392_v37 = vpop.permute.xlu0 %2529 }
 0x355   :  { %3030 = vmatmul.mubr.f32.gmra.mrb[68].mxu1 %v2197_v43  ;;  %v2251_v43 = vld [vmem:[%s6791_s6 + $0x2b0] sm:$0xff] }
 0x356   :  { %4060 = vmatprep.mubr.msk.f32.mxu1 %vm1656_vm7, %v2200_v16  ;;  %v2254_v16 = vld [vmem:[%s6791_s6 + $0x2c8] sm:$0xff] }
 0x359   :  { %3036 = vmatmul.mubr.f32.gmra.mrb[70].mxu1 %v2199_v25  ;;  %v6401_v25 = vpop.permute.xlu1 %2534 }
 0x35a   :  { %4061 = vmatprep.mubr.msk.f32.mxu1 %vm1656_vm7, %v2202_v41  ;;  %v2253_v41 = vld [vmem:[%s6791_s6 + $0x2c0] sm:$0xff] }
 0x35d   :  { %3042 = vmatmul.mubr.f32.gmra.mrb[72].mxu1 %v2201_v46  ;;  %v2256_v46 = vld [vmem:[%s6791_s6 + $0x2d8] sm:$0xff] }
 0x35e   :  { %4062 = vmatprep.mubr.msk.f32.mxu1 %vm1656_vm7, %v2204_v44  ;;  %v6410_v44 = vpop.permute.xlu0 %2379 }
 0x361   :  { %3048 = vmatmul.mubr.f32.gmra.mrb[74].mxu1 %v2203_v0  ;;  %v2255_v0 = vld [vmem:[%s6791_s6 + $0x2d0] sm:$0xff] }
 0x362   :  { %4063 = vmatprep.mubr.msk.f32.mxu1 %vm1656_vm7, %v2206_v54  ;;  %v2258_v54 = vld [vmem:[%s6791_s6 + $0x2e8] sm:$0xff] }
 0x365   :  { %3054 = vmatmul.mubr.f32.gmra.mrb[76].mxu1 %v2205_v48  ;;  %v6419_v48 = vpop.permute.xlu1 %2384 }
 0x366   :  { %4064 = vmatprep.mubr.msk.f32.mxu1 %vm1656_vm7, %v2208_v57  ;;  %v6421_v57 = vpop.permute.xlu0 %2539 }
 0x369   :  { %3060 = vmatmul.mubr.f32.gmra.mrb[78].mxu1 %v2207_v21  ;;  %v2257_v21 = vld [vmem:[%s6791_s6 + $0x2e0] sm:$0xff] }
 0x36a   :  { %4065 = vmatprep.mubr.msk.f32.mxu1 %vm1656_vm7, %v2210_v61  ;;  %v2260_v61 = vld [vmem:[%s6791_s6 + $0x2f8] sm:$0xff] }
 0x36d   :  { %3066 = vmatmul.mubr.f32.gmra.mrb[80].mxu1 %v2209_v18  ;;  %v6430_v18 = vpop.permute.xlu1 %2544 }
 0x36e   :  { %4066 = vmatprep.mubr.msk.f32.mxu1 %vm1656_vm7, %v2212_v58  ;;  %v2259_v58 = vld [vmem:[%s6791_s6 + $0x2f0] sm:$0xff] }
 0x371   :  { %3072 = vmatmul.mubr.f32.gmra.mrb[82].mxu1 %v2211_v53  ;;  %v2262_v53 = vld [vmem:[%s6791_s6 + $0x308] sm:$0xff] }
 0x372   :  { %4067 = vmatprep.mubr.msk.f32.mxu1 %vm1656_vm7, %v2214_v51  ;;  %v6439_v51 = vpop.permute.xlu0 %2389 }
 0x375   :  { %3078 = vmatmul.mubr.f32.gmra.mrb[84].mxu1 %v2213_v32  ;;  %v2261_v32 = vld [vmem:[%s6791_s6 + $0x300] sm:$0xff] }
 0x376   :  { %4068 = vmatprep.mubr.msk.f32.mxu1 %vm1656_vm7, %v2216_v34  ;;  %v2264_v34 = vld [vmem:[%s6791_s6 + $0x318] sm:$0xff] }
 0x379   :  { %3084 = vmatmul.mubr.f32.gmra.mrb[86].mxu1 %v2215_v7  ;;  %v6448_v7 = vpop.permute.xlu1 %2394 }
 0x37a   :  { %4069 = vmatprep.mubr.msk.f32.mxu1 %vm1656_vm7, %v2218_v40  ;;  %v6450_v40 = vpop.permute.xlu0 %2549 }
 0x37d   :  { %3090 = vmatmul.mubr.f32.gmra.mrb[88].mxu1 %v2217_v55  ;;  %v2263_v55 = vld [vmem:[%s6791_s6 + $0x310] sm:$0xff] }
 0x37e   :  { %4070 = vmatprep.mubr.msk.f32.mxu1 %vm1656_vm7, %v2220_v17  ;;  %v2266_v17 = vld [vmem:[%s6791_s6 + $0x328] sm:$0xff] }
 0x381   :  { %3096 = vmatmul.mubr.f32.gmra.mrb[90].mxu1 %v2219_v9  ;;  %v6459_v9 = vpop.permute.xlu1 %2554 }
 0x382   :  { %4071 = vmatprep.mubr.msk.f32.mxu1 %vm1656_vm7, %v2222_v62  ;;  %v2265_v62 = vld [vmem:[%s6791_s6 + $0x320] sm:$0xff] }
 0x385   :  { %3102 = vmatmul.mubr.f32.gmra.mrb[92].mxu1 %v2221_v23  ;;  %v2268_v23 = vld [vmem:[%s6791_s6 + $0x338] sm:$0xff] }
 0x386   :  { %4072 = vmatprep.mubr.msk.f32.mxu1 %vm1656_vm7, %v2224_v35  ;;  %v6468_v35 = vpop.permute.xlu0 %2399 }
 0x389   :  { %3108 = vmatmul.mubr.f32.gmra.mrb[94].mxu1 %v2223_v26  ;;  %v2267_v26 = vld [vmem:[%s6791_s6 + $0x330] sm:$0xff] }
 0x38a   :  { %4073 = vmatprep.mubr.msk.f32.mxu1 %vm1656_vm7, %v2226_v15  ;;  %v2270_v15 = vld [vmem:[%s6791_s6 + $0x348] sm:$0xff] }
 0x38d   :  { %3114 = vmatmul.mubr.f32.gmra.mrb[96].mxu1 %v2225_v3  ;;  %v6477_v3 = vpop.permute.xlu1 %2404 }
 0x38e   :  { %4074 = vmatprep.mubr.msk.f32.mxu1 %vm1656_vm7, %v2228_v52  ;;  %v6479_v52 = vpop.permute.xlu0 %2559 }
 0x391   :  { %3120 = vmatmul.mubr.f32.gmra.mrb[98].mxu1 %v2227_v24  ;;  %v2269_v24 = vld [vmem:[%s6791_s6 + $0x340] sm:$0xff] }
 0x392   :  { %4075 = vmatprep.mubr.msk.f32.mxu1 %vm1656_vm7, %v2230_v36  ;;  %v2272_v36 = vld [vmem:[%s6791_s6 + $0x358] sm:$0xff] }
 0x395   :  { %3126 = vmatmul.mubr.f32.gmra.mrb[100].mxu1 %v2229_v31  ;;  %v6488_v31 = vpop.permute.xlu1 %2564 }
 0x396   :  { %4076 = vmatprep.mubr.msk.f32.mxu1 %vm1656_vm7, %v2232_v59  ;;  %v2271_v59 = vld [vmem:[%s6791_s6 + $0x350] sm:$0xff] }
 0x399   :  { %3132 = vmatmul.mubr.f32.gmra.mrb[102].mxu1 %v2231_v10  ;;  %v2274_v10 = vld [vmem:[%s6791_s6 + $0x368] sm:$0xff] }
 0x39a   :  { %4077 = vmatprep.mubr.msk.f32.mxu1 %vm1656_vm7, %v2234_v12  ;;  %v6497_v12 = vpop.permute.xlu0 %2409 }
 0x39d   :  { %3138 = vmatmul.mubr.f32.gmra.mrb[104].mxu1 %v2233_v60 }
 0x39e   :  { %4078 = vmatprep.mubr.msk.f32.mxu1 %vm1656_vm7, %v2236_v33 }
 0x3a1   :  { %3144 = vmatmul.mubr.f32.gmra.mrb[106].mxu1 %v2235_v13 }
 0x3a2   :  { %4079 = vmatprep.mubr.msk.f32.mxu1 %vm1656_vm7, %v2238_v39 }
 0x3a5   :  { %3150 = vmatmul.mubr.f32.gmra.mrb[108].mxu1 %v2237_v49  ;;  %v2273_v49 = vld [vmem:[%s6791_s6 + $0x360] sm:$0xff] }
 0x3a6   :  { %4080 = vmatprep.mubr.msk.f32.mxu1 %vm1656_vm7, %v2240_v63  ;;  %v2276_v63 = vld [vmem:[%s6791_s6 + $0x378] sm:$0xff] }
 0x3a9   :  { %3156 = vmatmul.mubr.f32.gmra.mrb[110].mxu1 %v2239_v20  ;;  %v6508_v20 = vpop.permute.xlu1 %2414 }
 0x3aa   :  { %4081 = vmatprep.mubr.msk.f32.mxu1 %vm1656_vm7, %v2242_v47 }
 0x3ad   :  { %3162 = vmatmul.mubr.f32.gmra.mrb[112].mxu1 %v2241_v4 }
 0x3ae   :  { %4082 = vmatprep.mubr.msk.f32.mxu1 %vm1656_vm7, %v2244_v6 }
 0x3b1   :  { %3168 = vmatmul.mubr.f32.gmra.mrb[114].mxu1 %v2243_v42 }
 0x3b2   :  { %4083 = vmatprep.mubr.msk.f32.mxu1 %vm1656_vm7, %v2246_v56  ;;  %v6511_v56 = vpop.permute.xlu0 %2569 }
 0x3b5   :  { %3174 = vmatmul.mubr.f32.gmra.mrb[116].mxu1 %v2245_v19 }
 0x3b6   :  { %4084 = vmatprep.mubr.msk.f32.mxu1 %vm1656_vm7, %v2248_v8  ;;  %v2275_v8 = vld [vmem:[%s6791_s6 + $0x370] sm:$0xff] }
 0x3b9   :  { %3180 = vmatmul.mubr.f32.gmra.mrb[118].mxu1 %v2247_v29 }
 0x3ba   :  { %4085 = vmatprep.mubr.msk.f32.mxu1 %vm1656_vm7, %v2250_v38  ;;  %v2278_v38 = vld [vmem:[%s6791_s6 + $0x388] sm:$0xff] }
 0x3bd   :  { %3186 = vmatmul.mubr.f32.gmra.mrb[120].mxu1 %v2249_v5 }
 0x3be   :  { %4086 = vmatprep.mubr.msk.f32.mxu1 %vm1656_vm7, %v2252_v1 }
 0x3c1   :  { %3192 = vmatmul.mubr.f32.gmra.mrb[122].mxu1 %v2251_v43 }
 0x3c2   :  { %4087 = vmatprep.mubr.msk.f32.mxu1 %vm1656_vm7, %v2254_v16 }
 0x3c5   :  { %3198 = vmatmul.mubr.f32.gmra.mrb[124].mxu1 %v2253_v41 }
 0x3c6   :  { %4088 = vmatprep.mubr.msk.f32.mxu1 %vm1656_vm7, %v2256_v46  ;;  %v6522_v46 = vpop.permute.xlu1 %2574 }
 0x3c9   :  { %3204 = vmatmul.mubr.f32.gmra.mrb[126].mxu1 %v2255_v0 }
 0x3ca   :  { %4089 = vmatprep.mubr.msk.f32.mxu1 %vm1656_vm7, %v2258_v54 }
 0x3cd   :  { %3210 = vmatmul.mubr.f32.gmra.mrb[128].mxu1 %v2257_v21  ;;  %v2277_v21 = vld [vmem:[%s6791_s6 + $0x380] sm:$0xff] }
 0x3ce   :  { %4090 = vmatprep.mubr.msk.f32.mxu1 %vm1656_vm7, %v2260_v61 }
 0x3d1   :  { %3216 = vmatmul.mubr.f32.gmra.mrb[130].mxu1 %v2259_v58 }
 0x3d2   :  { %4091 = vmatprep.mubr.msk.f32.mxu1 %vm1656_vm7, %v2262_v53 }
 0x3d5   :  { %3222 = vmatmul.mubr.f32.gmra.mrb[132].mxu1 %v2261_v32  ;;  %v2280_v32 = vld [vmem:[%s6791_s6 + $0x398] sm:$0xff] }
 0x3d6   :  { %4092 = vmatprep.mubr.msk.f32.mxu1 %vm1656_vm7, %v2264_v34  ;;  %v6533_v34 = vpop.permute.xlu0 %2419 }
 0x3d9   :  { %3228 = vmatmul.mubr.f32.gmra.mrb[134].mxu1 %v2263_v55 }
 0x3da   :  { %4093 = vmatprep.mubr.msk.f32.mxu1 %vm1656_vm7, %v2266_v17 }
 0x3dd   :  { %3234 = vmatmul.mubr.f32.gmra.mrb[136].mxu1 %v2265_v62 }
 0x3de   :  { %4094 = vmatprep.mubr.msk.f32.mxu1 %vm1656_vm7, %v2268_v23 }
 0x3e1   :  { %3240 = vmatmul.mubr.f32.gmra.mrb[138].mxu1 %v2267_v26 }
 0x3e2   :  { %4095 = vmatprep.mubr.msk.f32.mxu1 %vm1656_vm7, %v2270_v15  ;;  %v2279_v15 = vld [vmem:[%s6791_s6 + $0x390] sm:$0xff] }
 0x3e5   :  { %3246 = vmatmul.mubr.f32.gmra.mrb[140].mxu1 %v2269_v24 }
 0x3e6   :  { %4096 = vmatprep.mubr.msk.f32.mxu1 %vm1656_vm7, %v2272_v36  ;;  %v2282_v36 = vld [vmem:[%s6791_s6 + $0x3a8] sm:$0xff] }
 0x3e8   :  { %v2935_v60 = vpop.f32.mrb[36].mxu1 }
 0x3e9   :  { %v2936_v33 = vadd.f32 %v2935_v60, %v6352_v45  ;;  %v2937_v13 = vpop.f32.mrb[37].mxu1  ;;  %3252 = vmatmul.mubr.f32.gmra.mrb[142].mxu1 %v2271_v59  ;;  %v6544_v59 = vpop.permute.xlu1 %2424 }
 0x3ea   :  { %v2938_v39 = vadd.f32 %v2937_v13, %v6352_v45  ;;  %4097 = vmatprep.mubr.msk.f32.mxu1 %vm1656_vm7, %v2274_v10 }
 0x3eb   :  { %v3446_v4 = vmul.f32 0.01, %v2936_v33  ;;  %vm3318_vm1 = vcmp.ge.f32.partialorder %v2936_v33, 0.0 }
 0x3ec   :  { %v2941_v47 = vpop.f32.mrb[38].mxu1  ;;  %v3447_v45 = vmul.f32 0.01, %v2938_v39  ;;  %vm3319_vm2 = vcmp.ge.f32.partialorder %v2938_v39, 0.0 }
 0x3ed   :  { %v2942_v6 = vadd.f32 %v2941_v47, %v6361_v27  ;;  %v2943_v42 = vpop.f32.mrb[39].mxu1  ;;  %3258 = vmatmul.mubr.f32.gmra.mrb[144].mxu1 %v2273_v49  ;;  %v3574_v43 = vsel %vm3318_vm1, %v2936_v33, %v3446_v4  ;;  %v6547_v49 = vpop.permute.xlu0 %2579  ;;  %v2281_v4 = vld [vmem:[%s6791_s6 + $0x3a0] sm:$0xff] }
 0x3ee   :  { %v2944_v19 = vadd.f32 %v2943_v42, %v6361_v27  ;;  %4098 = vmatprep.mubr.msk.f32.mxu1 %vm1656_vm7, %v2276_v63  ;;  %v3575_v61 = vsel %vm3319_vm2, %v2938_v39, %v3447_v45 }
 0x3ef   :  { %vm3320_vm3 = vcmp.ge.f32.partialorder %v2942_v6, 0.0  ;;  %v3448_v29 = vmul.f32 0.01, %v2942_v6 }
 0x3f0   :  { %vm3321_vm4 = vcmp.ge.f32.partialorder %v2944_v19, 0.0  ;;  %v3449_v5 = vmul.f32 0.01, %v2944_v19  ;;  %v2947_v1 = vpop.f32.mrb[40].mxu1 }
 0x3f1   :  { %v3576_v16 = vsel %vm3320_vm3, %v2942_v6, %v3448_v29  ;;  %v2948_v27 = vadd.f32 %v2947_v1, %v6381_v2  ;;  %v2949_v41 = vpop.f32.mrb[41].mxu1  ;;  %3264 = vmatmul.mubr.f32.gmra.mrb[146].mxu1 %v2275_v8 }
 0x3f2   :  { %v4297_v0 = vpack.c.bf16 %v3576_v16, %v3574_v43  ;;  %v2950_v54 = vadd.f32 %v2949_v41, %v6381_v2  ;;  %4099 = vmatprep.mubr.msk.f32.mxu1 %vm1656_vm7, %v2278_v38  ;;  %v3577_v58 = vsel %vm3321_vm4, %v2944_v19, %v3449_v5  ;;  %v2284_v19 = vld [vmem:[%s6791_s6 + $0x3b8] sm:$0xff]  ;;  %v2283_v16 = vld [vmem:[%s6791_s6 + $0x3b0] sm:$0xff]  ;;  %v2286_v41 = vld [vmem:[%s6791_s6 + $0x3c8] sm:$0xff] }
 0x3f3   :  { %v4295_v53 = vpack.c.bf16 %v3577_v58, %v3575_v61  ;;  %v3450_v17 = vmul.f32 0.01, %v2948_v27  ;;  %vm3322_vm5 = vcmp.ge.f32.partialorder %v2948_v27, 0.0 }
 0x3f4   :  { %v2953_v55 = vpop.f32.mrb[42].mxu1  ;;  %v3451_v23 = vmul.f32 0.01, %v2950_v54  ;;  %vm3323_vm6 = vcmp.ge.f32.partialorder %v2950_v54, 0.0 }
 0x3f5   :  { %v2954_v2 = vadd.f32 %v2953_v55, %v6390_v30  ;;  %v2955_v62 = vpop.f32.mrb[43].mxu1  ;;  %3270 = vmatmul.mubr.f32.gmra.mrb[148].mxu1 %v2277_v21  ;;  %4296 = vmatprep.subr.bf16.mxu1 %v4295_v53 }
 0x3f6   :  { %v2956_v26 = vadd.f32 %v2955_v62, %v6390_v30  ;;  %4298 = vmatpush1.bf16.msra.mxu1 %v4297_v0  ;;  %4100 = vmatprep.mubr.msk.f32.mxu1 %vm1656_vm7, %v2280_v32  ;;  %v3578_v30 = vsel %vm3322_vm5, %v2948_v27, %v3450_v17  ;;  %v3579_v6 = vsel %vm3323_vm6, %v2950_v54, %v3451_v23  ;;  %v6569_v0 = vpop.permute.xlu0 %2429  ;;  %v2285_v17 = vld [vmem:[%s6791_s6 + $0x3c0] sm:$0xff] }
 0x3f7   :  { %vm3324_vm8 = vcmp.ge.f32.partialorder %v2954_v2, 0.0  ;;  %v3452_v24 = vmul.f32 0.01, %v2954_v2 }
 0x3f8   :  { %vm3325_vm9 = vcmp.ge.f32.partialorder %v2956_v26, 0.0  ;;  %v3453_v10 = vmul.f32 0.01, %v2956_v26  ;;  %v2959_v60 = vpop.f32.mrb[44].mxu1 }
 0x3f9   :  { %v3580_v33 = vsel %vm3324_vm8, %v2954_v2, %v3452_v24  ;;  %v2960_v13 = vadd.f32 %v2959_v60, %v6410_v44  ;;  %v2961_v39 = vpop.f32.mrb[45].mxu1  ;;  %3276 = vmatmul.mubr.f32.gmra.mrb[150].mxu1 %v2279_v15 }
 0x3fa   :  { %v4301_v63 = vpack.c.bf16 %v3580_v33, %v3578_v30  ;;  %v2962_v47 = vadd.f32 %v2961_v39, %v6410_v44  ;;  %4101 = vmatprep.mubr.msk.f32.mxu1 %vm1656_vm7, %v2282_v36  ;;  %v3581_v42 = vsel %vm3325_vm9, %v2956_v26, %v3453_v10  ;;  %v6559_v44 = vpop.permute.xlu1 %2584  ;;  %v2288_v26 = vld [vmem:[%s6791_s6 + $0x3d8] sm:$0xff]  ;;  %v6584_v60 = vpop.permute.xlu0 %2589 }
 0x3fb   :  { %v4299_v45 = vpack.c.bf16 %v3581_v42, %v3579_v6  ;;  %v3454_v29 = vmul.f32 0.01, %v2960_v13  ;;  %vm3326_vm10 = vcmp.ge.f32.partialorder %v2960_v13, 0.0 }
 0x3fc   :  { %v2965_v8 = vpop.f32.mrb[46].mxu1  ;;  %v3455_v1 = vmul.f32 0.01, %v2962_v47  ;;  %vm3327_vm11 = vcmp.ge.f32.partialorder %v2962_v47, 0.0 }
 0x3fd   :  { %v2966_v38 = vadd.f32 %v2965_v8, %v6419_v48  ;;  %v2967_v5 = vpop.f32.mrb[47].mxu1  ;;  %3282 = vmatmul.mubr.f32.gmra.mrb[152].mxu1 %v2281_v4  ;;  %4300 = vmatprep.subr.bf16.mxu1 %v4299_v45 }
 0x3fe   :  { %v2968_v43 = vadd.f32 %v2967_v5, %v6419_v48  ;;  %4302 = vmatpush1.bf16.msra.mxu1 %v4301_v63  ;;  %4102 = vmatprep.mubr.msk.f32.mxu1 %vm1656_vm7, %v2284_v19  ;;  %v3582_v48 = vsel %vm3326_vm10, %v2960_v13, %v3454_v29  ;;  %v3583_v2 = vsel %vm3327_vm11, %v2962_v47, %v3455_v1  ;;  %v6581_v15 = vpop.permute.xlu1 %2434  ;;  %v2287_v13 = vld [vmem:[%s6791_s6 + $0x3d0] sm:$0xff]  ;;  %v2290_v63 = vld [vmem:[%s6791_s6 + $0x3e8] sm:$0xff] }
 0x3ff   :  { %vm3328_vm12 = vcmp.ge.f32.partialorder %v2966_v38, 0.0  ;;  %v3456_v27 = vmul.f32 0.01, %v2966_v38 }
 0x400   :  { %vm3329_vm13 = vcmp.ge.f32.partialorder %v2968_v43, 0.0  ;;  %v3457_v54 = vmul.f32 0.01, %v2968_v43  ;;  %v2971_v21 = vpop.f32.mrb[48].mxu1 }
 0x401   :  { %v3584_v61 = vsel %vm3328_vm12, %v2966_v38, %v3456_v27  ;;  %v2972_v58 = vadd.f32 %v2971_v21, %v6439_v51  ;;  %v2973_v53 = vpop.f32.mrb[49].mxu1  ;;  %3288 = vmatmul.mubr.f32.gmra.mrb[154].mxu1 %v2283_v16  ;;  %v2289_v38 = vld [vmem:[%s6791_s6 + $0x3e0] sm:$0xff]  ;;  %v2292_v16 = vld [vmem:[%s6791_s6 + $0x3f8] sm:$0xff]  ;;  %v6606_v27 = vpop.permute.xlu0 %2439 }
 0x402   :  { %v4305_v32 = vpack.c.bf16 %v3584_v61, %v3582_v48  ;;  %v2974_v55 = vadd.f32 %v2973_v53, %v6439_v51  ;;  %4103 = vmatprep.mubr.msk.f32.mxu1 %vm1656_vm7, %v2286_v41  ;;  %v3585_v62 = vsel %vm3329_vm13, %v2968_v43, %v3457_v54  ;;  %v6595_v19 = vpop.permute.xlu1 %2594 }
 0x403   :  { %v4303_v23 = vpack.c.bf16 %v3585_v62, %v3583_v2  ;;  %v3458_v36 = vmul.f32 0.01, %v2972_v58  ;;  %vm3330_vm14 = vcmp.ge.f32.partialorder %v2972_v58, 0.0 }
 0x404   :  { %v2977_v24 = vpop.f32.mrb[50].mxu1  ;;  %v3459_v30 = vmul.f32 0.01, %v2974_v55  ;;  %vm3331_vm15 = vcmp.ge.f32.partialorder %v2974_v55, 0.0 }
 0x405   :  { %v2978_v51 = vadd.f32 %v2977_v24, %v6448_v7  ;;  %v2979_v10 = vpop.f32.mrb[51].mxu1  ;;  %3294 = vmatmul.mubr.f32.gmra.mrb[156].mxu1 %v2285_v17  ;;  %4304 = vmatprep.subr.bf16.mxu1 %v4303_v23  ;;  %v3586_v6 = vsel %vm3330_vm14, %v2972_v58, %v3458_v36  ;;  %v2291_v58 = vld [vmem:[%s6791_s6 + $0x3f0] sm:$0xff]  ;;  %v6620_v24 = vpop.permute.xlu0 %2599 }
 0x406   :  { %v2980_v33 = vadd.f32 %v2979_v10, %v6448_v7  ;;  %4306 = vmatpush1.bf16.msra.mxu1 %v4305_v32  ;;  %4104 = vmatprep.mubr.msk.f32.mxu1 %vm1656_vm7, %v2288_v26  ;;  %v3587_v5 = vsel %vm3331_vm15, %v2974_v55, %v3459_v30  ;;  %v3703_v32 = vld [vmem:[%s6793_s8 + $0x8] sm:$0xff]  ;;  %v6617_v55 = vpop.permute.xlu1 %2444 }
 0x407   :  { %vm3332_vm0 = vcmp.ge.f32.partialorder %v2978_v51, 0.0  ;;  %v3460_v39 = vmul.f32 0.01, %v2978_v51 }
 0x408   :  { %vm3333_vm1 = vcmp.ge.f32.partialorder %v2980_v33, 0.0  ;;  %v3461_v47 = vmul.f32 0.01, %v2980_v33  ;;  %v2983_v4 = vpop.f32.mrb[52].mxu1 }
 0x409   :  { %v3588_v42 = vsel %vm3332_vm0, %v2978_v51, %v3460_v39  ;;  %v2984_v7 = vadd.f32 %v2983_v4, %v6468_v35  ;;  %v2985_v45 = vpop.f32.mrb[53].mxu1  ;;  %3300 = vmatmul.mubr.f32.gmra.mrb[158].mxu1 %v2287_v13 }
 0x40a   :  { %v4309_v8 = vpack.c.bf16 %v3588_v42, %v3586_v6  ;;  %v2986_v29 = vadd.f32 %v2985_v45, %v6468_v35  ;;  %4105 = vmatprep.mubr.msk.f32.mxu1 %vm1656_vm7, %v2290_v63  ;;  %v3589_v1 = vsel %vm3333_vm1, %v2980_v33, %v3461_v47  ;;  %v6625_v4 = vpop.permute.xlu1 %2604 }
 0x40b   :  { %v4307_v43 = vpack.c.bf16 %v3589_v1, %v3587_v5  ;;  %v3462_v54 = vmul.f32 0.01, %v2984_v7  ;;  %vm3334_vm2 = vcmp.ge.f32.partialorder %v2984_v7, 0.0 }
 0x40c   :  { %v2989_v41 = vpop.f32.mrb[54].mxu1  ;;  %v3463_v48 = vmul.f32 0.01, %v2986_v29  ;;  %vm3335_vm3 = vcmp.ge.f32.partialorder %v2986_v29, 0.0 }
 0x40d   :  { %v2990_v35 = vadd.f32 %v2989_v41, %v6477_v3  ;;  %v2991_v21 = vpop.f32.mrb[55].mxu1  ;;  %3306 = vmatmul.mubr.f32.gmra.mrb[160].mxu1 %v2289_v38  ;;  %4308 = vmatprep.subr.bf16.mxu1 %v4307_v43 }
 0x40e   :  { %v2992_v61 = vadd.f32 %v2991_v21, %v6477_v3  ;;  %4310 = vmatpush1.bf16.msra.mxu1 %v4309_v8  ;;  %4106 = vmatprep.mubr.msk.f32.mxu1 %vm1656_vm7, %v2292_v16  ;;  %v3590_v3 = vsel %vm3334_vm2, %v2984_v7, %v3462_v54  ;;  %v3591_v10 = vsel %vm3335_vm3, %v2986_v29, %v3463_v48  ;;  %v6628_v7 = vpop.permute.xlu0 %2449 }
 0x40f   :  { %vm3336_vm4 = vcmp.ge.f32.partialorder %v2990_v35, 0.0  ;;  %v3464_v53 = vmul.f32 0.01, %v2990_v35 }
 0x410   :  { %vm3337_vm5 = vcmp.ge.f32.partialorder %v2992_v61, 0.0  ;;  %v3465_v17 = vmul.f32 0.01, %v2992_v61  ;;  %v2995_v2 = vpop.f32.mrb[56].mxu1 }
 0x411   :  { %v3592_v62 = vsel %vm3336_vm4, %v2990_v35, %v3464_v53  ;;  %v2996_v23 = vadd.f32 %v2995_v2, %v6497_v12  ;;  %v2997_v26 = vpop.f32.mrb[57].mxu1  ;;  %3312 = vmatmul.mubr.f32.gmra.mrb[162].mxu1 %v2291_v58  ;;  %v6632_v35 = vpop.permute.xlu1 %2454 }
 0x412   :  { %v4313_v36 = vpack.c.bf16 %v3592_v62, %v3590_v3  ;;  %v2998_v51 = vadd.f32 %v2997_v26, %v6497_v12  ;;  %v3593_v30 = vsel %vm3337_vm5, %v2992_v61, %v3465_v17  ;;  %3786 = vmatprep.mubr.f32.mxu1 %v3703_v32  ;;  %v6635_v53 = vpop.permute.xlu0 %2609 }
 0x413   :  { %v4311_v33 = vpack.c.bf16 %v3593_v30, %v3591_v10  ;;  %v3466_v39 = vmul.f32 0.01, %v2996_v23  ;;  %vm3338_vm7 = vcmp.ge.f32.partialorder %v2996_v23, 0.0 }
 0x414   :  { %v3001_v13 = vpop.f32.mrb[58].mxu1  ;;  %v3467_v6 = vmul.f32 0.01, %v2998_v51  ;;  %vm3339_vm6 = vcmp.ge.f32.partialorder %v2998_v51, 0.0 }
 0x415   :  { %v3002_v63 = vadd.f32 %v3001_v13, %v6508_v20  ;;  %v3003_v47 = vpop.f32.mrb[59].mxu1  ;;  %4312 = vmatprep.subr.bf16.mxu1 %v4311_v33  ;;  %v3594_v29 = vsel %vm3338_vm7, %v2996_v23, %v3466_v39 }
 0x416   :  { %v3004_v42 = vadd.f32 %v3003_v47, %v6508_v20  ;;  %4314 = vmatpush1.bf16.msra.mxu1 %v4313_v36  ;;  %v3595_v41 = vsel %vm3339_vm6, %v2998_v51, %v3467_v6  ;;  %v6639_v51 = vpop.permute.xlu1 %2614  ;;  %v6642_v39 = vpop.permute.xlu0 %2459 }
 0x417   :  { %vm3340_vm8 = vcmp.ge.f32.partialorder %v3002_v63, 0.0  ;;  %v3468_v12 = vmul.f32 0.01, %v3002_v63 }
 0x418   :  { %vm3341_vm9 = vcmp.ge.f32.partialorder %v3004_v42, 0.0  ;;  %v3469_v45 = vmul.f32 0.01, %v3004_v42  ;;  %v3007_v8 = vpop.f32.mrb[60].mxu1 }
 0x419   :  { %v3596_v38 = vsel %vm3340_vm8, %v3002_v63, %v3468_v12  ;;  %v3008_v5 = vadd.f32 %v3007_v8, %v6533_v34  ;;  %v3009_v1 = vpop.f32.mrb[61].mxu1 }
 0x41a   :  { %v4317_v43 = vpack.c.bf16 %v3596_v38, %v3594_v29  ;;  %v3010_v16 = vadd.f32 %v3009_v1, %v6533_v34  ;;  %v3597_v54 = vsel %vm3341_vm9, %v3004_v42, %v3469_v45 }
 0x41b   :  { %v4315_v20 = vpack.c.bf16 %v3597_v54, %v3595_v41  ;;  %v3470_v48 = vmul.f32 0.01, %v3008_v5  ;;  %vm3342_vm10 = vcmp.ge.f32.partialorder %v3008_v5, 0.0  ;;  %v6649_v41 = vpop.permute.xlu0 %2619 }
 0x41c   :  { %v3013_v21 = vpop.f32.mrb[62].mxu1  ;;  %v3471_v32 = vmul.f32 0.01, %v3010_v16  ;;  %vm3343_vm11 = vcmp.ge.f32.partialorder %v3010_v16, 0.0 }
 0x41d   :  { %v3014_v61 = vadd.f32 %v3013_v21, %v6544_v59  ;;  %v3015_v58 = vpop.f32.mrb[63].mxu1  ;;  %4316 = vmatprep.subr.bf16.mxu1 %v4315_v20  ;;  %v3598_v62 = vsel %vm3342_vm10, %v3008_v5, %v3470_v48 }
 0x41e   :  { %v3016_v17 = vadd.f32 %v3015_v58, %v6544_v59  ;;  %4318 = vmatpush1.bf16.msra.mxu1 %v4317_v43  ;;  %v3599_v33 = vsel %vm3343_vm11, %v3010_v16, %v3471_v32 }
 0x41f   :  { %vm3344_vm12 = vcmp.ge.f32.partialorder %v3014_v61, 0.0  ;;  %v3472_v34 = vmul.f32 0.01, %v3014_v61 }
 0x420   :  { %vm3345_vm13 = vcmp.ge.f32.partialorder %v3016_v17, 0.0  ;;  %v3473_v2 = vmul.f32 0.01, %v3016_v17  ;;  %v3019_v3 = vpop.f32.mrb[64].mxu1 }
 0x421   :  { %v3600_v23 = vsel %vm3344_vm12, %v3014_v61, %v3472_v34  ;;  %v3020_v26 = vadd.f32 %v3019_v3, %v6569_v0  ;;  %v3021_v36 = vpop.f32.mrb[65].mxu1 }
 0x422   :  { %v4321_v10 = vpack.c.bf16 %v3600_v23, %v3598_v62  ;;  %v3022_v30 = vadd.f32 %v3021_v36, %v6569_v0  ;;  %v3601_v13 = vsel %vm3345_vm13, %v3016_v17, %v3473_v2  ;;  %v6646_v0 = vpop.permute.xlu1 %2464 }
 0x423   :  { %v4319_v59 = vpack.c.bf16 %v3601_v13, %v3599_v33  ;;  %v3474_v47 = vmul.f32 0.01, %v3020_v26  ;;  %vm3346_vm14 = vcmp.ge.f32.partialorder %v3020_v26, 0.0 }
 0x424   :  { %v3025_v63 = vpop.f32.mrb[66].mxu1  ;;  %v3475_v12 = vmul.f32 0.01, %v3022_v30  ;;  %vm3347_vm15 = vcmp.ge.f32.partialorder %v3022_v30, 0.0 }
 0x425   :  { %v3026_v6 = vadd.f32 %v3025_v63, %v6581_v15  ;;  %v3027_v42 = vpop.f32.mrb[67].mxu1  ;;  %4320 = vmatprep.subr.bf16.mxu1 %v4319_v59  ;;  %v3602_v5 = vsel %vm3346_vm14, %v3020_v26, %v3474_v47 }
 0x426   :  { %v3028_v45 = vadd.f32 %v3027_v42, %v6581_v15  ;;  %4322 = vmatpush1.bf16.msra.mxu1 %v4321_v10  ;;  %v3603_v15 = vsel %vm3347_vm15, %v3022_v30, %v3475_v12  ;;  %v6653_v34 = vpop.permute.xlu1 %2624 }
 0x427   :  { %vm3348_vm0 = vcmp.ge.f32.partialorder %v3026_v6, 0.0  ;;  %v3476_v8 = vmul.f32 0.01, %v3026_v6 }
 0x428   :  { %vm3349_vm1 = vcmp.ge.f32.partialorder %v3028_v45, 0.0  ;;  %v3477_v29 = vmul.f32 0.01, %v3028_v45  ;;  %v3031_v38 = vpop.f32.mrb[68].mxu1 }
 0x429   :  { %v3604_v1 = vsel %vm3348_vm0, %v3026_v6, %v3476_v8  ;;  %v3032_v43 = vadd.f32 %v3031_v38, %v6606_v27  ;;  %v3033_v16 = vpop.f32.mrb[69].mxu1 }
 0x42a   :  { %v4325_v54 = vpack.c.bf16 %v3604_v1, %v3602_v5  ;;  %v3034_v20 = vadd.f32 %v3033_v16, %v6606_v27  ;;  %v3605_v21 = vsel %vm3349_vm1, %v3028_v45, %v3477_v29  ;;  %v6656_v27 = vpop.permute.xlu0 %2469  ;;  %v2475_v6 = vpop.permute.xlu1 %2474 }
 0x42b   :  { %v4323_v48 = vpack.c.bf16 %v3605_v21, %v3603_v15  ;;  %v3478_v58 = vmul.f32 0.01, %v3032_v43  ;;  %vm3350_vm2 = vcmp.ge.f32.partialorder %v3032_v43, 0.0 }
 0x42c   :  { %v3037_v61 = vpop.f32.mrb[70].mxu1  ;;  %v3479_v2 = vmul.f32 0.01, %v3034_v20  ;;  %vm3351_vm3 = vcmp.ge.f32.partialorder %v3034_v20, 0.0 }
 0x42d   :  { %v3038_v32 = vadd.f32 %v3037_v61, %v6617_v55  ;;  %v3039_v17 = vpop.f32.mrb[71].mxu1  ;;  %4324 = vmatprep.subr.bf16.mxu1 %v4323_v48  ;;  %v3606_v36 = vsel %vm3350_vm2, %v3032_v43, %v3478_v58 }
 0x42e   :  { %v3040_v3 = vadd.f32 %v3039_v17, %v6617_v55  ;;  %4326 = vmatpush1.bf16.msra.mxu1 %v4325_v54  ;;  %v3607_v63 = vsel %vm3351_vm3, %v3034_v20, %v3479_v2  ;;  %v6661_v29 = vpop.permute.xlu0 %2629  ;;  %v6665_v21 = vpop.permute.xlu1 %2634 }
 0x42f   :  { %vm3352_vm4 = vcmp.ge.f32.partialorder %v3038_v32, 0.0  ;;  %v3480_v62 = vmul.f32 0.01, %v3038_v32 }
 0x430   :  { %vm3353_vm5 = vcmp.ge.f32.partialorder %v3040_v3, 0.0  ;;  %v3481_v23 = vmul.f32 0.01, %v3040_v3  ;;  %v3043_v26 = vpop.f32.mrb[72].mxu1 }
 0x431   :  { %v3608_v10 = vsel %vm3352_vm4, %v3038_v32, %v3480_v62  ;;  %v3044_v30 = vadd.f32 %v3043_v26, %v6628_v7  ;;  %v3045_v33 = vpop.f32.mrb[73].mxu1 }
 0x432   :  { %v4329_v13 = vpack.c.bf16 %v3608_v10, %v3606_v36  ;;  %v3046_v59 = vadd.f32 %v3045_v33, %v6628_v7  ;;  %v3609_v47 = vsel %vm3353_vm5, %v3040_v3, %v3481_v23  ;;  %v2480_v17 = vpop.permute.xlu0 %2479 }
 0x433   :  { %v4327_v55 = vpack.c.bf16 %v3609_v47, %v3607_v63  ;;  %v3482_v12 = vmul.f32 0.01, %v3044_v30  ;;  %vm3354_vm7 = vcmp.ge.f32.partialorder %v3044_v30, 0.0 }
 0x434   :  { %v3049_v42 = vpop.f32.mrb[74].mxu1  ;;  %v3483_v38 = vmul.f32 0.01, %v3046_v59  ;;  %vm3355_vm6 = vcmp.ge.f32.partialorder %v3046_v59, 0.0 }
 0x435   :  { %v3050_v45 = vadd.f32 %v3049_v42, %v6632_v35  ;;  %v3051_v8 = vpop.f32.mrb[75].mxu1  ;;  %4328 = vmatprep.subr.bf16.mxu1 %v4327_v55  ;;  %v3610_v16 = vsel %vm3354_vm7, %v3044_v30, %v3482_v12  ;;  %v2485_v30 = vpop.permute.xlu1 %2484 }
 0x436   :  { %v3052_v5 = vadd.f32 %v3051_v8, %v6632_v35  ;;  %4330 = vmatpush1.bf16.msra.mxu1 %v4329_v13  ;;  %v3611_v58 = vsel %vm3355_vm6, %v3046_v59, %v3483_v38  ;;  %v6671_v55 = vpop.permute.xlu0 %2639 }
 0x437   :  { %vm3356_vm8 = vcmp.ge.f32.partialorder %v3050_v45, 0.0  ;;  %v3484_v7 = vmul.f32 0.01, %v3050_v45 }
 0x438   :  { %vm3357_vm9 = vcmp.ge.f32.partialorder %v3052_v5, 0.0  ;;  %v3485_v1 = vmul.f32 0.01, %v3052_v5  ;;  %v3055_v43 = vpop.f32.mrb[76].mxu1 }
 0x439   :  { %v3612_v54 = vsel %vm3356_vm8, %v3050_v45, %v3484_v7  ;;  %v3056_v20 = vadd.f32 %v3055_v43, %v6642_v39  ;;  %v3057_v15 = vpop.f32.mrb[77].mxu1  ;;  %v6674_v43 = vpop.permute.xlu1 %2644 }
 0x43a   :  { %v4333_v48 = vpack.c.bf16 %v3612_v54, %v3610_v16  ;;  %v3058_v61 = vadd.f32 %v3057_v15, %v6642_v39  ;;  %v3613_v32 = vsel %vm3357_vm9, %v3052_v5, %v3485_v1  ;;  %v2490_v15 = vpop.permute.xlu0 %2489 }
 0x43b   :  { %v4331_v35 = vpack.c.bf16 %v3613_v32, %v3611_v58  ;;  %v3486_v3 = vmul.f32 0.01, %v3056_v20  ;;  %vm3358_vm10 = vcmp.ge.f32.partialorder %v3056_v20, 0.0 }
 0x43c   :  { %v3061_v2 = vpop.f32.mrb[78].mxu1  ;;  %v3487_v26 = vmul.f32 0.01, %v3058_v61  ;;  %vm3359_vm11 = vcmp.ge.f32.partialorder %v3058_v61, 0.0 }
 0x43d   :  { %v3062_v62 = vadd.f32 %v3061_v2, %v6646_v0  ;;  %v3063_v23 = vpop.f32.mrb[79].mxu1  ;;  %4332 = vmatprep.subr.bf16.mxu1 %v4331_v35  ;;  %v3614_v13 = vsel %vm3358_vm10, %v3056_v20, %v3486_v3 }
 0x43e   :  { %v3064_v36 = vadd.f32 %v3063_v23, %v6646_v0  ;;  %4334 = vmatpush1.bf16.msra.mxu1 %v4333_v48  ;;  %v3615_v45 = vsel %vm3359_vm11, %v3058_v61, %v3487_v26 }
 0x43f   :  { %vm3360_vm12 = vcmp.ge.f32.partialorder %v3062_v62, 0.0  ;;  %v3488_v10 = vmul.f32 0.01, %v3062_v62 }
 0x440   :  { %vm3361_vm13 = vcmp.ge.f32.partialorder %v3064_v36, 0.0  ;;  %v3489_v39 = vmul.f32 0.01, %v3064_v36  ;;  %v3067_v33 = vpop.f32.mrb[80].mxu1 }
 0x441   :  { %v3616_v59 = vsel %vm3360_vm12, %v3062_v62, %v3488_v10  ;;  %v3068_v63 = vadd.f32 %v3067_v33, %v6656_v27  ;;  %v3069_v47 = vpop.f32.mrb[81].mxu1 }
 0x442   :  { %v4337_v42 = vpack.c.bf16 %v3616_v59, %v3614_v13  ;;  %v3070_v12 = vadd.f32 %v3069_v47, %v6656_v27  ;;  %v3617_v0 = vsel %vm3361_vm13, %v3064_v36, %v3489_v39  ;;  %v2495_v36 = vpop.permute.xlu1 %2494  ;;  %v6676_v13 = vpop.permute.xlu0 %2649 }
 0x443   :  { %v4335_v8 = vpack.c.bf16 %v3617_v0, %v3615_v45  ;;  %v3490_v5 = vmul.f32 0.01, %v3068_v63  ;;  %vm3362_vm14 = vcmp.ge.f32.partialorder %v3068_v63, 0.0 }
 0x444   :  { %v3073_v38 = vpop.f32.mrb[82].mxu1  ;;  %v3491_v16 = vmul.f32 0.01, %v3070_v12  ;;  %vm3363_vm15 = vcmp.ge.f32.partialorder %v3070_v12, 0.0 }
 0x445   :  { %v3074_v7 = vadd.f32 %v3073_v38, %v2475_v6  ;;  %v3075_v1 = vpop.f32.mrb[83].mxu1  ;;  %4336 = vmatprep.subr.bf16.mxu1 %v4335_v8  ;;  %v3618_v61 = vsel %vm3362_vm14, %v3068_v63, %v3490_v5 }
 0x446   :  { %v3076_v54 = vadd.f32 %v3075_v1, %v2475_v6  ;;  %4338 = vmatpush1.bf16.msra.mxu1 %v4337_v42  ;;  %v3619_v62 = vsel %vm3363_vm15, %v3070_v12, %v3491_v16  ;;  %v6678_v38 = vpop.permute.xlu1 %2654 }
 0x447   :  { %vm3364_vm0 = vcmp.ge.f32.partialorder %v3074_v7, 0.0  ;;  %v3492_v20 = vmul.f32 0.01, %v3074_v7 }
 0x448   :  { %vm3365_vm1 = vcmp.ge.f32.partialorder %v3076_v54, 0.0  ;;  %v3493_v27 = vmul.f32 0.01, %v3076_v54  ;;  %v3079_v48 = vpop.f32.mrb[84].mxu1 }
 0x449   :  { %v3620_v58 = vsel %vm3364_vm0, %v3074_v7, %v3492_v20  ;;  %v3080_v32 = vadd.f32 %v3079_v48, %v2480_v17  ;;  %v3081_v35 = vpop.f32.mrb[85].mxu1  ;;  %v2500_v20 = vpop.permute.xlu0 %2499 }
 0x44a   :  { %v4341_v2 = vpack.c.bf16 %v3620_v58, %v3618_v61  ;;  %v3082_v3 = vadd.f32 %v3081_v35, %v2480_v17  ;;  %v3621_v23 = vsel %vm3365_vm1, %v3076_v54, %v3493_v27 }
 0x44b   :  { %v4339_v26 = vpack.c.bf16 %v3621_v23, %v3619_v62  ;;  %v3494_v6 = vmul.f32 0.01, %v3080_v32  ;;  %vm3366_vm2 = vcmp.ge.f32.partialorder %v3080_v32, 0.0 }
 0x44c   :  { %v3085_v10 = vpop.f32.mrb[86].mxu1  ;;  %v3495_v59 = vmul.f32 0.01, %v3082_v3  ;;  %vm3367_vm3 = vcmp.ge.f32.partialorder %v3082_v3, 0.0 }
 0x44d   :  { %v3086_v39 = vadd.f32 %v3085_v10, %v2485_v30  ;;  %v3087_v33 = vpop.f32.mrb[87].mxu1  ;;  %4340 = vmatprep.subr.bf16.mxu1 %v4339_v26  ;;  %v3622_v12 = vsel %vm3366_vm2, %v3080_v32, %v3494_v6  ;;  %v6680_v6 = vpop.permute.xlu0 %2659 }
 0x44e   :  { %v3088_v47 = vadd.f32 %v3087_v33, %v2485_v30  ;;  %4342 = vmatpush1.bf16.msra.mxu1 %v4341_v2  ;;  %v3623_v1 = vsel %vm3367_vm3, %v3082_v3, %v3495_v59  ;;  %v2505_v2 = vpop.permute.xlu1 %2504 }
 0x44f   :  { %vm3368_vm4 = vcmp.ge.f32.partialorder %v3086_v39, 0.0  ;;  %v3496_v63 = vmul.f32 0.01, %v3086_v39 }
 0x450   :  { %vm3369_vm5 = vcmp.ge.f32.partialorder %v3088_v47, 0.0  ;;  %v3497_v17 = vmul.f32 0.01, %v3088_v47  ;;  %v3091_v42 = vpop.f32.mrb[88].mxu1 }
 0x451   :  { %v3624_v45 = vsel %vm3368_vm4, %v3086_v39, %v3496_v63  ;;  %v3092_v0 = vadd.f32 %v3091_v42, %v2490_v15  ;;  %v3093_v8 = vpop.f32.mrb[89].mxu1 }
 0x452   :  { %v4345_v5 = vpack.c.bf16 %v3624_v45, %v3622_v12  ;;  %v3094_v7 = vadd.f32 %v3093_v8, %v2490_v15  ;;  %v3625_v16 = vsel %vm3369_vm5, %v3088_v47, %v3497_v17  ;;  %v6682_v45 = vpop.permute.xlu1 %2664 }
 0x453   :  { %v4343_v54 = vpack.c.bf16 %v3625_v16, %v3623_v1  ;;  %v3498_v27 = vmul.f32 0.01, %v3092_v0  ;;  %vm3370_vm7 = vcmp.ge.f32.partialorder %v3092_v0, 0.0  ;;  %v2510_v1 = vpop.permute.xlu0 %2509 }
 0x454   :  { %v3097_v30 = vpop.f32.mrb[90].mxu1  ;;  %v3499_v58 = vmul.f32 0.01, %v3094_v7  ;;  %vm3371_vm6 = vcmp.ge.f32.partialorder %v3094_v7, 0.0 }
 0x455   :  { %v3098_v48 = vadd.f32 %v3097_v30, %v2495_v36  ;;  %v3099_v61 = vpop.f32.mrb[91].mxu1  ;;  %4344 = vmatprep.subr.bf16.mxu1 %v4343_v54  ;;  %v3626_v3 = vsel %vm3370_vm7, %v3092_v0, %v3498_v27 }
 0x456   :  { %v3100_v35 = vadd.f32 %v3099_v61, %v2495_v36  ;;  %4346 = vmatpush1.bf16.msra.mxu1 %v4345_v5  ;;  %v3627_v59 = vsel %vm3371_vm6, %v3094_v7, %v3499_v58 }
 0x457   :  { %vm3372_vm8 = vcmp.ge.f32.partialorder %v3098_v48, 0.0  ;;  %v3500_v32 = vmul.f32 0.01, %v3098_v48 }
 0x458   :  { %vm3373_vm9 = vcmp.ge.f32.partialorder %v3100_v35, 0.0  ;;  %v3501_v62 = vmul.f32 0.01, %v3100_v35  ;;  %v3103_v15 = vpop.f32.mrb[92].mxu1 }
 0x459   :  { %v3628_v23 = vsel %vm3372_vm8, %v3098_v48, %v3500_v32  ;;  %v3104_v26 = vadd.f32 %v3103_v15, %v2500_v20  ;;  %v3105_v10 = vpop.f32.mrb[93].mxu1 }
 0x45a   :  { %v4349_v39 = vpack.c.bf16 %v3628_v23, %v3626_v3  ;;  %v3106_v33 = vadd.f32 %v3105_v10, %v2500_v20  ;;  %v3629_v47 = vsel %vm3373_vm9, %v3100_v35, %v3501_v62  ;;  %v2515_v62 = vpop.permute.xlu1 %2514 }
 0x45b   :  { %v4347_v63 = vpack.c.bf16 %v3629_v47, %v3627_v59  ;;  %v3502_v17 = vmul.f32 0.01, %v3104_v26  ;;  %vm3374_vm10 = vcmp.ge.f32.partialorder %v3104_v26, 0.0 }
 0x45c   :  { %v3109_v36 = vpop.f32.mrb[94].mxu1  ;;  %v3503_v8 = vmul.f32 0.01, %v3106_v33  ;;  %vm3375_vm11 = vcmp.ge.f32.partialorder %v3106_v33, 0.0 }
 0x45d   :  { %v3110_v42 = vadd.f32 %v3109_v36, %v2505_v2  ;;  %v3111_v12 = vpop.f32.mrb[95].mxu1  ;;  %4348 = vmatprep.subr.bf16.mxu1 %v4347_v63  ;;  %v3630_v54 = vsel %vm3374_vm10, %v3104_v26, %v3502_v17 }
 0x45e   :  { %v3112_v0 = vadd.f32 %v3111_v12, %v2505_v2  ;;  %4350 = vmatpush1.bf16.msra.mxu1 %v4349_v39  ;;  %v3631_v58 = vsel %vm3375_vm11, %v3106_v33, %v3503_v8 }
 0x45f   :  { %vm3376_vm12 = vcmp.ge.f32.partialorder %v3110_v42, 0.0  ;;  %v3504_v5 = vmul.f32 0.01, %v3110_v42 }
 0x460   :  { %vm3377_vm13 = vcmp.ge.f32.partialorder %v3112_v0, 0.0  ;;  %v3505_v16 = vmul.f32 0.01, %v3112_v0  ;;  %v3115_v7 = vpop.f32.mrb[96].mxu1 }
 0x461   :  { %v3632_v20 = vsel %vm3376_vm12, %v3110_v42, %v3504_v5  ;;  %v3116_v30 = vadd.f32 %v3115_v7, %v2510_v1  ;;  %v3117_v27 = vpop.f32.mrb[97].mxu1 }
 0x462   :  { %v4353_v48 = vpack.c.bf16 %v3632_v20, %v3630_v54  ;;  %v3118_v61 = vadd.f32 %v3117_v27, %v2510_v1  ;;  %v3633_v35 = vsel %vm3377_vm13, %v3112_v0, %v3505_v16  ;;  %v3702_v27 = vld [vmem:[%s6793_s8] sm:$0xff] }
 0x463   :  { %v4351_v32 = vpack.c.bf16 %v3633_v35, %v3631_v58  ;;  %v3506_v2 = vmul.f32 0.01, %v3116_v30  ;;  %vm3378_vm14 = vcmp.ge.f32.partialorder %v3116_v30, 0.0 }
 0x464   :  { %v3121_v15 = vpop.f32.mrb[98].mxu1  ;;  %v3507_v10 = vmul.f32 0.01, %v3118_v61  ;;  %vm3379_vm15 = vcmp.ge.f32.partialorder %v3118_v61, 0.0 }
 0x465   :  { %v3122_v3 = vadd.f32 %v3121_v15, %v2515_v62  ;;  %v3123_v23 = vpop.f32.mrb[99].mxu1  ;;  %4352 = vmatprep.subr.bf16.mxu1 %v4351_v32  ;;  %v3634_v63 = vsel %vm3378_vm14, %v3116_v30, %v3506_v2 }
 0x466   :  { %v3124_v39 = vadd.f32 %v3123_v23, %v2515_v62  ;;  %4354 = vmatpush1.bf16.msra.mxu1 %v4353_v48  ;;  %v3635_v8 = vsel %vm3379_vm15, %v3118_v61, %v3507_v10  ;;  %v3707_v61 = vld [vmem:[%s6793_s8 + $0x28] sm:$0xf]  ;;  %v3706_v23 = vld [vmem:[%s6793_s8 + $0x20] sm:$0xf] }
 0x467   :  { %vm3380_vm0 = vcmp.ge.f32.partialorder %v3122_v3, 0.0  ;;  %v3508_v26 = vmul.f32 0.01, %v3122_v3 }
 0x468   :  { %vm3381_vm1 = vcmp.ge.f32.partialorder %v3124_v39, 0.0  ;;  %v3509_v59 = vmul.f32 0.01, %v3124_v39  ;;  %v3127_v47 = vpop.f32.mrb[100].mxu1 }
 0x469   :  { %v3636_v33 = vsel %vm3380_vm0, %v3122_v3, %v3508_v26  ;;  %v3128_v36 = vadd.f32 %v3127_v47, %v6363_v14  ;;  %v3129_v17 = vpop.f32.mrb[101].mxu1 }
 0x46a   :  { %v4357_v42 = vpack.c.bf16 %v3636_v33, %v3634_v63  ;;  %v3130_v12 = vadd.f32 %v3129_v17, %v6363_v14  ;;  %v3637_v0 = vsel %vm3381_vm1, %v3124_v39, %v3509_v59  ;;  %v3705_v14 = vld [vmem:[%s6793_s8 + $0x18] sm:$0xff] }
 0x46b   :  { %v4355_v5 = vpack.c.bf16 %v3637_v0, %v3635_v8  ;;  %v3510_v16 = vmul.f32 0.01, %v3128_v36  ;;  %vm3382_vm2 = vcmp.ge.f32.partialorder %v3128_v36, 0.0  ;;  %3863 = vmatprep.mubr.f32.mxu0 %v3705_v14 }
 0x46c   :  { %v3133_v1 = vpop.f32.mrb[102].mxu1  ;;  %v3511_v20 = vmul.f32 0.01, %v3130_v12  ;;  %vm3383_vm3 = vcmp.ge.f32.partialorder %v3130_v12, 0.0 }
 0x46d   :  { %v3134_v7 = vadd.f32 %v3133_v1, %v6372_v50  ;;  %v3135_v54 = vpop.f32.mrb[103].mxu1  ;;  %4356 = vmatprep.subr.bf16.mxu1 %v4355_v5  ;;  %v3638_v35 = vsel %vm3382_vm2, %v3128_v36, %v3510_v16 }
 0x46e   :  { %v3136_v30 = vadd.f32 %v3135_v54, %v6372_v50  ;;  %4358 = vmatpush1.bf16.msra.mxu1 %v4357_v42  ;;  %v3639_v10 = vsel %vm3383_vm3, %v3130_v12, %v3511_v20 }
 0x46f   :  { %vm3384_vm4 = vcmp.ge.f32.partialorder %v3134_v7, 0.0  ;;  %v3512_v48 = vmul.f32 0.01, %v3134_v7 }
 0x470   :  { %vm3385_vm5 = vcmp.ge.f32.partialorder %v3136_v30, 0.0  ;;  %v3513_v58 = vmul.f32 0.01, %v3136_v30  ;;  %v3139_v50 = vpop.f32.mrb[104].mxu1 }
 0x471   :  { %v3640_v32 = vsel %vm3384_vm4, %v3134_v7, %v3512_v48  ;;  %v3140_v62 = vadd.f32 %v3139_v50, %v6392_v37  ;;  %v3141_v15 = vpop.f32.mrb[105].mxu1  ;;  %3787 = vmatmul.mubr.f32.vlgmr.msra.gmra.mrb[164].mxu1 %v3702_v27 }
 0x472   :  { %v4361_v2 = vpack.c.bf16 %v3640_v32, %v3638_v35  ;;  %v3142_v3 = vadd.f32 %v3141_v15, %v6392_v37  ;;  %3792 = vmatprep.mubr.f32.mxu1 %v3707_v61  ;;  %v3641_v39 = vsel %vm3385_vm5, %v3136_v30, %v3513_v58 }
 0x473   :  { %v4359_v26 = vpack.c.bf16 %v3641_v39, %v3639_v10  ;;  %v3514_v47 = vmul.f32 0.01, %v3140_v62  ;;  %vm3386_vm7 = vcmp.ge.f32.partialorder %v3140_v62, 0.0 }
 0x474   :  { %v3145_v59 = vpop.f32.mrb[106].mxu1  ;;  %v3515_v36 = vmul.f32 0.01, %v3142_v3  ;;  %vm3387_vm6 = vcmp.ge.f32.partialorder %v3142_v3, 0.0 }
 0x475   :  { %v3146_v63 = vadd.f32 %v3145_v59, %v6401_v25  ;;  %v3147_v33 = vpop.f32.mrb[107].mxu1  ;;  %3793 = vmatmul.mubr.f32.gmra.mrb[166].mxu1 %v3706_v23  ;;  %4360 = vmatprep.subr.bf16.mxu0 %v4359_v26  ;;  %v3642_v8 = vsel %vm3386_vm7, %v3140_v62, %v3514_v47 }
 0x476   :  { %v3148_v37 = vadd.f32 %v3147_v33, %v6401_v25  ;;  %4362 = vmatpush1.bf16.msra.mxu0 %v4361_v2  ;;  %v3643_v54 = vsel %vm3387_vm6, %v3142_v3, %v3515_v36 }
 0x477   :  { %vm3388_vm8 = vcmp.ge.f32.partialorder %v3146_v63, 0.0  ;;  %v3516_v17 = vmul.f32 0.01, %v3146_v63 }
 0x478   :  { %vm3389_vm9 = vcmp.ge.f32.partialorder %v3148_v37, 0.0  ;;  %v3517_v42 = vmul.f32 0.01, %v3148_v37  ;;  %v3151_v12 = vpop.f32.mrb[108].mxu1 }
 0x479   :  { %v3644_v0 = vsel %vm3388_vm8, %v3146_v63, %v3516_v17  ;;  %v3152_v5 = vadd.f32 %v3151_v12, %v6421_v57  ;;  %v3153_v1 = vpop.f32.mrb[109].mxu1 }
 0x47a   :  { %v4365_v16 = vpack.c.bf16 %v3644_v0, %v3642_v8  ;;  %v3154_v7 = vadd.f32 %v3153_v1, %v6421_v57  ;;  %v3645_v20 = vsel %vm3389_vm9, %v3148_v37, %v3517_v42 }
 0x47b   :  { %v4363_v30 = vpack.c.bf16 %v3645_v20, %v3643_v54  ;;  %v3518_v25 = vmul.f32 0.01, %v3152_v5  ;;  %vm3390_vm10 = vcmp.ge.f32.partialorder %v3152_v5, 0.0 }
 0x47c   :  { %v3157_v27 = vpop.f32.mrb[110].mxu1  ;;  %v3519_v61 = vmul.f32 0.01, %v3154_v7  ;;  %vm3391_vm11 = vcmp.ge.f32.partialorder %v3154_v7, 0.0 }
 0x47d   :  { %v3158_v14 = vadd.f32 %v3157_v27, %v6430_v18  ;;  %v3159_v48 = vpop.f32.mrb[111].mxu1  ;;  %4364 = vmatprep.subr.bf16.mxu0 %v4363_v30  ;;  %v3646_v32 = vsel %vm3390_vm10, %v3152_v5, %v3518_v25 }
 0x47e   :  { %v3160_v58 = vadd.f32 %v3159_v48, %v6430_v18  ;;  %4366 = vmatpush1.bf16.msra.mxu0 %v4365_v16  ;;  %v3647_v10 = vsel %vm3391_vm11, %v3154_v7, %v3519_v61 }
 0x47f   :  { %vm3392_vm12 = vcmp.ge.f32.partialorder %v3158_v14, 0.0  ;;  %v3520_v50 = vmul.f32 0.01, %v3158_v14 }
 0x480   :  { %vm3393_vm13 = vcmp.ge.f32.partialorder %v3160_v58, 0.0  ;;  %v3521_v35 = vmul.f32 0.01, %v3160_v58  ;;  %v3163_v57 = vpop.f32.mrb[112].mxu1 }
 0x481   :  { %v3648_v62 = vsel %vm3392_vm12, %v3158_v14, %v3520_v50  ;;  %v3164_v15 = vadd.f32 %v3163_v57, %v6450_v40  ;;  %v3165_v2 = vpop.f32.mrb[113].mxu1 }
 0x482   :  { %v4369_v3 = vpack.c.bf16 %v3648_v62, %v3646_v32  ;;  %v3166_v23 = vadd.f32 %v3165_v2, %v6450_v40  ;;  %v3649_v39 = vsel %vm3393_vm13, %v3160_v58, %v3521_v35 }
 0x483   :  { %v4367_v26 = vpack.c.bf16 %v3649_v39, %v3647_v10  ;;  %v3522_v18 = vmul.f32 0.01, %v3164_v15  ;;  %vm3394_vm14 = vcmp.ge.f32.partialorder %v3164_v15, 0.0 }
 0x484   :  { %v3169_v59 = vpop.f32.mrb[114].mxu1  ;;  %v3523_v33 = vmul.f32 0.01, %v3166_v23  ;;  %vm3395_vm15 = vcmp.ge.f32.partialorder %v3166_v23, 0.0 }
 0x485   :  { %v3170_v47 = vadd.f32 %v3169_v59, %v6459_v9  ;;  %v3171_v63 = vpop.f32.mrb[115].mxu1  ;;  %4368 = vmatprep.subr.bf16.mxu0 %v4367_v26  ;;  %v3650_v42 = vsel %vm3394_vm14, %v3164_v15, %v3522_v18 }
 0x486   :  { %v3172_v36 = vadd.f32 %v3171_v63, %v6459_v9  ;;  %4370 = vmatpush1.bf16.msra.mxu0 %v4369_v3  ;;  %v3651_v16 = vsel %vm3395_vm15, %v3166_v23, %v3523_v33 }
 0x487   :  { %vm3396_vm0 = vcmp.ge.f32.partialorder %v3170_v47, 0.0  ;;  %v3524_v37 = vmul.f32 0.01, %v3170_v47 }
 0x488   :  { %vm3397_vm1 = vcmp.ge.f32.partialorder %v3172_v36, 0.0  ;;  %v3525_v17 = vmul.f32 0.01, %v3172_v36  ;;  %v3175_v40 = vpop.f32.mrb[116].mxu1 }
 0x489   :  { %v3652_v12 = vsel %vm3396_vm0, %v3170_v47, %v3524_v37  ;;  %v3176_v8 = vadd.f32 %v3175_v40, %v6479_v52  ;;  %v3177_v0 = vpop.f32.mrb[117].mxu1 }
 0x48a   :  { %v4373_v5 = vpack.c.bf16 %v3652_v12, %v3650_v42  ;;  %v3178_v1 = vadd.f32 %v3177_v0, %v6479_v52  ;;  %v3653_v7 = vsel %vm3397_vm1, %v3172_v36, %v3525_v17 }
 0x48b   :  { %v4371_v54 = vpack.c.bf16 %v3653_v7, %v3651_v16  ;;  %v3526_v9 = vmul.f32 0.01, %v3176_v8  ;;  %vm3398_vm2 = vcmp.ge.f32.partialorder %v3176_v8, 0.0 }
 0x48c   :  { %v3181_v20 = vpop.f32.mrb[118].mxu1  ;;  %v3527_v25 = vmul.f32 0.01, %v3178_v1  ;;  %vm3399_vm3 = vcmp.ge.f32.partialorder %v3178_v1, 0.0 }
 0x48d   :  { %v3182_v30 = vadd.f32 %v3181_v20, %v6488_v31  ;;  %v3183_v27 = vpop.f32.mrb[119].mxu1  ;;  %4372 = vmatprep.subr.bf16.mxu0 %v4371_v54  ;;  %v3654_v58 = vsel %vm3398_vm2, %v3176_v8, %v3526_v9 }
 0x48e   :  { %v3184_v14 = vadd.f32 %v3183_v27, %v6488_v31  ;;  %4374 = vmatpush1.bf16.msra.mxu0 %v4373_v5  ;;  %v3655_v15 = vsel %vm3399_vm3, %v3178_v1, %v3527_v25 }
 0x48f   :  { %vm3400_vm4 = vcmp.ge.f32.partialorder %v3182_v30, 0.0  ;;  %v3528_v48 = vmul.f32 0.01, %v3182_v30 }
 0x490   :  { %vm3401_vm5 = vcmp.ge.f32.partialorder %v3184_v14, 0.0  ;;  %v3529_v61 = vmul.f32 0.01, %v3184_v14  ;;  %v3187_v52 = vpop.f32.mrb[120].mxu1 }
 0x491   :  { %v3656_v50 = vsel %vm3400_vm4, %v3182_v30, %v3528_v48  ;;  %v3188_v35 = vadd.f32 %v3187_v52, %v6511_v56  ;;  %v3189_v57 = vpop.f32.mrb[121].mxu1 }
 0x492   :  { %v4377_v32 = vpack.c.bf16 %v3656_v50, %v3654_v58  ;;  %v3190_v62 = vadd.f32 %v3189_v57, %v6511_v56  ;;  %v3657_v2 = vsel %vm3401_vm5, %v3184_v14, %v3529_v61 }
 0x493   :  { %v4375_v3 = vpack.c.bf16 %v3657_v2, %v3655_v15  ;;  %v3530_v31 = vmul.f32 0.01, %v3188_v35  ;;  %vm3402_vm7 = vcmp.ge.f32.partialorder %v3188_v35, 0.0 }
 0x494   :  { %v3193_v23 = vpop.f32.mrb[122].mxu1  ;;  %v3531_v26 = vmul.f32 0.01, %v3190_v62  ;;  %vm3403_vm6 = vcmp.ge.f32.partialorder %v3190_v62, 0.0 }
 0x495   :  { %v3194_v10 = vadd.f32 %v3193_v23, %v6522_v46  ;;  %v3195_v39 = vpop.f32.mrb[123].mxu1  ;;  %4376 = vmatprep.subr.bf16.mxu0 %v4375_v3  ;;  %v3658_v63 = vsel %vm3402_vm7, %v3188_v35, %v3530_v31 }
 0x496   :  { %v3196_v59 = vadd.f32 %v3195_v39, %v6522_v46  ;;  %4378 = vmatpush1.bf16.msra.mxu0 %v4377_v32  ;;  %v3659_v42 = vsel %vm3403_vm6, %v3190_v62, %v3531_v26 }
 0x497   :  { %vm3404_vm8 = vcmp.ge.f32.partialorder %v3194_v10, 0.0  ;;  %v3532_v18 = vmul.f32 0.01, %v3194_v10 }
 0x498   :  { %vm3405_vm9 = vcmp.ge.f32.partialorder %v3196_v59, 0.0  ;;  %v3533_v47 = vmul.f32 0.01, %v3196_v59  ;;  %v3199_v56 = vpop.f32.mrb[124].mxu1 }
 0x499   :  { %v3660_v33 = vsel %vm3404_vm8, %v3194_v10, %v3532_v18  ;;  %v3200_v36 = vadd.f32 %v3199_v56, %v6547_v49  ;;  %v3201_v37 = vpop.f32.mrb[125].mxu1 }
 0x49a   :  { %v4381_v17 = vpack.c.bf16 %v3660_v33, %v3658_v63  ;;  %v3202_v40 = vadd.f32 %v3201_v37, %v6547_v49  ;;  %v3661_v12 = vsel %vm3405_vm9, %v3196_v59, %v3533_v47 }
 0x49b   :  { %v4379_v8 = vpack.c.bf16 %v3661_v12, %v3659_v42  ;;  %v3534_v46 = vmul.f32 0.01, %v3200_v36  ;;  %vm3406_vm10 = vcmp.ge.f32.partialorder %v3200_v36, 0.0 }
 0x49c   :  { %v3205_v0 = vpop.f32.mrb[126].mxu1  ;;  %v3535_v16 = vmul.f32 0.01, %v3202_v40  ;;  %vm3407_vm11 = vcmp.ge.f32.partialorder %v3202_v40, 0.0 }
 0x49d   :  { %v3206_v5 = vadd.f32 %v3205_v0, %v6559_v44  ;;  %v3207_v1 = vpop.f32.mrb[127].mxu1  ;;  %4380 = vmatprep.subr.bf16.mxu0 %v4379_v8  ;;  %v3662_v9 = vsel %vm3406_vm10, %v3200_v36, %v3534_v46 }
 0x49e   :  { %v3208_v7 = vadd.f32 %v3207_v1, %v6559_v44  ;;  %4382 = vmatpush1.bf16.msra.mxu0 %v4381_v17  ;;  %v3663_v61 = vsel %vm3407_vm11, %v3202_v40, %v3535_v16 }
 0x49f   :  { %vm3408_vm12 = vcmp.ge.f32.partialorder %v3206_v5, 0.0  ;;  %v3536_v54 = vmul.f32 0.01, %v3206_v5 }
 0x4a0   :  { %vm3409_vm13 = vcmp.ge.f32.partialorder %v3208_v7, 0.0  ;;  %v3537_v20 = vmul.f32 0.01, %v3208_v7  ;;  %v3211_v49 = vpop.f32.mrb[128].mxu1 }
 0x4a1   :  { %v3664_v30 = vsel %vm3408_vm12, %v3206_v5, %v3536_v54  ;;  %v3212_v27 = vadd.f32 %v3211_v49, %v6584_v60  ;;  %v3213_v25 = vpop.f32.mrb[129].mxu1 }
 0x4a2   :  { %v4385_v14 = vpack.c.bf16 %v3664_v30, %v3662_v9  ;;  %v3214_v48 = vadd.f32 %v3213_v25, %v6584_v60  ;;  %v3665_v52 = vsel %vm3409_vm13, %v3208_v7, %v3537_v20 }
 0x4a3   :  { %v4383_v58 = vpack.c.bf16 %v3665_v52, %v3663_v61  ;;  %v3538_v44 = vmul.f32 0.01, %v3212_v27  ;;  %vm3410_vm14 = vcmp.ge.f32.partialorder %v3212_v27, 0.0 }
 0x4a4   :  { %v3217_v50 = vpop.f32.mrb[130].mxu1  ;;  %v3539_v32 = vmul.f32 0.01, %v3214_v48  ;;  %vm3411_vm15 = vcmp.ge.f32.partialorder %v3214_v48, 0.0 }
 0x4a5   :  { %v3218_v35 = vadd.f32 %v3217_v50, %v6595_v19  ;;  %v3219_v57 = vpop.f32.mrb[131].mxu1  ;;  %4384 = vmatprep.subr.bf16.mxu0 %v4383_v58  ;;  %v3666_v3 = vsel %vm3410_vm14, %v3212_v27, %v3538_v44 }
 0x4a6   :  { %v3220_v62 = vadd.f32 %v3219_v57, %v6595_v19  ;;  %4386 = vmatpush1.bf16.msra.mxu0 %v4385_v14  ;;  %v3667_v59 = vsel %vm3411_vm15, %v3214_v48, %v3539_v32 }
 0x4a7   :  { %vm3412_vm0 = vcmp.ge.f32.partialorder %v3218_v35, 0.0  ;;  %v3540_v15 = vmul.f32 0.01, %v3218_v35 }
 0x4a8   :  { %vm3413_vm1 = vcmp.ge.f32.partialorder %v3220_v62, 0.0  ;;  %v3541_v2 = vmul.f32 0.01, %v3220_v62  ;;  %v3223_v60 = vpop.f32.mrb[132].mxu1 }
 0x4a9   :  { %v3668_v23 = vsel %vm3412_vm0, %v3218_v35, %v3540_v15  ;;  %v3224_v31 = vadd.f32 %v3223_v60, %v6620_v24  ;;  %v3225_v10 = vpop.f32.mrb[133].mxu1 }
 0x4aa   :  { %v4389_v39 = vpack.c.bf16 %v3668_v23, %v3666_v3  ;;  %v3226_v26 = vadd.f32 %v3225_v10, %v6620_v24  ;;  %v3669_v18 = vsel %vm3413_vm1, %v3220_v62, %v3541_v2 }
 0x4ab   :  { %v4387_v47 = vpack.c.bf16 %v3669_v18, %v3667_v59  ;;  %v3542_v19 = vmul.f32 0.01, %v3224_v31  ;;  %vm3414_vm2 = vcmp.ge.f32.partialorder %v3224_v31, 0.0 }
 0x4ac   :  { %v3229_v56 = vpop.f32.mrb[134].mxu1  ;;  %v3543_v36 = vmul.f32 0.01, %v3226_v26  ;;  %vm3415_vm3 = vcmp.ge.f32.partialorder %v3226_v26, 0.0 }
 0x4ad   :  { %v3230_v63 = vadd.f32 %v3229_v56, %v6625_v4  ;;  %v3231_v33 = vpop.f32.mrb[135].mxu1  ;;  %4388 = vmatprep.subr.bf16.mxu0 %v4387_v47  ;;  %v3670_v42 = vsel %vm3414_vm2, %v3224_v31, %v3542_v19 }
 0x4ae   :  { %v3232_v37 = vadd.f32 %v3231_v33, %v6625_v4  ;;  %4390 = vmatpush1.bf16.msra.mxu0 %v4389_v39  ;;  %v3671_v1 = vsel %vm3415_vm3, %v3226_v26, %v3543_v36 }
 0x4af   :  { %vm3416_vm4 = vcmp.ge.f32.partialorder %v3230_v63, 0.0  ;;  %v3544_v17 = vmul.f32 0.01, %v3230_v63 }
 0x4b0   :  { %vm3417_vm5 = vcmp.ge.f32.partialorder %v3232_v37, 0.0  ;;  %v3545_v40 = vmul.f32 0.01, %v3232_v37  ;;  %v3235_v24 = vpop.f32.mrb[136].mxu1 }
 0x4b1   :  { %v3672_v12 = vsel %vm3416_vm4, %v3230_v63, %v3544_v17  ;;  %v3236_v8 = vadd.f32 %v3235_v24, %v6635_v53  ;;  %v3237_v0 = vpop.f32.mrb[137].mxu1 }
 0x4b2   :  { %v4393_v46 = vpack.c.bf16 %v3672_v12, %v3670_v42  ;;  %v3238_v5 = vadd.f32 %v3237_v0, %v6635_v53  ;;  %v3673_v16 = vsel %vm3417_vm5, %v3232_v37, %v3545_v40 }
 0x4b3   :  { %v4391_v7 = vpack.c.bf16 %v3673_v16, %v3671_v1  ;;  %v3546_v4 = vmul.f32 0.01, %v3236_v8  ;;  %vm3418_vm7 = vcmp.ge.f32.partialorder %v3236_v8, 0.0 }
 0x4b4   :  { %v3241_v54 = vpop.f32.mrb[138].mxu1  ;;  %v3547_v9 = vmul.f32 0.01, %v3238_v5  ;;  %vm3419_vm6 = vcmp.ge.f32.partialorder %v3238_v5, 0.0 }
 0x4b5   :  { %v3242_v20 = vadd.f32 %v3241_v54, %v6639_v51  ;;  %v3243_v49 = vpop.f32.mrb[139].mxu1  ;;  %4392 = vmatprep.subr.bf16.mxu0 %v4391_v7  ;;  %v3674_v14 = vsel %vm3418_vm7, %v3236_v8, %v3546_v4 }
 0x4b6   :  { %v3244_v30 = vadd.f32 %v3243_v49, %v6639_v51  ;;  %4394 = vmatpush1.bf16.msra.mxu0 %v4393_v46  ;;  %v3675_v44 = vsel %vm3419_vm6, %v3238_v5, %v3547_v9 }
 0x4b7   :  { %vm3420_vm8 = vcmp.ge.f32.partialorder %v3242_v20, 0.0  ;;  %v3548_v27 = vmul.f32 0.01, %v3242_v20 }
 0x4b8   :  { %vm3421_vm9 = vcmp.ge.f32.partialorder %v3244_v30, 0.0  ;;  %v3549_v25 = vmul.f32 0.01, %v3244_v30  ;;  %v3247_v53 = vpop.f32.mrb[140].mxu1 }
 0x4b9   :  { %v3676_v48 = vsel %vm3420_vm8, %v3242_v20, %v3548_v27  ;;  %v3248_v61 = vadd.f32 %v3247_v53, %v6649_v41  ;;  %v3249_v52 = vpop.f32.mrb[141].mxu1 }
 0x4ba   :  { %v4397_v58 = vpack.c.bf16 %v3676_v48, %v3674_v14  ;;  %v3250_v50 = vadd.f32 %v3249_v52, %v6649_v41  ;;  %v3677_v35 = vsel %vm3421_vm9, %v3244_v30, %v3549_v25 }
 0x4bb   :  { %v4395_v57 = vpack.c.bf16 %v3677_v35, %v3675_v44  ;;  %v3550_v51 = vmul.f32 0.01, %v3248_v61  ;;  %vm3422_vm10 = vcmp.ge.f32.partialorder %v3248_v61, 0.0 }
 0x4bc   :  { %v3253_v32 = vpop.f32.mrb[142].mxu1  ;;  %v3551_v2 = vmul.f32 0.01, %v3250_v50  ;;  %vm3423_vm11 = vcmp.ge.f32.partialorder %v3250_v50, 0.0 }
 0x4bd   :  { %v3254_v62 = vadd.f32 %v3253_v32, %v6653_v34  ;;  %v3255_v15 = vpop.f32.mrb[143].mxu1  ;;  %4396 = vmatprep.subr.bf16.mxu0 %v4395_v57  ;;  %v3678_v31 = vsel %vm3422_vm10, %v3248_v61, %v3550_v51 }
 0x4be   :  { %v3256_v60 = vadd.f32 %v3255_v15, %v6653_v34  ;;  %4398 = vmatpush1.bf16.msra.mxu0 %v4397_v58  ;;  %v3679_v47 = vsel %vm3423_vm11, %v3250_v50, %v3551_v2 }
 0x4bf   :  { %vm3424_vm12 = vcmp.ge.f32.partialorder %v3254_v62, 0.0  ;;  %v3552_v3 = vmul.f32 0.01, %v3254_v62 }
 0x4c0   :  { %vm3425_vm13 = vcmp.ge.f32.partialorder %v3256_v60, 0.0  ;;  %v3553_v23 = vmul.f32 0.01, %v3256_v60  ;;  %v3259_v41 = vpop.f32.mrb[144].mxu1 }
 0x4c1   :  { %v3680_v10 = vsel %vm3424_vm12, %v3254_v62, %v3552_v3  ;;  %v3260_v39 = vadd.f32 %v3259_v41, %v6661_v29  ;;  %v3261_v26 = vpop.f32.mrb[145].mxu1 }
 0x4c2   :  { %v4401_v59 = vpack.c.bf16 %v3680_v10, %v3678_v31  ;;  %v3262_v18 = vadd.f32 %v3261_v26, %v6661_v29  ;;  %v3681_v56 = vsel %vm3425_vm13, %v3256_v60, %v3553_v23 }
 0x4c3   :  { %v4399_v19 = vpack.c.bf16 %v3681_v56, %v3679_v47  ;;  %v3554_v34 = vmul.f32 0.01, %v3260_v39  ;;  %vm3426_vm14 = vcmp.ge.f32.partialorder %v3260_v39, 0.0 }
 0x4c4   :  { %v3265_v63 = vpop.f32.mrb[146].mxu1  ;;  %v3555_v37 = vmul.f32 0.01, %v3262_v18  ;;  %vm3427_vm15 = vcmp.ge.f32.partialorder %v3262_v18, 0.0 }
 0x4c5   :  { %v3266_v33 = vadd.f32 %v3265_v63, %v6665_v21  ;;  %v3267_v36 = vpop.f32.mrb[147].mxu1  ;;  %4400 = vmatprep.subr.bf16.mxu0 %v4399_v19  ;;  %v3682_v42 = vsel %vm3426_vm14, %v3260_v39, %v3554_v34 }
 0x4c6   :  { %v3268_v17 = vadd.f32 %v3267_v36, %v6665_v21  ;;  %4402 = vmatpush1.bf16.msra.mxu0 %v4401_v59  ;;  %v3683_v1 = vsel %vm3427_vm15, %v3262_v18, %v3555_v37 }
 0x4c7   :  { %vm3428_vm0 = vcmp.ge.f32.partialorder %v3266_v33, 0.0  ;;  %v3556_v40 = vmul.f32 0.01, %v3266_v33 }
 0x4c8   :  { %vm3429_vm1 = vcmp.ge.f32.partialorder %v3268_v17, 0.0  ;;  %v3557_v24 = vmul.f32 0.01, %v3268_v17  ;;  %v3271_v29 = vpop.f32.mrb[148].mxu1 }
 0x4c9   :  { %v3684_v12 = vsel %vm3428_vm0, %v3266_v33, %v3556_v40  ;;  %v3272_v8 = vadd.f32 %v3271_v29, %v6671_v55  ;;  %v3273_v0 = vpop.f32.mrb[149].mxu1  ;;  %v2670_v33 = vpop.permute.xlu0 %2669 }
 0x4ca   :  { %v4405_v46 = vpack.c.bf16 %v3684_v12, %v3682_v42  ;;  %v3274_v5 = vadd.f32 %v3273_v0, %v6671_v55  ;;  %v3685_v16 = vsel %vm3429_vm1, %v3268_v17, %v3557_v24 }
 0x4cb   :  { %v4403_v7 = vpack.c.bf16 %v3685_v16, %v3683_v1  ;;  %v3558_v21 = vmul.f32 0.01, %v3272_v8  ;;  %vm3430_vm2 = vcmp.ge.f32.partialorder %v3272_v8, 0.0 }
 0x4cc   :  { %v3277_v54 = vpop.f32.mrb[150].mxu1  ;;  %v3559_v49 = vmul.f32 0.01, %v3274_v5  ;;  %vm3431_vm3 = vcmp.ge.f32.partialorder %v3274_v5, 0.0 }
 0x4cd   :  { %v3278_v4 = vadd.f32 %v3277_v54, %v6674_v43  ;;  %v3279_v20 = vpop.f32.mrb[151].mxu1  ;;  %4404 = vmatprep.subr.bf16.mxu0 %v4403_v7  ;;  %v3686_v25 = vsel %vm3430_vm2, %v3272_v8, %v3558_v21 }
 0x4ce   :  { %v3280_v9 = vadd.f32 %v3279_v20, %v6674_v43  ;;  %4406 = vmatpush1.bf16.msra.mxu0 %v4405_v46  ;;  %v3687_v58 = vsel %vm3431_vm3, %v3274_v5, %v3559_v49  ;;  %v2675_v46 = vpop.permute.xlu1 %2674 }
 0x4cf   :  { %vm3432_vm4 = vcmp.ge.f32.partialorder %v3278_v4, 0.0  ;;  %v3560_v30 = vmul.f32 0.01, %v3278_v4 }
 0x4d0   :  { %vm3433_vm5 = vcmp.ge.f32.partialorder %v3280_v9, 0.0  ;;  %v3561_v27 = vmul.f32 0.01, %v3280_v9  ;;  %v3283_v55 = vpop.f32.mrb[152].mxu1 }
 0x4d1   :  { %v3688_v53 = vsel %vm3432_vm4, %v3278_v4, %v3560_v30  ;;  %v3284_v14 = vadd.f32 %v3283_v55, %v6676_v13  ;;  %v3285_v48 = vpop.f32.mrb[153].mxu1 }
 0x4d2   :  { %v4409_v61 = vpack.c.bf16 %v3688_v53, %v3686_v25  ;;  %v3286_v52 = vadd.f32 %v3285_v48, %v6676_v13  ;;  %v3689_v50 = vsel %vm3433_vm5, %v3280_v9, %v3561_v27  ;;  %v3704_v25 = vld [vmem:[%s6793_s8 + $0x10] sm:$0xff]  ;;  %v3709_v53 = vld [vmem:[%s6793_s8 + $0x38] sm:$0xf] }
 0x4d3   :  { %v4407_v44 = vpack.c.bf16 %v3689_v50, %v3687_v58  ;;  %v3562_v43 = vmul.f32 0.01, %v3284_v14  ;;  %vm3434_vm7 = vcmp.ge.f32.partialorder %v3284_v14, 0.0  ;;  %v4513_v50 = vld [vmem:[%s6786_s1] sm:$0x3]  ;;  %s4539_s1 = smov [#allocation2]  }
 0x4d4   :  { %v3289_v35 = vpop.f32.mrb[154].mxu1  ;;  %v3563_v51 = vmul.f32 0.01, %v3286_v52  ;;  %vm3435_vm6 = vcmp.ge.f32.partialorder %v3286_v52, 0.0 }
 0x4d5   :  { %v3290_v57 = vadd.f32 %v3289_v35, %v6678_v38  ;;  %v3291_v32 = vpop.f32.mrb[155].mxu1  ;;  %4408 = vmatprep.subr.bf16.mxu0 %v4407_v44  ;;  %v3690_v60 = vsel %vm3434_vm7, %v3284_v14, %v3562_v43  ;;  %v3708_v14 = vld [vmem:[%s6793_s8 + $0x30] sm:$0xf]  ;;  %v40_v44 = vmul.f32 1.442695, %v4513_v50  ;;  %v3715_v35 = vpop.permute.xlu0 %3714  ;;  %s3912_s8 = sshll.u32 %s4539_s1, 4  ;;  %s3913_s8 = int_to_ptr.vmem [resolvable:$true] %s3912_s8 }
 0x4d6   :  { %v3292_v62 = vadd.f32 %v3291_v32, %v6678_v38  ;;  %4410 = vmatpush1.bf16.msra.mxu0 %v4409_v61  ;;  %v3691_v39 = vsel %vm3435_vm6, %v3286_v52, %v3563_v51  ;;  %s4514_s29 = scalar_lea.vmem %s3913_s8, 512  ;;  %p4519_p1 = scmp.lt.s32.totalorder %s3913_s8, %s3913_s8 }
 0x4d7   :  { %vm3436_vm8 = vcmp.ge.f32.partialorder %v3290_v57, 0.0  ;;  %v3564_v15 = vmul.f32 0.01, %v3290_v57  ;;  %4511 = vpow2.f32 %v40_v44  ;;  %p4515_p0 = scmp.ne.s32.totalorder %s3913_s8, %s4514_s29  ;;  %p4520_p2 = scmp.lt.s32.totalorder %s4514_s29, %s4514_s29 }
 0x4d8   :  { %vm3437_vm9 = vcmp.ge.f32.partialorder %v3292_v62, 0.0  ;;  %v3565_v2 = vmul.f32 0.01, %v3292_v62  ;;  %v3295_v13 = vpop.f32.mrb[156].mxu1 }
 0x4d9   :  { %v3692_v3 = vsel %vm3436_vm8, %v3290_v57, %v3564_v15  ;;  %v3296_v23 = vadd.f32 %v3295_v13, %v6680_v6  ;;  %v3297_v41 = vpop.f32.mrb[157].mxu1  ;;  %p4521_p3 = por %p4520_p2, %p4519_p1 }
 0x4da   :  { %v4413_v31 = vpack.c.bf16 %v3692_v3, %v3690_v60  ;;  %v3298_v10 = vadd.f32 %v3297_v41, %v6680_v6  ;;  %v3693_v26 = vsel %vm3437_vm9, %v3292_v62, %v3565_v2  ;;  %v3720_v2 = vpop.permute.xlu1 %3719 }
 0x4db   :  { %v4411_v59 = vpack.c.bf16 %v3693_v26, %v3691_v39  ;;  %v3566_v38 = vmul.f32 0.01, %v3296_v23  ;;  %vm3438_vm10 = vcmp.ge.f32.partialorder %v3296_v23, 0.0  ;;  %p4522_p4 = pnand %p4521_p3, %p4515_p0 }
 0x4dc   :  { %v3301_v18 = vpop.f32.mrb[158].mxu1  ;;  %v3567_v19 = vmul.f32 0.01, %v3298_v10  ;;  %vm3439_vm11 = vcmp.ge.f32.partialorder %v3298_v10, 0.0 }
 0x4dd   :  { %v3302_v47 = vadd.f32 %v3301_v18, %v6682_v45  ;;  %v3303_v56 = vpop.f32.mrb[159].mxu1  ;;  %4412 = vmatprep.subr.bf16.mxu0 %v4411_v59  ;;  %v3694_v37 = vsel %vm3438_vm10, %v3296_v23, %v3566_v38 }
 0x4de   :  { %v3304_v63 = vadd.f32 %v3303_v56, %v6682_v45  ;;  %4414 = vmatpush1.bf16.msra.mxu0 %v4413_v31  ;;  %v3695_v12 = vsel %vm3439_vm11, %v3298_v10, %v3567_v19 }
 0x4df   :  { %vm3440_vm12 = vcmp.ge.f32.partialorder %v3302_v47, 0.0  ;;  %v3568_v34 = vmul.f32 0.01, %v3302_v47 }
 0x4e0   :  { %vm3441_vm13 = vcmp.ge.f32.partialorder %v3304_v63, 0.0  ;;  %v3569_v6 = vmul.f32 0.01, %v3304_v63  ;;  %v3307_v36 = vpop.f32.mrb[160].mxu1 }
 0x4e1   :  { %v3696_v17 = vsel %vm3440_vm12, %v3302_v47, %v3568_v34  ;;  %v3308_v40 = vadd.f32 %v3307_v36, %v2670_v33  ;;  %v3309_v24 = vpop.f32.mrb[161].mxu1  ;;  %v4512_v57 = vpop.eup %4511 }
 0x4e2   :  { %v4417_v29 = vpack.c.bf16 %v3696_v17, %v3694_v37  ;;  %v3310_v42 = vadd.f32 %v3309_v24, %v2670_v33  ;;  %v3697_v8 = vsel %vm3441_vm13, %v3304_v63, %v3569_v6  ;;  %v3888_v23 = vrot.slane %v4512_v57, %v145_v28 }
 0x4e3   :  { %v4415_v0 = vpack.c.bf16 %v3697_v8, %v3695_v12  ;;  %v3570_v45 = vmul.f32 0.01, %v3308_v40  ;;  %vm3442_vm14 = vcmp.ge.f32.partialorder %v3308_v40, 0.0  ;;  %v3892_v10 = vrot.slane %v4512_v57, %v149_v22 }
 0x4e4   :  { %v3313_v5 = vpop.f32.mrb[162].mxu1  ;;  %v3571_v7 = vmul.f32 0.01, %v3310_v42  ;;  %vm3443_vm15 = vcmp.ge.f32.partialorder %v3310_v42, 0.0 }
 0x4e5   :  { %v3314_v1 = vadd.f32 %v3313_v5, %v2675_v46  ;;  %v3315_v16 = vpop.f32.mrb[163].mxu1  ;;  %4416 = vmatprep.subr.bf16.mxu0 %v4415_v0  ;;  %v3698_v20 = vsel %vm3442_vm14, %v3308_v40, %v3570_v45 }
 0x4e6   :  { %v3316_v54 = vadd.f32 %v3315_v16, %v2675_v46  ;;  %4418 = vmatpush1.bf16.msra.mxu0 %v4417_v29  ;;  %v3699_v30 = vsel %vm3443_vm15, %v3310_v42, %v3571_v7 }
 0x4e7   :  { %vm3444_vm0 = vcmp.ge.f32.partialorder %v3314_v1, 0.0  ;;  %v3572_v21 = vmul.f32 0.01, %v3314_v1 }
 0x4e8   :  { %vm3445_vm1 = vcmp.ge.f32.partialorder %v3316_v54, 0.0  ;;  %v3573_v4 = vmul.f32 0.01, %v3316_v54 }
 0x4e9   :  { %v3700_v49 = vsel %vm3444_vm0, %v3314_v1, %v3572_v21 }
 0x4ea   :  { %v4421_v9 = vpack.c.bf16 %v3700_v49, %v3698_v20  ;;  %v3701_v27 = vsel %vm3445_vm1, %v3316_v54, %v3573_v4 }
 0x4eb   :  { %v4419_v55 = vpack.c.bf16 %v3701_v27, %v3699_v30 }
 0x4ed   :  { %4420 = vmatprep.subr.bf16.mxu0 %v4419_v55 }
 0x4ee   :  { %4422 = vmatpush1.bf16.msra.mxu0 %v4421_v9 }
 0x4f1   :  { %3864 = vmatmul.mubr.f32.vlgmr.msra.gmra.mrb[136].mxu0 %v3704_v25 }
 0x4f2   :  { %3869 = vmatprep.mubr.f32.mxu0 %v3709_v53 }
 0x4f5   :  { %3870 = vmatmul.mubr.f32.gmra.mrb[138].mxu0 %v3708_v14 }
 0x544   :  { %v3788_v48 = vpop.f32.mrb[164].mxu1 }
 0x545   :  { %v3790_v61 = vpop.f32.mrb[165].mxu1  ;;  %v3789_v43 = vadd.f32 %v3788_v48, %v3715_v35 }
 0x546   :  { %v3791_v32 = vadd.f32 %v3790_v61, %v3715_v35 }
 0x548   :  { %v3794_v52 = vpop.f32.mrb[166].mxu1 }
 0x549   :  { %v3796_v58 = vpop.f32.mrb[167].mxu1  ;;  %v3795_v60 = vadd.f32 %v3794_v52, %v3720_v2 }
 0x54a   :  { %v3797_v41 = vadd.f32 %v3796_v58, %v3720_v2 }
 0x5c4   :  { %v3865_v51 = vpop.f32.mrb[136].mxu0 }
 0x5c5   :  { %v3866_v62 = vadd.f32 %v3865_v51, %v3789_v43  ;;  %v3867_v15 = vpop.f32.mrb[137].mxu0 }
 0x5c6   :  { %v3868_v13 = vadd.f32 %v3867_v15, %v3791_v32 }
 0x5c7   :  { %v3876_v3 = vmax.f32 %v3866_v62, -0.5 }
 0x5c8   :  { %v3877_v31 = vmax.f32 %v3868_v13, -0.5  ;;  %v3871_v39 = vpop.f32.mrb[138].mxu0 }
 0x5c9   :  { %v3880_v26 = vadd.f32 1.0, %v3876_v3  ;;  %v3872_v59 = vadd.f32 %v3871_v39, %v3795_v60  ;;  %v3873_v18 = vpop.f32.mrb[139].mxu0 }
 0x5ca   :  { %v3881_v38 = vadd.f32 1.0, %v3877_v31  ;;  %v3874_v47 = vadd.f32 %v3873_v18, %v3797_v41 }
 0x5cb   :  { %v3895_v56 = vmul.f32 %v3888_v23, %v3880_v26  ;;  %v3878_v19 = vmax.f32 %v3872_v59, -0.5 }
 0x5cc   :  { %v3896_v63 = vmul.f32 %v3892_v10, %v3881_v38  ;;  %v3879_v34 = vmax.f32 %v3874_v47, -0.5 }
 0x5cd   :  { %v4107_v33 = vadd.f32 -1.0, %v3895_v56  ;;  %v3882_v6 = vadd.f32 1.0, %v3878_v19 }
 0x5ce   :  { %v4108_v36 = vadd.f32 -1.0, %v3896_v63  ;;  %v3883_v37 = vadd.f32 1.0, %v3879_v34 }
 0x5cf   :  { %3903 = vst [vmem:[#allocation2] sm:$0xff] %v4107_v33  ;;  %v3897_v28 = vmul.f32 %v3888_v23, %v3882_v6 }
 0x5d0   :  { %3904 = vst [vmem:[#allocation2 + $0x8] sm:$0xff] %v4108_v36  ;;  %v3898_v11 = vmul.f32 %v3892_v10, %v3883_v37 }
 0x5d1   :  { %v4109_v22 = vadd.f32 -1.0, %v3897_v28 }
 0x5d2   :  { %v4110_v17 = vadd.f32 -1.0, %v3898_v11 }
 0x5d3   :  { %3905 = vst [vmem:[#allocation2 + $0x10] sm:$0xf] %v4109_v22 }
 0x5d4   :  { %3906 = vst [vmem:[#allocation2 + $0x18] sm:$0xf] %v4110_v17 }
 0x5d5   :  { %4525 = shalt.err (!%p4522_p4)
}
 0x5d6   :  { %s4526_s30 = scalar_lea.hbm %s6795_s10, 512 }
 0x5d7   :  { %p4527_p5 = scmp.ne.s32.totalorder %s6795_s10, %s4526_s30  ;;  %p4530_p6 = scmp.lt.u32.totalorder %s4526_s30, %s6795_s10 }
 0x5d9   :  { %p4532_p7 = pnand %p4530_p6, %p4527_p5 }
 0x5db   :  { %4535 = shalt.err (!%p4532_p7)
}
 0x5dc   :  { %s4540_s9 = smov 256   ;;  %s4541_s15 = smov 16  }
 0x5dd   :  { %3918 = dma.vmem_to_hbm [thread:$0]  %s3913_s8, 512, %s6795_s10, [#allocation3], %s4540_s9, %s4540_s9, %s4541_s15  }
 0x5de   :  { %4536 = dma.done.wait [#allocation3], 512  }
 0x5df   :  { %4537 = vsyncadd [#allocation3], 4294966784 }
 0x5e0   :  { %3922 = vsyncpa [#allocation3], 1 }

</bundles_post_ra>
